<compile_context>
chip_gen: v6e
topology: v6e:2x2x1
jax: 0.10.0
libtpu: 0.0.40
codegen_flags: <defaults>
</compile_context>

<pallas_src>
import jax
import jax.numpy as jnp
from jax.experimental import pallas as pl
from jax.experimental.pallas import tpu as pltpu

LEAKY_SLOPE = 0.01   # ABN default activation parameter
BN_EPS = 1e-5
VMEM_LIMIT_BYTES = 48 * 1024 * 1024  # < v7x's 64 MiB/TC, plenty on v5e/v6e


def _round_up(x, m):
    return ((x + m - 1) // m) * m


def try_index(x, i):
    try:
        return x[i]
    except TypeError:
        return x


# ---------------------------------------------------------------------------
# Tile selection (minimise zero-padding, keep (8,128) alignment)
# ---------------------------------------------------------------------------
def _choose_tm(M):
    Ma = _round_up(M, 8)
    if Ma <= 512:
        return Ma, Ma
    best_t, best_p = 512, _round_up(Ma, 512)
    for t in (512, 384, 256):
        p = _round_up(Ma, t)
        if p < best_p or (p == best_p and t > best_t):
            best_t, best_p = t, p
    return best_t, best_p


def _choose_tn(N):
    Na = _round_up(N, 128)
    if Na <= 512:
        return Na, Na
    for t in (512, 384, 256):
        if Na % t == 0:
            return t, Na
    return 256, _round_up(Na, 256)


def _choose_tk(K):
    Ka = _round_up(K, 128)
    if Ka <= 1024:
        return Ka, Ka
    best_t, best_p = 512, _round_up(Ka, 512)
    for t in (1024, 896, 768, 640, 512, 384, 256):
        p = _round_up(Ka, t)
        if p < best_p or (p == best_p and t > best_t):
            best_t, best_p = t, p
    return best_t, best_p


def _choose_rows(R):
    if R <= 1024:
        return R, R
    best_t, best_p = 1024, _round_up(R, 1024)
    for t in (1024, 768, 512, 256):
        p = _round_up(R, t)
        if p < best_p or (p == best_p and t > best_t):
            best_t, best_p = t, p
    return best_t, best_p


# ---------------------------------------------------------------------------
# Pallas kernels
# ---------------------------------------------------------------------------
def _make_mm_kernel(act, has_residual):
    """Fused: out = act(acc * scale + bias [+ residual]);  acc = x @ w (bf16->f32)."""
    def kernel(*refs):
        if has_residual:
            x_ref, w_ref, sb_ref, r_ref, o_ref, acc_ref = refs
        else:
            x_ref, w_ref, sb_ref, o_ref, acc_ref = refs
            r_ref = None
        k = pl.program_id(2)

        @pl.when(k == 0)
        def _():
            acc_ref[...] = jnp.zeros_like(acc_ref)

        acc_ref[...] += jnp.dot(x_ref[...], w_ref[...],
                                preferred_element_type=jnp.float32)

        @pl.when(k == pl.num_programs(2) - 1)
        def _():
            y = acc_ref[...] * sb_ref[0:1, :] + sb_ref[1:2, :]
            if r_ref is not None:
                y = y + r_ref[...].astype(jnp.float32)
            if act == "leaky_relu":
                y = jnp.where(y >= 0, y, LEAKY_SLOPE * y)
            o_ref[...] = y.astype(o_ref.dtype)

    return kernel


def fused_matmul_bn_act(x, prep, residual=None, act="none"):
    """x: [M, K] (unpadded). prep: pre-padded bf16 weight + f32 scale/bias.
    Returns [M, N] bf16."""
    M, K = x.shape
    assert K == prep["K"]
    Kp, Np, tk, tn, N = prep["Kp"], prep["Np"], prep["tk"], prep["tn"], prep["N"]
    tm, Mp = _choose_tm(M)

    xp = x.astype(jnp.bfloat16)
    if (Mp, Kp) != (M, K):
        xp = jnp.pad(xp, ((0, Mp - M), (0, Kp - K)))

    in_specs = [
        pl.BlockSpec((tm, tk), lambda i, j, k: (i, k)),
        pl.BlockSpec((tk, tn), lambda i, j, k: (k, j)),
        pl.BlockSpec((2, tn), lambda i, j, k: (0, j)),
    ]
    args = [xp, prep["wp"], prep["sbp"]]
    if residual is not None:
        rp = residual.astype(jnp.bfloat16)
        if (Mp, Np) != rp.shape:
            rp = jnp.pad(rp, ((0, Mp - rp.shape[0]), (0, Np - rp.shape[1])))
        in_specs.append(pl.BlockSpec((tm, tn), lambda i, j, k: (i, j)))
        args.append(rp)

    grid = (Mp // tm, Np // tn, Kp // tk)
    out = pl.pallas_call(
        _make_mm_kernel(act, residual is not None),
        out_shape=jax.ShapeDtypeStruct((Mp, Np), jnp.bfloat16),
        grid_spec=pltpu.PrefetchScalarGridSpec(
            num_scalar_prefetch=0,
            grid=grid,
            in_specs=in_specs,
            out_specs=pl.BlockSpec((tm, tn), lambda i, j, k: (i, j)),
            scratch_shapes=[pltpu.VMEM((tm, tn), jnp.float32)],
        ),
        compiler_params=pltpu.CompilerParams(
            dimension_semantics=("parallel", "parallel", "arbitrary"),
            vmem_limit_bytes=VMEM_LIMIT_BYTES),
    )(*args)
    if (Mp, Np) != (M, N):
        out = out[:M, :N]
    return out


def _maxpool_kernel(x_ref, o_ref):
    o_ref[...] = jnp.max(x_ref[...], axis=0)


def maxpool2d_3x3_s2_p1(x):
    """nn.MaxPool2d(3, stride=2, padding=1). x: NHWC (bf16)."""
    N, H, W, C = x.shape
    xp = jnp.pad(x, ((0, 0), (1, 1), (1, 1), (0, 0)),
                 constant_values=-jnp.inf)
    Ho = (H + 2 - 3) // 2 + 1
    Wo = (W + 2 - 3) // 2 + 1
    wins = []
    for i in range(3):
        for j in range(3):
            wins.append(xp[:, i:i + 2 * (Ho - 1) + 1:2,
                           j:j + 2 * (Wo - 1) + 1:2, :])
    M = N * Ho * Wo
    stacked = jnp.stack(wins, 0).reshape(9, M, C)

    # Lane-dense layout: fold rows into lanes so the last dim is 128-wide.
    fold = 128 // C if (C < 128 and 128 % C == 0) else 1
    align = 8 * fold
    rows_tot = _round_up(M, align) // fold
    tr, rows_p = _choose_rows(rows_tot)
    Mp = rows_p * fold
    if Mp != M:
        stacked = jnp.pad(stacked, ((0, 0), (0, Mp - M), (0, 0)),
                          constant_values=-jnp.inf)
    Cf = C * fold
    stacked = stacked.reshape(9, rows_p, Cf)

    out = pl.pallas_call(
        _maxpool_kernel,
        out_shape=jax.ShapeDtypeStruct((rows_p, Cf), x.dtype),
        grid_spec=pltpu.PrefetchScalarGridSpec(
            num_scalar_prefetch=0,
            grid=(rows_p // tr,),
            in_specs=[pl.BlockSpec((9, tr, Cf), lambda i: (0, i, 0))],
            out_specs=pl.BlockSpec((tr, Cf), lambda i: (i, 0)),
        ),
        compiler_params=pltpu.CompilerParams(
            dimension_semantics=("parallel",),
            vmem_limit_bytes=VMEM_LIMIT_BYTES),
    )(stacked)
    return out.reshape(Mp, C)[:M].reshape(N, Ho, Wo, C)


# ---------------------------------------------------------------------------
# Glue: im2col + conv wrapper
# ---------------------------------------------------------------------------
def _im2col(x, kh, kw, stride, dilation, padding):
    N, H, W, C = x.shape
    if padding:
        x = jnp.pad(x, ((0, 0), (padding, padding), (padding, padding), (0, 0)))
    Hp, Wp = H + 2 * padding, W + 2 * padding
    eff_kh = dilation * (kh - 1) + 1
    eff_kw = dilation * (kw - 1) + 1
    Ho = (Hp - eff_kh) // stride + 1
    Wo = (Wp - eff_kw) // stride + 1
    if kh == 1 and kw == 1:
        patches = x[:, ::stride, ::stride, :][:, :Ho, :Wo, :]
        return patches.reshape(N * Ho * Wo, C), (N, Ho, Wo)
    cols = []
    for i in range(kh):
        for j in range(kw):
            h0, w0 = i * dilation, j * dilation
            cols.append(x[:, h0:h0 + stride * (Ho - 1) + 1:stride,
                           w0:w0 + stride * (Wo - 1) + 1:stride, :])
    patches = jnp.concatenate(cols, axis=-1)  # [N, Ho, Wo, kh*kw*C]
    return patches.reshape(N * Ho * Wo, kh * kw * C), (N, Ho, Wo)


def conv_bn_act(x, prep, *, stride, dilation, padding, residual=None, act="none"):
    """x: NHWC bf16; prep from _prep_conv. Returns NHWC bf16."""
    kh, kw = prep["kh"], prep["kw"]
    patches, (N, Ho, Wo) = _im2col(x, kh, kw, stride, dilation, padding)
    res2d = (residual.reshape(N * Ho * Wo, prep["N"])
             if residual is not None else None)
    out = fused_matmul_bn_act(patches, prep, residual=res2d, act=act)
    return out.reshape(N, Ho, Wo, prep["N"])


def _prep_conv(w, scale, bias):
    """Pre-reshape / pre-pad / pre-cast conv weight + folded BN scale/bias."""
    kh, kw, cin, cout = w.shape
    K, N = kh * kw * cin, cout
    tk, Kp = _choose_tk(K)
    tn, Np = _choose_tn(N)
    wp = jnp.pad(w.reshape(K, N).astype(jnp.bfloat16),
                 ((0, Kp - K), (0, Np - N)))
    sb = jnp.stack([scale, bias], axis=0).astype(jnp.float32)
    sbp = jnp.pad(sb, ((0, 0), (0, Np - N)))
    return {"wp": wp, "sbp": sbp, "K": K, "N": N, "Kp": Kp, "Np": Np,
            "tk": tk, "tn": tn, "kh": kh, "kw": kw}


# ---------------------------------------------------------------------------
# Deterministic parameter init
# ---------------------------------------------------------------------------
class _KeyGen:
    def __init__(self, key):
        self.key = key

    def __call__(self):
        self.key, sub = jax.random.split(self.key)
        return sub


def _init_conv(kg, kh, kw, cin, cout):
    fan_in = kh * kw * cin
    return (jax.random.normal(kg(), (kh, kw, cin, cout), jnp.float32)
            * jnp.sqrt(2.0 / fan_in))


def _init_bn(kg, c):
    gamma = 1.0 + 0.1 * jax.random.normal(kg(), (c,), jnp.float32)
    beta = 0.1 * jax.random.normal(kg(), (c,), jnp.float32)
    mean = 0.1 * jax.random.normal(kg(), (c,), jnp.float32)
    var = 0.5 + jax.random.uniform(kg(), (c,), jnp.float32)
    scale = gamma / jnp.sqrt(var + BN_EPS)
    bias = beta - mean * scale
    return scale, bias


# ---------------------------------------------------------------------------
# ResNet
# ---------------------------------------------------------------------------
class ResNetPallas:
    def __init__(self, structure, bottleneck, classes=0, dilation=1,
                 dropout=None, caffe_mode=False, key=None):
        if len(structure) != 4:
            raise ValueError("Expected a structure with four values")
        if dilation != 1 and len(dilation) != 4:
            raise ValueError("If dilation is not 1 it must contain four values")
        self.structure = structure
        self.bottleneck = bottleneck
        self.dilation = dilation
        self.classes = classes
        self.caffe_mode = caffe_mode
        kg = _KeyGen(key if key is not None else jax.random.PRNGKey(1))

        # mod1: conv1 (7x7/2, pad 3) -> bn1 -> [maxpool]
        conv1_w = _init_conv(kg, 7, 7, 3, 64)
        conv1_b = (0.1 * jax.random.normal(kg(), (64,), jnp.float32)
                   if caffe_mode else jnp.zeros((64,), jnp.float32))
        bn1_scale, bn1_bias = _init_bn(kg, 64)
        self.conv1 = _prep_conv(conv1_w, bn1_scale,
                                bn1_bias + bn1_scale * conv1_b)  # fold caffe bias
        self.pool1 = (try_index(dilation, 0) == 1)

        in_channels = 64
        channels = (64, 64, 256) if bottleneck else (64, 64)
        self.mods = []
        for mod_id, num in enumerate(structure):
            blocks = []
            for block_id in range(num):
                stride, dil = self._stride_dilation(dilation, mod_id, block_id)
                blocks.append(self._init_block(kg, in_channels, channels,
                                               stride, dil))
                in_channels = channels[-1]
            self.mods.append(blocks)
            channels = tuple(c * 2 for c in channels)

        if classes != 0:
            fc_w = (jax.random.normal(kg(), (in_channels, classes), jnp.float32)
                    / jnp.sqrt(float(in_channels)))
            fc_b = 0.1 * jax.random.normal(kg(), (classes,), jnp.float32)
            self.fc_w, self.fc_b = fc_w, fc_b
            # Pallas path for large batches; tiny batches use jnp.dot.
            self.fc_prep = _prep_conv(fc_w.reshape(1, 1, in_channels, classes),
                                      jnp.ones((classes,), jnp.float32), fc_b)

    @staticmethod
    def _stride_dilation(dilation, mod_id, block_id):
        d = try_index(dilation, mod_id)
        s = 2 if d == 1 and block_id == 0 and mod_id > 0 else 1
        return s, d

    def _init_block(self, kg, in_ch, channels, stride, dilation):
        p = {"stride": stride, "dilation": dilation}
        if self.bottleneck:
            c0, c1, c2 = channels
            p["conv1"] = _prep_conv(_init_conv(kg, 1, 1, in_ch, c0), *_init_bn(kg, c0))
            p["conv2"] = _prep_conv(_init_conv(kg, 3, 3, c0, c1), *_init_bn(kg, c1))
            p["conv3"] = _prep_conv(_init_conv(kg, 1, 1, c1, c2), *_init_bn(kg, c2))
        else:
            c0, c1 = channels
            p["conv1"] = _prep_conv(_init_conv(kg, 3, 3, in_ch, c0), *_init_bn(kg, c0))
            p["conv2"] = _prep_conv(_init_conv(kg, 3, 3, c0, c1), *_init_bn(kg, c1))
        if stride != 1 or in_ch != channels[-1]:
            p["proj"] = _prep_conv(_init_conv(kg, 1, 1, in_ch, channels[-1]),
                                   *_init_bn(kg, channels[-1]))
        return p

    def _block_forward(self, x, p):
        stride, dil = p["stride"], p["dilation"]
        if "proj" in p:
            res = conv_bn_act(x, p["proj"], stride=stride, dilation=1,
                              padding=0, act="none")
        else:
            res = x
        if self.bottleneck:
            h = conv_bn_act(x, p["conv1"], stride=stride, dilation=1,
                            padding=0, act="leaky_relu")
            h = conv_bn_act(h, p["conv2"], stride=1, dilation=dil,
                            padding=dil, act="leaky_relu")
            out = conv_bn_act(h, p["conv3"], stride=1, dilation=1,
                              padding=0, residual=res, act="leaky_relu")
        else:
            h = conv_bn_act(x, p["conv1"], stride=stride, dilation=dil,
                            padding=dil, act="leaky_relu")
            out = conv_bn_act(h, p["conv2"], stride=1, dilation=dil,
                              padding=dil, residual=res, act="leaky_relu")
        return out

    def __call__(self, x_nchw):
        # NCHW -> NHWC, bf16 internal activations (f32 accumulation in kernels).
        x = jnp.transpose(x_nchw, (0, 2, 3, 1)).astype(jnp.bfloat16)
        outs = {}
        h = conv_bn_act(x, self.conv1, stride=2, dilation=1, padding=3, act="none")
        if self.pool1:
            h = maxpool2d_3x3_s2_p1(h)
        outs["mod1"] = h
        for mod_id, blocks in enumerate(self.mods):
            for p in blocks:
                h = self._block_forward(h, p)
            outs["mod%d" % (mod_id + 2)] = h
        result = {k: jnp.transpose(v, (0, 3, 1, 2)).astype(jnp.float32)
                  for k, v in outs.items()}
        if self.classes != 0:
            pooled = jnp.mean(h.astype(jnp.float32), axis=(1, 2))  # GlobalAvgPool2d
            if pooled.shape[0] < 64:
                # Tiny-M FC: a padded pallas_call is pure launch overhead here.
                logits = jnp.dot(pooled, self.fc_w) + self.fc_b
            else:
                logits = fused_matmul_bn_act(pooled.astype(jnp.bfloat16),
                                             self.fc_prep,
                                             act="none").astype(jnp.float32)
            result["classifier"] = logits
        return result


if __name__ == "__main__":
    key = jax.random.PRNGKey(0)
    k_in, k_par = jax.random.split(key)
    # Input is NCHW with 3 channels (conv1 is hard-coded 3->64), small spatial.
    x = jax.random.normal(k_in, (2, 3, 16, 16), jnp.float32)

    model = ResNetPallas(structure=[1, 1, 1, 1], bottleneck=False,
                         classes=10, dilation=1, key=k_par)
    # One jit compilation for the whole forward (all pallas_calls inside).
    fwd = jax.jit(model.__call__)
    outs = fwd(x)
    jax.block_until_ready(outs)

    assert outs["mod1"].shape == (2, 64, 4, 4)
    assert outs["mod2"].shape == (2, 64, 4, 4)
    assert outs["mod3"].shape == (2, 128, 2, 2)
    assert outs["mod4"].shape == (2, 256, 1, 1)
    assert outs["mod5"].shape == (2, 512, 1, 1)
    assert outs["classifier"].shape == (2, 10)
    assert all(bool(jnp.isfinite(v).all()) for v in outs.values())
    print("KERNEL_OK")
</pallas_src>

<mosaic_0001>
module attributes {stable_mosaic.version = 11 : i64} {
  func.func @kernel(%arg0: i32, %arg1: i32, %arg2: i32, %arg3: memref<128x256xbf16, #tpu.memory_space<vmem>>, %arg4: memref<256x128xbf16, #tpu.memory_space<vmem>>, %arg5: memref<2x128xf32, #tpu.memory_space<vmem>>, %arg6: memref<128x128xbf16, #tpu.memory_space<vmem>>, %arg7: memref<128x128xf32, #tpu.memory_space<vmem>>) attributes {dimension_semantics = [#tpu.dimension_semantics<parallel>, #tpu.dimension_semantics<parallel>, #tpu.dimension_semantics<arbitrary>], iteration_bounds = array<i64: 1, 1, 1>, scalar_prefetch = 0 : i64, scratch_operands = 1 : i64, tpu.core_type = #tpu.core_type<tc>, window_params = [{transform_indices = @transform_0, window_bounds = array<i64: 128, 256>}, {transform_indices = @transform_1, window_bounds = array<i64: 256, 128>}, {transform_indices = @transform_2, window_bounds = array<i64: 2, 128>}, {transform_indices = @transform_3, window_bounds = array<i64: 128, 128>}]} {
    %c0_i32 = arith.constant 0 : i32
    %0 = arith.cmpi eq, %arg2, %c0_i32 : i32
    %1 = arith.extui %0 : i1 to i32
    %c0_i32_0 = arith.constant 0 : i32
    %2 = arith.cmpi ne, %1, %c0_i32_0 : i32
    scf.if %2 {
      %cst_10 = arith.constant 0.000000e+00 : f32
      %12 = vector.broadcast %cst_10 : f32 to vector<128x128xf32>
      %c0_11 = arith.constant 0 : index
      %c0_12 = arith.constant 0 : index
      %13 = vector.load %arg7[%c0_11, %c0_12] : memref<128x128xf32, #tpu.memory_space<vmem>>, vector<128x128xf32>
      tpu.vector_store %arg7[%c0_11, %c0_12], %12 {strides = array<i32>} : memref<128x128xf32, #tpu.memory_space<vmem>>, vector<128x128xf32>,
    } else {
    }
    %c0 = arith.constant 0 : index
    %c0_1 = arith.constant 0 : index
    %3 = vector.load %arg7[%c0, %c0_1] : memref<128x128xf32, #tpu.memory_space<vmem>>, vector<128x128xf32>
    %c0_2 = arith.constant 0 : index
    %c0_3 = arith.constant 0 : index
    %4 = vector.load %arg3[%c0_2, %c0_3] : memref<128x256xbf16, #tpu.memory_space<vmem>>, vector<128x256xbf16>
    %c0_4 = arith.constant 0 : index
    %c0_5 = arith.constant 0 : index
    %5 = vector.load %arg4[%c0_4, %c0_5] : memref<256x128xbf16, #tpu.memory_space<vmem>>, vector<256x128xbf16>
    %cst = arith.constant dense<0.000000e+00> : vector<128x128xf32>
    %6 = tpu.matmul %4, %5, %cst {dimension_numbers = #tpu.dot_dimension_numbers<[1], [0], [0], [1], [0, 0, 1, 1], [], []>} : vector<128x256xbf16>, vector<256x128xbf16>, vector<128x128xf32> -> vector<128x128xf32>
    %7 = arith.addf %3, %6 : vector<128x128xf32>
    %c0_6 = arith.constant 0 : index
    %c0_7 = arith.constant 0 : index
    %8 = vector.load %arg7[%c0_6, %c0_7] : memref<128x128xf32, #tpu.memory_space<vmem>>, vector<128x128xf32>
    tpu.vector_store %arg7[%c0_6, %c0_7], %7 {strides = array<i32>} : memref<128x128xf32, #tpu.memory_space<vmem>>, vector<128x128xf32>,
    %c0_i32_8 = arith.constant 0 : i32
    %9 = arith.cmpi eq, %arg2, %c0_i32_8 : i32
    %10 = arith.extui %9 : i1 to i32
    %c0_i32_9 = arith.constant 0 : i32
    %11 = arith.cmpi ne, %10, %c0_i32_9 : i32
    scf.if %11 {
      %c0_10 = arith.constant 0 : index
      %c0_11 = arith.constant 0 : index
      %12 = vector.load %arg7[%c0_10, %c0_11] : memref<128x128xf32, #tpu.memory_space<vmem>>, vector<128x128xf32>
      %c0_12 = arith.constant 0 : index
      %c0_13 = arith.constant 0 : index
      %13 = vector.load %arg5[%c0_12, %c0_13] : memref<2x128xf32, #tpu.memory_space<vmem>>, vector<1x128xf32>
      %14 = vector.broadcast %13 : vector<1x128xf32> to vector<128x128xf32>
      %15 = arith.mulf %12, %14 : vector<128x128xf32>
      %c1 = arith.constant 1 : index
      %c0_14 = arith.constant 0 : index
      %16 = vector.load %arg5[%c1, %c0_14] : memref<2x128xf32, #tpu.memory_space<vmem>>, vector<1x128xf32>
      %17 = vector.broadcast %16 : vector<1x128xf32> to vector<128x128xf32>
      %18 = arith.addf %15, %17 : vector<128x128xf32>
      %19 = arith.truncf %18 : vector<128x128xf32> to vector<128x128xbf16>
      %c0_15 = arith.constant 0 : index
      %c0_16 = arith.constant 0 : index
      %20 = vector.load %arg6[%c0_15, %c0_16] : memref<128x128xbf16, #tpu.memory_space<vmem>>, vector<128x128xbf16>
      tpu.vector_store %arg6[%c0_15, %c0_16], %19 {strides = array<i32>} : memref<128x128xbf16, #tpu.memory_space<vmem>>, vector<128x128xbf16>,
    } else {
    }
    return
  }
  func.func @transform_0(%arg0: i32, %arg1: i32, %arg2: i32) -> (i32, i32) {
    %c0_i32 = arith.constant 0 : i32
    return %arg0, %arg2 : i32, i32
  }
  func.func @transform_1(%arg0: i32, %arg1: i32, %arg2: i32) -> (i32, i32) {
    %c0_i32 = arith.constant 0 : i32
    return %arg2, %arg1 : i32, i32
  }
  func.func @transform_2(%arg0: i32, %arg1: i32, %arg2: i32) -> (i32, i32) {
    %c0_i32 = arith.constant 0 : i32
    %c0_i32_0 = arith.constant 0 : i32
    return %c0_i32, %arg1 : i32, i32
  }
  func.func @transform_3(%arg0: i32, %arg1: i32, %arg2: i32) -> (i32, i32) {
    %c0_i32 = arith.constant 0 : i32
    return %arg0, %arg1 : i32, i32
  }
}

module attributes {stable_mosaic.version = 11 : i64} {
  func.func @_maxpool_kernel(%arg0: i32, %arg1: memref<9x16x128xbf16, #tpu.memory_space<vmem>>, %arg2: memref<16x128xbf16, #tpu.memory_space<vmem>>) attributes {dimension_semantics = [#tpu.dimension_semantics<parallel>], iteration_bounds = array<i64: 1>, scalar_prefetch = 0 : i64, scratch_operands = 0 : i64, tpu.core_type = #tpu.core_type<tc>, window_params = [{transform_indices = @transform_0, window_bounds = array<i64: 9, 16, 128>}, {transform_indices = @transform_1, window_bounds = array<i64: 16, 128>}]} {
    %c0 = arith.constant 0 : index
    %c0_0 = arith.constant 0 : index
    %c0_1 = arith.constant 0 : index
    %0 = vector.load %arg1[%c0, %c0_0, %c0_1] : memref<9x16x128xbf16, #tpu.memory_space<vmem>>, vector<9x16x128xbf16>
    %cst = arith.constant dense<0xFF80> : vector<16x128xbf16>
    %1 = vector.multi_reduction <maximumf>, %0, %cst [0] : vector<9x16x128xbf16> to vector<16x128xbf16>
    %c0_2 = arith.constant 0 : index
    %c0_3 = arith.constant 0 : index
    %2 = vector.load %arg2[%c0_2, %c0_3] : memref<16x128xbf16, #tpu.memory_space<vmem>>, vector<16x128xbf16>
    tpu.vector_store %arg2[%c0_2, %c0_3], %1 {strides = array<i32>} : memref<16x128xbf16, #tpu.memory_space<vmem>>, vector<16x128xbf16>,
    return
  }
  func.func @transform_0(%arg0: i32) -> (i32, i32, i32) {
    %c0_i32 = arith.constant 0 : i32
    %c0_i32_0 = arith.constant 0 : i32
    %c0_i32_1 = arith.constant 0 : i32
    return %c0_i32, %arg0, %c0_i32_0 : i32, i32, i32
  }
  func.func @transform_1(%arg0: i32) -> (i32, i32) {
    %c0_i32 = arith.constant 0 : i32
    %c0_i32_0 = arith.constant 0 : i32
    return %arg0, %c0_i32 : i32, i32
  }
}

module attributes {stable_mosaic.version = 11 : i64} {
  func.func @kernel(%arg0: i32, %arg1: i32, %arg2: i32, %arg3: memref<32x640xbf16, #tpu.memory_space<vmem>>, %arg4: memref<640x128xbf16, #tpu.memory_space<vmem>>, %arg5: memref<2x128xf32, #tpu.memory_space<vmem>>, %arg6: memref<32x128xbf16, #tpu.memory_space<vmem>>, %arg7: memref<32x128xf32, #tpu.memory_space<vmem>>) attributes {dimension_semantics = [#tpu.dimension_semantics<parallel>, #tpu.dimension_semantics<parallel>, #tpu.dimension_semantics<arbitrary>], iteration_bounds = array<i64: 1, 1, 1>, scalar_prefetch = 0 : i64, scratch_operands = 1 : i64, tpu.core_type = #tpu.core_type<tc>, window_params = [{transform_indices = @transform_0, window_bounds = array<i64: 32, 640>}, {transform_indices = @transform_1, window_bounds = array<i64: 640, 128>}, {transform_indices = @transform_2, window_bounds = array<i64: 2, 128>}, {transform_indices = @transform_3, window_bounds = array<i64: 32, 128>}]} {
    %c0_i32 = arith.constant 0 : i32
    %0 = arith.cmpi eq, %arg2, %c0_i32 : i32
    %1 = arith.extui %0 : i1 to i32
    %c0_i32_0 = arith.constant 0 : i32
    %2 = arith.cmpi ne, %1, %c0_i32_0 : i32
    scf.if %2 {
      %cst_10 = arith.constant 0.000000e+00 : f32
      %12 = vector.broadcast %cst_10 : f32 to vector<32x128xf32>
      %c0_11 = arith.constant 0 : index
      %c0_12 = arith.constant 0 : index
      %13 = vector.load %arg7[%c0_11, %c0_12] : memref<32x128xf32, #tpu.memory_space<vmem>>, vector<32x128xf32>
      tpu.vector_store %arg7[%c0_11, %c0_12], %12 {strides = array<i32>} : memref<32x128xf32, #tpu.memory_space<vmem>>, vector<32x128xf32>,
    } else {
    }
    %c0 = arith.constant 0 : index
    %c0_1 = arith.constant 0 : index
    %3 = vector.load %arg7[%c0, %c0_1] : memref<32x128xf32, #tpu.memory_space<vmem>>, vector<32x128xf32>
    %c0_2 = arith.constant 0 : index
    %c0_3 = arith.constant 0 : index
    %4 = vector.load %arg3[%c0_2, %c0_3] : memref<32x640xbf16, #tpu.memory_space<vmem>>, vector<32x640xbf16>
    %c0_4 = arith.constant 0 : index
    %c0_5 = arith.constant 0 : index
    %5 = vector.load %arg4[%c0_4, %c0_5] : memref<640x128xbf16, #tpu.memory_space<vmem>>, vector<640x128xbf16>
    %cst = arith.constant dense<0.000000e+00> : vector<32x128xf32>
    %6 = tpu.matmul %4, %5, %cst {dimension_numbers = #tpu.dot_dimension_numbers<[1], [0], [0], [1], [0, 0, 1, 1], [], []>} : vector<32x640xbf16>, vector<640x128xbf16>, vector<32x128xf32> -> vector<32x128xf32>
    %7 = arith.addf %3, %6 : vector<32x128xf32>
    %c0_6 = arith.constant 0 : index
    %c0_7 = arith.constant 0 : index
    %8 = vector.load %arg7[%c0_6, %c0_7] : memref<32x128xf32, #tpu.memory_space<vmem>>, vector<32x128xf32>
    tpu.vector_store %arg7[%c0_6, %c0_7], %7 {strides = array<i32>} : memref<32x128xf32, #tpu.memory_space<vmem>>, vector<32x128xf32>,
    %c0_i32_8 = arith.constant 0 : i32
    %9 = arith.cmpi eq, %arg2, %c0_i32_8 : i32
    %10 = arith.extui %9 : i1 to i32
    %c0_i32_9 = arith.constant 0 : i32
    %11 = arith.cmpi ne, %10, %c0_i32_9 : i32
    scf.if %11 {
      %c0_10 = arith.constant 0 : index
      %c0_11 = arith.constant 0 : index
      %12 = vector.load %arg7[%c0_10, %c0_11] : memref<32x128xf32, #tpu.memory_space<vmem>>, vector<32x128xf32>
      %c0_12 = arith.constant 0 : index
      %c0_13 = arith.constant 0 : index
      %13 = vector.load %arg5[%c0_12, %c0_13] : memref<2x128xf32, #tpu.memory_space<vmem>>, vector<1x128xf32>
      %14 = vector.broadcast %13 : vector<1x128xf32> to vector<32x128xf32>
      %15 = arith.mulf %12, %14 : vector<32x128xf32>
      %c1 = arith.constant 1 : index
      %c0_14 = arith.constant 0 : index
      %16 = vector.load %arg5[%c1, %c0_14] : memref<2x128xf32, #tpu.memory_space<vmem>>, vector<1x128xf32>
      %17 = vector.broadcast %16 : vector<1x128xf32> to vector<32x128xf32>
      %18 = arith.addf %15, %17 : vector<32x128xf32>
      %cst_15 = arith.constant 0.000000e+00 : f32
      %19 = vector.broadcast %cst_15 : f32 to vector<32x128xf32>
      %20 = arith.cmpf oge, %18, %19 : vector<32x128xf32>
      %cst_16 = arith.constant 0.00999999977 : f32
      %21 = vector.broadcast %cst_16 : f32 to vector<32x128xf32>
      %22 = arith.mulf %21, %18 : vector<32x128xf32>
      %23 = arith.select %20, %18, %22 : vector<32x128xi1>, vector<32x128xf32>
      %24 = arith.truncf %23 : vector<32x128xf32> to vector<32x128xbf16>
      %c0_17 = arith.constant 0 : index
      %c0_18 = arith.constant 0 : index
      %25 = vector.load %arg6[%c0_17, %c0_18] : memref<32x128xbf16, #tpu.memory_space<vmem>>, vector<32x128xbf16>
      tpu.vector_store %arg6[%c0_17, %c0_18], %24 {strides = array<i32>} : memref<32x128xbf16, #tpu.memory_space<vmem>>, vector<32x128xbf16>,
    } else {
    }
    return
  }
  func.func @transform_0(%arg0: i32, %arg1: i32, %arg2: i32) -> (i32, i32) {
    %c0_i32 = arith.constant 0 : i32
    return %arg0, %arg2 : i32, i32
  }
  func.func @transform_1(%arg0: i32, %arg1: i32, %arg2: i32) -> (i32, i32) {
    %c0_i32 = arith.constant 0 : i32
    return %arg2, %arg1 : i32, i32
  }
  func.func @transform_2(%arg0: i32, %arg1: i32, %arg2: i32) -> (i32, i32) {
    %c0_i32 = arith.constant 0 : i32
    %c0_i32_0 = arith.constant 0 : i32
    return %c0_i32, %arg1 : i32, i32
  }
  func.func @transform_3(%arg0: i32, %arg1: i32, %arg2: i32) -> (i32, i32) {
    %c0_i32 = arith.constant 0 : i32
    return %arg0, %arg1 : i32, i32
  }
}

module attributes {stable_mosaic.version = 11 : i64} {
  func.func @kernel(%arg0: i32, %arg1: i32, %arg2: i32, %arg3: memref<32x640xbf16, #tpu.memory_space<vmem>>, %arg4: memref<640x128xbf16, #tpu.memory_space<vmem>>, %arg5: memref<2x128xf32, #tpu.memory_space<vmem>>, %arg6: memref<32x128xbf16, #tpu.memory_space<vmem>>, %arg7: memref<32x128xbf16, #tpu.memory_space<vmem>>, %arg8: memref<32x128xf32, #tpu.memory_space<vmem>>) attributes {dimension_semantics = [#tpu.dimension_semantics<parallel>, #tpu.dimension_semantics<parallel>, #tpu.dimension_semantics<arbitrary>], iteration_bounds = array<i64: 1, 1, 1>, scalar_prefetch = 0 : i64, scratch_operands = 1 : i64, tpu.core_type = #tpu.core_type<tc>, window_params = [{transform_indices = @transform_0, window_bounds = array<i64: 32, 640>}, {transform_indices = @transform_1, window_bounds = array<i64: 640, 128>}, {transform_indices = @transform_2, window_bounds = array<i64: 2, 128>}, {transform_indices = @transform_3, window_bounds = array<i64: 32, 128>}, {transform_indices = @transform_4, window_bounds = array<i64: 32, 128>}]} {
    %c0_i32 = arith.constant 0 : i32
    %0 = arith.cmpi eq, %arg2, %c0_i32 : i32
    %1 = arith.extui %0 : i1 to i32
    %c0_i32_0 = arith.constant 0 : i32
    %2 = arith.cmpi ne, %1, %c0_i32_0 : i32
    scf.if %2 {
      %cst_10 = arith.constant 0.000000e+00 : f32
      %12 = vector.broadcast %cst_10 : f32 to vector<32x128xf32>
      %c0_11 = arith.constant 0 : index
      %c0_12 = arith.constant 0 : index
      %13 = vector.load %arg8[%c0_11, %c0_12] : memref<32x128xf32, #tpu.memory_space<vmem>>, vector<32x128xf32>
      tpu.vector_store %arg8[%c0_11, %c0_12], %12 {strides = array<i32>} : memref<32x128xf32, #tpu.memory_space<vmem>>, vector<32x128xf32>,
    } else {
    }
    %c0 = arith.constant 0 : index
    %c0_1 = arith.constant 0 : index
    %3 = vector.load %arg8[%c0, %c0_1] : memref<32x128xf32, #tpu.memory_space<vmem>>, vector<32x128xf32>
    %c0_2 = arith.constant 0 : index
    %c0_3 = arith.constant 0 : index
    %4 = vector.load %arg3[%c0_2, %c0_3] : memref<32x640xbf16, #tpu.memory_space<vmem>>, vector<32x640xbf16>
    %c0_4 = arith.constant 0 : index
    %c0_5 = arith.constant 0 : index
    %5 = vector.load %arg4[%c0_4, %c0_5] : memref<640x128xbf16, #tpu.memory_space<vmem>>, vector<640x128xbf16>
    %cst = arith.constant dense<0.000000e+00> : vector<32x128xf32>
    %6 = tpu.matmul %4, %5, %cst {dimension_numbers = #tpu.dot_dimension_numbers<[1], [0], [0], [1], [0, 0, 1, 1], [], []>} : vector<32x640xbf16>, vector<640x128xbf16>, vector<32x128xf32> -> vector<32x128xf32>
    %7 = arith.addf %3, %6 : vector<32x128xf32>
    %c0_6 = arith.constant 0 : index
    %c0_7 = arith.constant 0 : index
    %8 = vector.load %arg8[%c0_6, %c0_7] : memref<32x128xf32, #tpu.memory_space<vmem>>, vector<32x128xf32>
    tpu.vector_store %arg8[%c0_6, %c0_7], %7 {strides = array<i32>} : memref<32x128xf32, #tpu.memory_space<vmem>>, vector<32x128xf32>,
    %c0_i32_8 = arith.constant 0 : i32
    %9 = arith.cmpi eq, %arg2, %c0_i32_8 : i32
    %10 = arith.extui %9 : i1 to i32
    %c0_i32_9 = arith.constant 0 : i32
    %11 = arith.cmpi ne, %10, %c0_i32_9 : i32
    scf.if %11 {
      %c0_10 = arith.constant 0 : index
      %c0_11 = arith.constant 0 : index
      %12 = vector.load %arg8[%c0_10, %c0_11] : memref<32x128xf32, #tpu.memory_space<vmem>>, vector<32x128xf32>
      %c0_12 = arith.constant 0 : index
      %c0_13 = arith.constant 0 : index
      %13 = vector.load %arg5[%c0_12, %c0_13] : memref<2x128xf32, #tpu.memory_space<vmem>>, vector<1x128xf32>
      %14 = vector.broadcast %13 : vector<1x128xf32> to vector<32x128xf32>
      %15 = arith.mulf %12, %14 : vector<32x128xf32>
      %c1 = arith.constant 1 : index
      %c0_14 = arith.constant 0 : index
      %16 = vector.load %arg5[%c1, %c0_14] : memref<2x128xf32, #tpu.memory_space<vmem>>, vector<1x128xf32>
      %17 = vector.broadcast %16 : vector<1x128xf32> to vector<32x128xf32>
      %18 = arith.addf %15, %17 : vector<32x128xf32>
      %c0_15 = arith.constant 0 : index
      %c0_16 = arith.constant 0 : index
      %19 = vector.load %arg6[%c0_15, %c0_16] : memref<32x128xbf16, #tpu.memory_space<vmem>>, vector<32x128xbf16>
      %20 = arith.extf %19 : vector<32x128xbf16> to vector<32x128xf32>
      %21 = arith.addf %18, %20 : vector<32x128xf32>
      %cst_17 = arith.constant 0.000000e+00 : f32
      %22 = vector.broadcast %cst_17 : f32 to vector<32x128xf32>
      %23 = arith.cmpf oge, %21, %22 : vector<32x128xf32>
      %cst_18 = arith.constant 0.00999999977 : f32
      %24 = vector.broadcast %cst_18 : f32 to vector<32x128xf32>
      %25 = arith.mulf %24, %21 : vector<32x128xf32>
      %26 = arith.select %23, %21, %25 : vector<32x128xi1>, vector<32x128xf32>
      %27 = arith.truncf %26 : vector<32x128xf32> to vector<32x128xbf16>
      %c0_19 = arith.constant 0 : index
      %c0_20 = arith.constant 0 : index
      %28 = vector.load %arg7[%c0_19, %c0_20] : memref<32x128xbf16, #tpu.memory_space<vmem>>, vector<32x128xbf16>
      tpu.vector_store %arg7[%c0_19, %c0_20], %27 {strides = array<i32>} : memref<32x128xbf16, #tpu.memory_space<vmem>>, vector<32x128xbf16>,
    } else {
    }
    return
  }
  func.func @transform_0(%arg0: i32, %arg1: i32, %arg2: i32) -> (i32, i32) {
    %c0_i32 = arith.constant 0 : i32
    return %arg0, %arg2 : i32, i32
  }
  func.func @transform_1(%arg0: i32, %arg1: i32, %arg2: i32) -> (i32, i32) {
    %c0_i32 = arith.constant 0 : i32
    return %arg2, %arg1 : i32, i32
  }
  func.func @transform_2(%arg0: i32, %arg1: i32, %arg2: i32) -> (i32, i32) {
    %c0_i32 = arith.constant 0 : i32
    %c0_i32_0 = arith.constant 0 : i32
    return %c0_i32, %arg1 : i32, i32
  }
  func.func @transform_3(%arg0: i32, %arg1: i32, %arg2: i32) -> (i32, i32) {
    %c0_i32 = arith.constant 0 : i32
    return %arg0, %arg1 : i32, i32
  }
  func.func @transform_4(%arg0: i32, %arg1: i32, %arg2: i32) -> (i32, i32) {
    %c0_i32 = arith.constant 0 : i32
    return %arg0, %arg1 : i32, i32
  }
}

module attributes {stable_mosaic.version = 11 : i64} {
  func.func @kernel(%arg0: i32, %arg1: i32, %arg2: i32, %arg3: memref<8x640xbf16, #tpu.memory_space<vmem>>, %arg4: memref<640x128xbf16, #tpu.memory_space<vmem>>, %arg5: memref<2x128xf32, #tpu.memory_space<vmem>>, %arg6: memref<8x128xbf16, #tpu.memory_space<vmem>>, %arg7: memref<8x128xf32, #tpu.memory_space<vmem>>) attributes {dimension_semantics = [#tpu.dimension_semantics<parallel>, #tpu.dimension_semantics<parallel>, #tpu.dimension_semantics<arbitrary>], iteration_bounds = array<i64: 1, 1, 1>, scalar_prefetch = 0 : i64, scratch_operands = 1 : i64, tpu.core_type = #tpu.core_type<tc>, window_params = [{transform_indices = @transform_0, window_bounds = array<i64: 8, 640>}, {transform_indices = @transform_1, window_bounds = array<i64: 640, 128>}, {transform_indices = @transform_2, window_bounds = array<i64: 2, 128>}, {transform_indices = @transform_3, window_bounds = array<i64: 8, 128>}]} {
    %c0_i32 = arith.constant 0 : i32
    %0 = arith.cmpi eq, %arg2, %c0_i32 : i32
    %1 = arith.extui %0 : i1 to i32
    %c0_i32_0 = arith.constant 0 : i32
    %2 = arith.cmpi ne, %1, %c0_i32_0 : i32
    scf.if %2 {
      %cst_10 = arith.constant 0.000000e+00 : f32
      %12 = vector.broadcast %cst_10 : f32 to vector<8x128xf32>
      %c0_11 = arith.constant 0 : index
      %c0_12 = arith.constant 0 : index
      %13 = vector.load %arg7[%c0_11, %c0_12] : memref<8x128xf32, #tpu.memory_space<vmem>>, vector<8x128xf32>
      tpu.vector_store %arg7[%c0_11, %c0_12], %12 {strides = array<i32>} : memref<8x128xf32, #tpu.memory_space<vmem>>, vector<8x128xf32>,
    } else {
    }
    %c0 = arith.constant 0 : index
    %c0_1 = arith.constant 0 : index
    %3 = vector.load %arg7[%c0, %c0_1] : memref<8x128xf32, #tpu.memory_space<vmem>>, vector<8x128xf32>
    %c0_2 = arith.constant 0 : index
    %c0_3 = arith.constant 0 : index
    %4 = vector.load %arg3[%c0_2, %c0_3] : memref<8x640xbf16, #tpu.memory_space<vmem>>, vector<8x640xbf16>
    %c0_4 = arith.constant 0 : index
    %c0_5 = arith.constant 0 : index
    %5 = vector.load %arg4[%c0_4, %c0_5] : memref<640x128xbf16, #tpu.memory_space<vmem>>, vector<640x128xbf16>
    %cst = arith.constant dense<0.000000e+00> : vector<8x128xf32>
    %6 = tpu.matmul %4, %5, %cst {dimension_numbers = #tpu.dot_dimension_numbers<[1], [0], [0], [1], [0, 0, 1, 1], [], []>} : vector<8x640xbf16>, vector<640x128xbf16>, vector<8x128xf32> -> vector<8x128xf32>
    %7 = arith.addf %3, %6 : vector<8x128xf32>
    %c0_6 = arith.constant 0 : index
    %c0_7 = arith.constant 0 : index
    %8 = vector.load %arg7[%c0_6, %c0_7] : memref<8x128xf32, #tpu.memory_space<vmem>>, vector<8x128xf32>
    tpu.vector_store %arg7[%c0_6, %c0_7], %7 {strides = array<i32>} : memref<8x128xf32, #tpu.memory_space<vmem>>, vector<8x128xf32>,
    %c0_i32_8 = arith.constant 0 : i32
    %9 = arith.cmpi eq, %arg2, %c0_i32_8 : i32
    %10 = arith.extui %9 : i1 to i32
    %c0_i32_9 = arith.constant 0 : i32
    %11 = arith.cmpi ne, %10, %c0_i32_9 : i32
    scf.if %11 {
      %c0_10 = arith.constant 0 : index
      %c0_11 = arith.constant 0 : index
      %12 = vector.load %arg7[%c0_10, %c0_11] : memref<8x128xf32, #tpu.memory_space<vmem>>, vector<8x128xf32>
      %c0_12 = arith.constant 0 : index
      %c0_13 = arith.constant 0 : index
      %13 = vector.load %arg5[%c0_12, %c0_13] : memref<2x128xf32, #tpu.memory_space<vmem>>, vector<1x128xf32>
      %14 = vector.broadcast %13 : vector<1x128xf32> to vector<8x128xf32>
      %15 = arith.mulf %12, %14 : vector<8x128xf32>
      %c1 = arith.constant 1 : index
      %c0_14 = arith.constant 0 : index
      %16 = vector.load %arg5[%c1, %c0_14] : memref<2x128xf32, #tpu.memory_space<vmem>>, vector<1x128xf32>
      %17 = vector.broadcast %16 : vector<1x128xf32> to vector<8x128xf32>
      %18 = arith.addf %15, %17 : vector<8x128xf32>
      %cst_15 = arith.constant 0.000000e+00 : f32
      %19 = vector.broadcast %cst_15 : f32 to vector<8x128xf32>
      %20 = arith.cmpf oge, %18, %19 : vector<8x128xf32>
      %cst_16 = arith.constant 0.00999999977 : f32
      %21 = vector.broadcast %cst_16 : f32 to vector<8x128xf32>
      %22 = arith.mulf %21, %18 : vector<8x128xf32>
      %23 = arith.select %20, %18, %22 : vector<8x128xi1>, vector<8x128xf32>
      %24 = arith.truncf %23 : vector<8x128xf32> to vector<8x128xbf16>
      %c0_17 = arith.constant 0 : index
      %c0_18 = arith.constant 0 : index
      %25 = vector.load %arg6[%c0_17, %c0_18] : memref<8x128xbf16, #tpu.memory_space<vmem>>, vector<8x128xbf16>
      tpu.vector_store %arg6[%c0_17, %c0_18], %24 {strides = array<i32>} : memref<8x128xbf16, #tpu.memory_space<vmem>>, vector<8x128xbf16>,
    } else {
    }
    return
  }
  func.func @transform_0(%arg0: i32, %arg1: i32, %arg2: i32) -> (i32, i32) {
    %c0_i32 = arith.constant 0 : i32
    return %arg0, %arg2 : i32, i32
  }
  func.func @transform_1(%arg0: i32, %arg1: i32, %arg2: i32) -> (i32, i32) {
    %c0_i32 = arith.constant 0 : i32
    return %arg2, %arg1 : i32, i32
  }
  func.func @transform_2(%arg0: i32, %arg1: i32, %arg2: i32) -> (i32, i32) {
    %c0_i32 = arith.constant 0 : i32
    %c0_i32_0 = arith.constant 0 : i32
    return %c0_i32, %arg1 : i32, i32
  }
  func.func @transform_3(%arg0: i32, %arg1: i32, %arg2: i32) -> (i32, i32) {
    %c0_i32 = arith.constant 0 : i32
    return %arg0, %arg1 : i32, i32
  }
}

module attributes {stable_mosaic.version = 11 : i64} {
  func.func @kernel(%arg0: i32, %arg1: i32, %arg2: i32, %arg3: memref<8x384xbf16, #tpu.memory_space<vmem>>, %arg4: memref<384x128xbf16, #tpu.memory_space<vmem>>, %arg5: memref<2x128xf32, #tpu.memory_space<vmem>>, %arg6: memref<8x128xbf16, #tpu.memory_space<vmem>>, %arg7: memref<8x128xbf16, #tpu.memory_space<vmem>>, %arg8: memref<8x128xf32, #tpu.memory_space<vmem>>) attributes {dimension_semantics = [#tpu.dimension_semantics<parallel>, #tpu.dimension_semantics<parallel>, #tpu.dimension_semantics<arbitrary>], iteration_bounds = array<i64: 1, 1, 3>, scalar_prefetch = 0 : i64, scratch_operands = 1 : i64, tpu.core_type = #tpu.core_type<tc>, window_params = [{transform_indices = @transform_0, window_bounds = array<i64: 8, 384>}, {transform_indices = @transform_1, window_bounds = array<i64: 384, 128>}, {transform_indices = @transform_2, window_bounds = array<i64: 2, 128>}, {transform_indices = @transform_3, window_bounds = array<i64: 8, 128>}, {transform_indices = @transform_4, window_bounds = array<i64: 8, 128>}]} {
    %c0_i32 = arith.constant 0 : i32
    %0 = arith.cmpi eq, %arg2, %c0_i32 : i32
    %1 = arith.extui %0 : i1 to i32
    %c0_i32_0 = arith.constant 0 : i32
    %2 = arith.cmpi ne, %1, %c0_i32_0 : i32
    scf.if %2 {
      %cst_9 = arith.constant 0.000000e+00 : f32
      %12 = vector.broadcast %cst_9 : f32 to vector<8x128xf32>
      %c0_10 = arith.constant 0 : index
      %c0_11 = arith.constant 0 : index
      %13 = vector.load %arg8[%c0_10, %c0_11] : memref<8x128xf32, #tpu.memory_space<vmem>>, vector<8x128xf32>
      tpu.vector_store %arg8[%c0_10, %c0_11], %12 {strides = array<i32>} : memref<8x128xf32, #tpu.memory_space<vmem>>, vector<8x128xf32>,
    } else {
    }
    %c0 = arith.constant 0 : index
    %c0_1 = arith.constant 0 : index
    %3 = vector.load %arg8[%c0, %c0_1] : memref<8x128xf32, #tpu.memory_space<vmem>>, vector<8x128xf32>
    %c0_2 = arith.constant 0 : index
    %c0_3 = arith.constant 0 : index
    %4 = vector.load %arg3[%c0_2, %c0_3] : memref<8x384xbf16, #tpu.memory_space<vmem>>, vector<8x384xbf16>
    %c0_4 = arith.constant 0 : index
    %c0_5 = arith.constant 0 : index
    %5 = vector.load %arg4[%c0_4, %c0_5] : memref<384x128xbf16, #tpu.memory_space<vmem>>, vector<384x128xbf16>
    %cst = arith.constant dense<0.000000e+00> : vector<8x128xf32>
    %6 = tpu.matmul %4, %5, %cst {dimension_numbers = #tpu.dot_dimension_numbers<[1], [0], [0], [1], [0, 0, 1, 1], [], []>} : vector<8x384xbf16>, vector<384x128xbf16>, vector<8x128xf32> -> vector<8x128xf32>
    %7 = arith.addf %3, %6 : vector<8x128xf32>
    %c0_6 = arith.constant 0 : index
    %c0_7 = arith.constant 0 : index
    %8 = vector.load %arg8[%c0_6, %c0_7] : memref<8x128xf32, #tpu.memory_space<vmem>>, vector<8x128xf32>
    tpu.vector_store %arg8[%c0_6, %c0_7], %7 {strides = array<i32>} : memref<8x128xf32, #tpu.memory_space<vmem>>, vector<8x128xf32>,
    %c2_i32 = arith.constant 2 : i32
    %9 = arith.cmpi eq, %arg2, %c2_i32 : i32
    %10 = arith.extui %9 : i1 to i32
    %c0_i32_8 = arith.constant 0 : i32
    %11 = arith.cmpi ne, %10, %c0_i32_8 : i32
    scf.if %11 {
      %c0_9 = arith.constant 0 : index
      %c0_10 = arith.constant 0 : index
      %12 = vector.load %arg8[%c0_9, %c0_10] : memref<8x128xf32, #tpu.memory_space<vmem>>, vector<8x128xf32>
      %c0_11 = arith.constant 0 : index
      %c0_12 = arith.constant 0 : index
      %13 = vector.load %arg5[%c0_11, %c0_12] : memref<2x128xf32, #tpu.memory_space<vmem>>, vector<1x128xf32>
      %14 = vector.broadcast %13 : vector<1x128xf32> to vector<8x128xf32>
      %15 = arith.mulf %12, %14 : vector<8x128xf32>
      %c1 = arith.constant 1 : index
      %c0_13 = arith.constant 0 : index
      %16 = vector.load %arg5[%c1, %c0_13] : memref<2x128xf32, #tpu.memory_space<vmem>>, vector<1x128xf32>
      %17 = vector.broadcast %16 : vector<1x128xf32> to vector<8x128xf32>
      %18 = arith.addf %15, %17 : vector<8x128xf32>
      %c0_14 = arith.constant 0 : index
      %c0_15 = arith.constant 0 : index
      %19 = vector.load %arg6[%c0_14, %c0_15] : memref<8x128xbf16, #tpu.memory_space<vmem>>, vector<8x128xbf16>
      %20 = arith.extf %19 : vector<8x128xbf16> to vector<8x128xf32>
      %21 = arith.addf %18, %20 : vector<8x128xf32>
      %cst_16 = arith.constant 0.000000e+00 : f32
      %22 = vector.broadcast %cst_16 : f32 to vector<8x128xf32>
      %23 = arith.cmpf oge, %21, %22 : vector<8x128xf32>
      %cst_17 = arith.constant 0.00999999977 : f32
      %24 = vector.broadcast %cst_17 : f32 to vector<8x128xf32>
      %25 = arith.mulf %24, %21 : vector<8x128xf32>
      %26 = arith.select %23, %21, %25 : vector<8x128xi1>, vector<8x128xf32>
      %27 = arith.truncf %26 : vector<8x128xf32> to vector<8x128xbf16>
      %c0_18 = arith.constant 0 : index
      %c0_19 = arith.constant 0 : index
      %28 = vector.load %arg7[%c0_18, %c0_19] : memref<8x128xbf16, #tpu.memory_space<vmem>>, vector<8x128xbf16>
      tpu.vector_store %arg7[%c0_18, %c0_19], %27 {strides = array<i32>} : memref<8x128xbf16, #tpu.memory_space<vmem>>, vector<8x128xbf16>,
    } else {
    }
    return
  }
  func.func @transform_0(%arg0: i32, %arg1: i32, %arg2: i32) -> (i32, i32) {
    %c0_i32 = arith.constant 0 : i32
    return %arg0, %arg2 : i32, i32
  }
  func.func @transform_1(%arg0: i32, %arg1: i32, %arg2: i32) -> (i32, i32) {
    %c0_i32 = arith.constant 0 : i32
    return %arg2, %arg1 : i32, i32
  }
  func.func @transform_2(%arg0: i32, %arg1: i32, %arg2: i32) -> (i32, i32) {
    %c0_i32 = arith.constant 0 : i32
    %c0_i32_0 = arith.constant 0 : i32
    return %c0_i32, %arg1 : i32, i32
  }
  func.func @transform_3(%arg0: i32, %arg1: i32, %arg2: i32) -> (i32, i32) {
    %c0_i32 = arith.constant 0 : i32
    return %arg0, %arg1 : i32, i32
  }
  func.func @transform_4(%arg0: i32, %arg1: i32, %arg2: i32) -> (i32, i32) {
    %c0_i32 = arith.constant 0 : i32
    return %arg0, %arg1 : i32, i32
  }
}

module attributes {stable_mosaic.version = 11 : i64} {
  func.func @kernel(%arg0: i32, %arg1: i32, %arg2: i32, %arg3: memref<8x128xbf16, #tpu.memory_space<vmem>>, %arg4: memref<128x128xbf16, #tpu.memory_space<vmem>>, %arg5: memref<2x128xf32, #tpu.memory_space<vmem>>, %arg6: memref<8x128xbf16, #tpu.memory_space<vmem>>, %arg7: memref<8x128xf32, #tpu.memory_space<vmem>>) attributes {dimension_semantics = [#tpu.dimension_semantics<parallel>, #tpu.dimension_semantics<parallel>, #tpu.dimension_semantics<arbitrary>], iteration_bounds = array<i64: 1, 1, 1>, scalar_prefetch = 0 : i64, scratch_operands = 1 : i64, tpu.core_type = #tpu.core_type<tc>, window_params = [{transform_indices = @transform_0, window_bounds = array<i64: 8, 128>}, {transform_indices = @transform_1, window_bounds = array<i64: 128, 128>}, {transform_indices = @transform_2, window_bounds = array<i64: 2, 128>}, {transform_indices = @transform_3, window_bounds = array<i64: 8, 128>}]} {
    %c0_i32 = arith.constant 0 : i32
    %0 = arith.cmpi eq, %arg2, %c0_i32 : i32
    %1 = arith.extui %0 : i1 to i32
    %c0_i32_0 = arith.constant 0 : i32
    %2 = arith.cmpi ne, %1, %c0_i32_0 : i32
    scf.if %2 {
      %cst_10 = arith.constant 0.000000e+00 : f32
      %12 = vector.broadcast %cst_10 : f32 to vector<8x128xf32>
      %c0_11 = arith.constant 0 : index
      %c0_12 = arith.constant 0 : index
      %13 = vector.load %arg7[%c0_11, %c0_12] : memref<8x128xf32, #tpu.memory_space<vmem>>, vector<8x128xf32>
      tpu.vector_store %arg7[%c0_11, %c0_12], %12 {strides = array<i32>} : memref<8x128xf32, #tpu.memory_space<vmem>>, vector<8x128xf32>,
    } else {
    }
    %c0 = arith.constant 0 : index
    %c0_1 = arith.constant 0 : index
    %3 = vector.load %arg7[%c0, %c0_1] : memref<8x128xf32, #tpu.memory_space<vmem>>, vector<8x128xf32>
    %c0_2 = arith.constant 0 : index
    %c0_3 = arith.constant 0 : index
    %4 = vector.load %arg3[%c0_2, %c0_3] : memref<8x128xbf16, #tpu.memory_space<vmem>>, vector<8x128xbf16>
    %c0_4 = arith.constant 0 : index
    %c0_5 = arith.constant 0 : index
    %5 = vector.load %arg4[%c0_4, %c0_5] : memref<128x128xbf16, #tpu.memory_space<vmem>>, vector<128x128xbf16>
    %cst = arith.constant dense<0.000000e+00> : vector<8x128xf32>
    %6 = tpu.matmul %4, %5, %cst {dimension_numbers = #tpu.dot_dimension_numbers<[1], [0], [0], [1], [0, 0, 1, 1], [], []>} : vector<8x128xbf16>, vector<128x128xbf16>, vector<8x128xf32> -> vector<8x128xf32>
    %7 = arith.addf %3, %6 : vector<8x128xf32>
    %c0_6 = arith.constant 0 : index
    %c0_7 = arith.constant 0 : index
    %8 = vector.load %arg7[%c0_6, %c0_7] : memref<8x128xf32, #tpu.memory_space<vmem>>, vector<8x128xf32>
    tpu.vector_store %arg7[%c0_6, %c0_7], %7 {strides = array<i32>} : memref<8x128xf32, #tpu.memory_space<vmem>>, vector<8x128xf32>,
    %c0_i32_8 = arith.constant 0 : i32
    %9 = arith.cmpi eq, %arg2, %c0_i32_8 : i32
    %10 = arith.extui %9 : i1 to i32
    %c0_i32_9 = arith.constant 0 : i32
    %11 = arith.cmpi ne, %10, %c0_i32_9 : i32
    scf.if %11 {
      %c0_10 = arith.constant 0 : index
      %c0_11 = arith.constant 0 : index
      %12 = vector.load %arg7[%c0_10, %c0_11] : memref<8x128xf32, #tpu.memory_space<vmem>>, vector<8x128xf32>
      %c0_12 = arith.constant 0 : index
      %c0_13 = arith.constant 0 : index
      %13 = vector.load %arg5[%c0_12, %c0_13] : memref<2x128xf32, #tpu.memory_space<vmem>>, vector<1x128xf32>
      %14 = vector.broadcast %13 : vector<1x128xf32> to vector<8x128xf32>
      %15 = arith.mulf %12, %14 : vector<8x128xf32>
      %c1 = arith.constant 1 : index
      %c0_14 = arith.constant 0 : index
      %16 = vector.load %arg5[%c1, %c0_14] : memref<2x128xf32, #tpu.memory_space<vmem>>, vector<1x128xf32>
      %17 = vector.broadcast %16 : vector<1x128xf32> to vector<8x128xf32>
      %18 = arith.addf %15, %17 : vector<8x128xf32>
      %19 = arith.truncf %18 : vector<8x128xf32> to vector<8x128xbf16>
      %c0_15 = arith.constant 0 : index
      %c0_16 = arith.constant 0 : index
      %20 = vector.load %arg6[%c0_15, %c0_16] : memref<8x128xbf16, #tpu.memory_space<vmem>>, vector<8x128xbf16>
      tpu.vector_store %arg6[%c0_15, %c0_16], %19 {strides = array<i32>} : memref<8x128xbf16, #tpu.memory_space<vmem>>, vector<8x128xbf16>,
    } else {
    }
    return
  }
  func.func @transform_0(%arg0: i32, %arg1: i32, %arg2: i32) -> (i32, i32) {
    %c0_i32 = arith.constant 0 : i32
    return %arg0, %arg2 : i32, i32
  }
  func.func @transform_1(%arg0: i32, %arg1: i32, %arg2: i32) -> (i32, i32) {
    %c0_i32 = arith.constant 0 : i32
    return %arg2, %arg1 : i32, i32
  }
  func.func @transform_2(%arg0: i32, %arg1: i32, %arg2: i32) -> (i32, i32) {
    %c0_i32 = arith.constant 0 : i32
    %c0_i32_0 = arith.constant 0 : i32
    return %c0_i32, %arg1 : i32, i32
  }
  func.func @transform_3(%arg0: i32, %arg1: i32, %arg2: i32) -> (i32, i32) {
    %c0_i32 = arith.constant 0 : i32
    return %arg0, %arg1 : i32, i32
  }
}

module attributes {stable_mosaic.version = 11 : i64} {
  func.func @kernel(%arg0: i32, %arg1: i32, %arg2: i32, %arg3: memref<8x384xbf16, #tpu.memory_space<vmem>>, %arg4: memref<384x256xbf16, #tpu.memory_space<vmem>>, %arg5: memref<2x256xf32, #tpu.memory_space<vmem>>, %arg6: memref<8x256xbf16, #tpu.memory_space<vmem>>, %arg7: memref<8x256xf32, #tpu.memory_space<vmem>>) attributes {dimension_semantics = [#tpu.dimension_semantics<parallel>, #tpu.dimension_semantics<parallel>, #tpu.dimension_semantics<arbitrary>], iteration_bounds = array<i64: 1, 1, 3>, scalar_prefetch = 0 : i64, scratch_operands = 1 : i64, tpu.core_type = #tpu.core_type<tc>, window_params = [{transform_indices = @transform_0, window_bounds = array<i64: 8, 384>}, {transform_indices = @transform_1, window_bounds = array<i64: 384, 256>}, {transform_indices = @transform_2, window_bounds = array<i64: 2, 256>}, {transform_indices = @transform_3, window_bounds = array<i64: 8, 256>}]} {
    %c0_i32 = arith.constant 0 : i32
    %0 = arith.cmpi eq, %arg2, %c0_i32 : i32
    %1 = arith.extui %0 : i1 to i32
    %c0_i32_0 = arith.constant 0 : i32
    %2 = arith.cmpi ne, %1, %c0_i32_0 : i32
    scf.if %2 {
      %cst_9 = arith.constant 0.000000e+00 : f32
      %12 = vector.broadcast %cst_9 : f32 to vector<8x256xf32>
      %c0_10 = arith.constant 0 : index
      %c0_11 = arith.constant 0 : index
      %13 = vector.load %arg7[%c0_10, %c0_11] : memref<8x256xf32, #tpu.memory_space<vmem>>, vector<8x256xf32>
      tpu.vector_store %arg7[%c0_10, %c0_11], %12 {strides = array<i32>} : memref<8x256xf32, #tpu.memory_space<vmem>>, vector<8x256xf32>,
    } else {
    }
    %c0 = arith.constant 0 : index
    %c0_1 = arith.constant 0 : index
    %3 = vector.load %arg7[%c0, %c0_1] : memref<8x256xf32, #tpu.memory_space<vmem>>, vector<8x256xf32>
    %c0_2 = arith.constant 0 : index
    %c0_3 = arith.constant 0 : index
    %4 = vector.load %arg3[%c0_2, %c0_3] : memref<8x384xbf16, #tpu.memory_space<vmem>>, vector<8x384xbf16>
    %c0_4 = arith.constant 0 : index
    %c0_5 = arith.constant 0 : index
    %5 = vector.load %arg4[%c0_4, %c0_5] : memref<384x256xbf16, #tpu.memory_space<vmem>>, vector<384x256xbf16>
    %cst = arith.constant dense<0.000000e+00> : vector<8x256xf32>
    %6 = tpu.matmul %4, %5, %cst {dimension_numbers = #tpu.dot_dimension_numbers<[1], [0], [0], [1], [0, 0, 1, 1], [], []>} : vector<8x384xbf16>, vector<384x256xbf16>, vector<8x256xf32> -> vector<8x256xf32>
    %7 = arith.addf %3, %6 : vector<8x256xf32>
    %c0_6 = arith.constant 0 : index
    %c0_7 = arith.constant 0 : index
    %8 = vector.load %arg7[%c0_6, %c0_7] : memref<8x256xf32, #tpu.memory_space<vmem>>, vector<8x256xf32>
    tpu.vector_store %arg7[%c0_6, %c0_7], %7 {strides = array<i32>} : memref<8x256xf32, #tpu.memory_space<vmem>>, vector<8x256xf32>,
    %c2_i32 = arith.constant 2 : i32
    %9 = arith.cmpi eq, %arg2, %c2_i32 : i32
    %10 = arith.extui %9 : i1 to i32
    %c0_i32_8 = arith.constant 0 : i32
    %11 = arith.cmpi ne, %10, %c0_i32_8 : i32
    scf.if %11 {
      %c0_9 = arith.constant 0 : index
      %c0_10 = arith.constant 0 : index
      %12 = vector.load %arg7[%c0_9, %c0_10] : memref<8x256xf32, #tpu.memory_space<vmem>>, vector<8x256xf32>
      %c0_11 = arith.constant 0 : index
      %c0_12 = arith.constant 0 : index
      %13 = vector.load %arg5[%c0_11, %c0_12] : memref<2x256xf32, #tpu.memory_space<vmem>>, vector<1x256xf32>
      %14 = vector.broadcast %13 : vector<1x256xf32> to vector<8x256xf32>
      %15 = arith.mulf %12, %14 : vector<8x256xf32>
      %c1 = arith.constant 1 : index
      %c0_13 = arith.constant 0 : index
      %16 = vector.load %arg5[%c1, %c0_13] : memref<2x256xf32, #tpu.memory_space<vmem>>, vector<1x256xf32>
      %17 = vector.broadcast %16 : vector<1x256xf32> to vector<8x256xf32>
      %18 = arith.addf %15, %17 : vector<8x256xf32>
      %cst_14 = arith.constant 0.000000e+00 : f32
      %19 = vector.broadcast %cst_14 : f32 to vector<8x256xf32>
      %20 = arith.cmpf oge, %18, %19 : vector<8x256xf32>
      %cst_15 = arith.constant 0.00999999977 : f32
      %21 = vector.broadcast %cst_15 : f32 to vector<8x256xf32>
      %22 = arith.mulf %21, %18 : vector<8x256xf32>
      %23 = arith.select %20, %18, %22 : vector<8x256xi1>, vector<8x256xf32>
      %24 = arith.truncf %23 : vector<8x256xf32> to vector<8x256xbf16>
      %c0_16 = arith.constant 0 : index
      %c0_17 = arith.constant 0 : index
      %25 = vector.load %arg6[%c0_16, %c0_17] : memref<8x256xbf16, #tpu.memory_space<vmem>>, vector<8x256xbf16>
      tpu.vector_store %arg6[%c0_16, %c0_17], %24 {strides = array<i32>} : memref<8x256xbf16, #tpu.memory_space<vmem>>, vector<8x256xbf16>,
    } else {
    }
    return
  }
  func.func @transform_0(%arg0: i32, %arg1: i32, %arg2: i32) -> (i32, i32) {
    %c0_i32 = arith.constant 0 : i32
    return %arg0, %arg2 : i32, i32
  }
  func.func @transform_1(%arg0: i32, %arg1: i32, %arg2: i32) -> (i32, i32) {
    %c0_i32 = arith.constant 0 : i32
    return %arg2, %arg1 : i32, i32
  }
  func.func @transform_2(%arg0: i32, %arg1: i32, %arg2: i32) -> (i32, i32) {
    %c0_i32 = arith.constant 0 : i32
    %c0_i32_0 = arith.constant 0 : i32
    return %c0_i32, %arg1 : i32, i32
  }
  func.func @transform_3(%arg0: i32, %arg1: i32, %arg2: i32) -> (i32, i32) {
    %c0_i32 = arith.constant 0 : i32
    return %arg0, %arg1 : i32, i32
  }
}

module attributes {stable_mosaic.version = 11 : i64} {
  func.func @kernel(%arg0: i32, %arg1: i32, %arg2: i32, %arg3: memref<8x768xbf16, #tpu.memory_space<vmem>>, %arg4: memref<768x256xbf16, #tpu.memory_space<vmem>>, %arg5: memref<2x256xf32, #tpu.memory_space<vmem>>, %arg6: memref<8x256xbf16, #tpu.memory_space<vmem>>, %arg7: memref<8x256xbf16, #tpu.memory_space<vmem>>, %arg8: memref<8x256xf32, #tpu.memory_space<vmem>>) attributes {dimension_semantics = [#tpu.dimension_semantics<parallel>, #tpu.dimension_semantics<parallel>, #tpu.dimension_semantics<arbitrary>], iteration_bounds = array<i64: 1, 1, 3>, scalar_prefetch = 0 : i64, scratch_operands = 1 : i64, tpu.core_type = #tpu.core_type<tc>, window_params = [{transform_indices = @transform_0, window_bounds = array<i64: 8, 768>}, {transform_indices = @transform_1, window_bounds = array<i64: 768, 256>}, {transform_indices = @transform_2, window_bounds = array<i64: 2, 256>}, {transform_indices = @transform_3, window_bounds = array<i64: 8, 256>}, {transform_indices = @transform_4, window_bounds = array<i64: 8, 256>}]} {
    %c0_i32 = arith.constant 0 : i32
    %0 = arith.cmpi eq, %arg2, %c0_i32 : i32
    %1 = arith.extui %0 : i1 to i32
    %c0_i32_0 = arith.constant 0 : i32
    %2 = arith.cmpi ne, %1, %c0_i32_0 : i32
    scf.if %2 {
      %cst_9 = arith.constant 0.000000e+00 : f32
      %12 = vector.broadcast %cst_9 : f32 to vector<8x256xf32>
      %c0_10 = arith.constant 0 : index
      %c0_11 = arith.constant 0 : index
      %13 = vector.load %arg8[%c0_10, %c0_11] : memref<8x256xf32, #tpu.memory_space<vmem>>, vector<8x256xf32>
      tpu.vector_store %arg8[%c0_10, %c0_11], %12 {strides = array<i32>} : memref<8x256xf32, #tpu.memory_space<vmem>>, vector<8x256xf32>,
    } else {
    }
    %c0 = arith.constant 0 : index
    %c0_1 = arith.constant 0 : index
    %3 = vector.load %arg8[%c0, %c0_1] : memref<8x256xf32, #tpu.memory_space<vmem>>, vector<8x256xf32>
    %c0_2 = arith.constant 0 : index
    %c0_3 = arith.constant 0 : index
    %4 = vector.load %arg3[%c0_2, %c0_3] : memref<8x768xbf16, #tpu.memory_space<vmem>>, vector<8x768xbf16>
    %c0_4 = arith.constant 0 : index
    %c0_5 = arith.constant 0 : index
    %5 = vector.load %arg4[%c0_4, %c0_5] : memref<768x256xbf16, #tpu.memory_space<vmem>>, vector<768x256xbf16>
    %cst = arith.constant dense<0.000000e+00> : vector<8x256xf32>
    %6 = tpu.matmul %4, %5, %cst {dimension_numbers = #tpu.dot_dimension_numbers<[1], [0], [0], [1], [0, 0, 1, 1], [], []>} : vector<8x768xbf16>, vector<768x256xbf16>, vector<8x256xf32> -> vector<8x256xf32>
    %7 = arith.addf %3, %6 : vector<8x256xf32>
    %c0_6 = arith.constant 0 : index
    %c0_7 = arith.constant 0 : index
    %8 = vector.load %arg8[%c0_6, %c0_7] : memref<8x256xf32, #tpu.memory_space<vmem>>, vector<8x256xf32>
    tpu.vector_store %arg8[%c0_6, %c0_7], %7 {strides = array<i32>} : memref<8x256xf32, #tpu.memory_space<vmem>>, vector<8x256xf32>,
    %c2_i32 = arith.constant 2 : i32
    %9 = arith.cmpi eq, %arg2, %c2_i32 : i32
    %10 = arith.extui %9 : i1 to i32
    %c0_i32_8 = arith.constant 0 : i32
    %11 = arith.cmpi ne, %10, %c0_i32_8 : i32
    scf.if %11 {
      %c0_9 = arith.constant 0 : index
      %c0_10 = arith.constant 0 : index
      %12 = vector.load %arg8[%c0_9, %c0_10] : memref<8x256xf32, #tpu.memory_space<vmem>>, vector<8x256xf32>
      %c0_11 = arith.constant 0 : index
      %c0_12 = arith.constant 0 : index
      %13 = vector.load %arg5[%c0_11, %c0_12] : memref<2x256xf32, #tpu.memory_space<vmem>>, vector<1x256xf32>
      %14 = vector.broadcast %13 : vector<1x256xf32> to vector<8x256xf32>
      %15 = arith.mulf %12, %14 : vector<8x256xf32>
      %c1 = arith.constant 1 : index
      %c0_13 = arith.constant 0 : index
      %16 = vector.load %arg5[%c1, %c0_13] : memref<2x256xf32, #tpu.memory_space<vmem>>, vector<1x256xf32>
      %17 = vector.broadcast %16 : vector<1x256xf32> to vector<8x256xf32>
      %18 = arith.addf %15, %17 : vector<8x256xf32>
      %c0_14 = arith.constant 0 : index
      %c0_15 = arith.constant 0 : index
      %19 = vector.load %arg6[%c0_14, %c0_15] : memref<8x256xbf16, #tpu.memory_space<vmem>>, vector<8x256xbf16>
      %20 = arith.extf %19 : vector<8x256xbf16> to vector<8x256xf32>
      %21 = arith.addf %18, %20 : vector<8x256xf32>
      %cst_16 = arith.constant 0.000000e+00 : f32
      %22 = vector.broadcast %cst_16 : f32 to vector<8x256xf32>
      %23 = arith.cmpf oge, %21, %22 : vector<8x256xf32>
      %cst_17 = arith.constant 0.00999999977 : f32
      %24 = vector.broadcast %cst_17 : f32 to vector<8x256xf32>
      %25 = arith.mulf %24, %21 : vector<8x256xf32>
      %26 = arith.select %23, %21, %25 : vector<8x256xi1>, vector<8x256xf32>
      %27 = arith.truncf %26 : vector<8x256xf32> to vector<8x256xbf16>
      %c0_18 = arith.constant 0 : index
      %c0_19 = arith.constant 0 : index
      %28 = vector.load %arg7[%c0_18, %c0_19] : memref<8x256xbf16, #tpu.memory_space<vmem>>, vector<8x256xbf16>
      tpu.vector_store %arg7[%c0_18, %c0_19], %27 {strides = array<i32>} : memref<8x256xbf16, #tpu.memory_space<vmem>>, vector<8x256xbf16>,
    } else {
    }
    return
  }
  func.func @transform_0(%arg0: i32, %arg1: i32, %arg2: i32) -> (i32, i32) {
    %c0_i32 = arith.constant 0 : i32
    return %arg0, %arg2 : i32, i32
  }
  func.func @transform_1(%arg0: i32, %arg1: i32, %arg2: i32) -> (i32, i32) {
    %c0_i32 = arith.constant 0 : i32
    return %arg2, %arg1 : i32, i32
  }
  func.func @transform_2(%arg0: i32, %arg1: i32, %arg2: i32) -> (i32, i32) {
    %c0_i32 = arith.constant 0 : i32
    %c0_i32_0 = arith.constant 0 : i32
    return %c0_i32, %arg1 : i32, i32
  }
  func.func @transform_3(%arg0: i32, %arg1: i32, %arg2: i32) -> (i32, i32) {
    %c0_i32 = arith.constant 0 : i32
    return %arg0, %arg1 : i32, i32
  }
  func.func @transform_4(%arg0: i32, %arg1: i32, %arg2: i32) -> (i32, i32) {
    %c0_i32 = arith.constant 0 : i32
    return %arg0, %arg1 : i32, i32
  }
}

module attributes {stable_mosaic.version = 11 : i64} {
  func.func @kernel(%arg0: i32, %arg1: i32, %arg2: i32, %arg3: memref<8x128xbf16, #tpu.memory_space<vmem>>, %arg4: memref<128x256xbf16, #tpu.memory_space<vmem>>, %arg5: memref<2x256xf32, #tpu.memory_space<vmem>>, %arg6: memref<8x256xbf16, #tpu.memory_space<vmem>>, %arg7: memref<8x256xf32, #tpu.memory_space<vmem>>) attributes {dimension_semantics = [#tpu.dimension_semantics<parallel>, #tpu.dimension_semantics<parallel>, #tpu.dimension_semantics<arbitrary>], iteration_bounds = array<i64: 1, 1, 1>, scalar_prefetch = 0 : i64, scratch_operands = 1 : i64, tpu.core_type = #tpu.core_type<tc>, window_params = [{transform_indices = @transform_0, window_bounds = array<i64: 8, 128>}, {transform_indices = @transform_1, window_bounds = array<i64: 128, 256>}, {transform_indices = @transform_2, window_bounds = array<i64: 2, 256>}, {transform_indices = @transform_3, window_bounds = array<i64: 8, 256>}]} {
    %c0_i32 = arith.constant 0 : i32
    %0 = arith.cmpi eq, %arg2, %c0_i32 : i32
    %1 = arith.extui %0 : i1 to i32
    %c0_i32_0 = arith.constant 0 : i32
    %2 = arith.cmpi ne, %1, %c0_i32_0 : i32
    scf.if %2 {
      %cst_10 = arith.constant 0.000000e+00 : f32
      %12 = vector.broadcast %cst_10 : f32 to vector<8x256xf32>
      %c0_11 = arith.constant 0 : index
      %c0_12 = arith.constant 0 : index
      %13 = vector.load %arg7[%c0_11, %c0_12] : memref<8x256xf32, #tpu.memory_space<vmem>>, vector<8x256xf32>
      tpu.vector_store %arg7[%c0_11, %c0_12], %12 {strides = array<i32>} : memref<8x256xf32, #tpu.memory_space<vmem>>, vector<8x256xf32>,
    } else {
    }
    %c0 = arith.constant 0 : index
    %c0_1 = arith.constant 0 : index
    %3 = vector.load %arg7[%c0, %c0_1] : memref<8x256xf32, #tpu.memory_space<vmem>>, vector<8x256xf32>
    %c0_2 = arith.constant 0 : index
    %c0_3 = arith.constant 0 : index
    %4 = vector.load %arg3[%c0_2, %c0_3] : memref<8x128xbf16, #tpu.memory_space<vmem>>, vector<8x128xbf16>
    %c0_4 = arith.constant 0 : index
    %c0_5 = arith.constant 0 : index
    %5 = vector.load %arg4[%c0_4, %c0_5] : memref<128x256xbf16, #tpu.memory_space<vmem>>, vector<128x256xbf16>
    %cst = arith.constant dense<0.000000e+00> : vector<8x256xf32>
    %6 = tpu.matmul %4, %5, %cst {dimension_numbers = #tpu.dot_dimension_numbers<[1], [0], [0], [1], [0, 0, 1, 1], [], []>} : vector<8x128xbf16>, vector<128x256xbf16>, vector<8x256xf32> -> vector<8x256xf32>
    %7 = arith.addf %3, %6 : vector<8x256xf32>
    %c0_6 = arith.constant 0 : index
    %c0_7 = arith.constant 0 : index
    %8 = vector.load %arg7[%c0_6, %c0_7] : memref<8x256xf32, #tpu.memory_space<vmem>>, vector<8x256xf32>
    tpu.vector_store %arg7[%c0_6, %c0_7], %7 {strides = array<i32>} : memref<8x256xf32, #tpu.memory_space<vmem>>, vector<8x256xf32>,
    %c0_i32_8 = arith.constant 0 : i32
    %9 = arith.cmpi eq, %arg2, %c0_i32_8 : i32
    %10 = arith.extui %9 : i1 to i32
    %c0_i32_9 = arith.constant 0 : i32
    %11 = arith.cmpi ne, %10, %c0_i32_9 : i32
    scf.if %11 {
      %c0_10 = arith.constant 0 : index
      %c0_11 = arith.constant 0 : index
      %12 = vector.load %arg7[%c0_10, %c0_11] : memref<8x256xf32, #tpu.memory_space<vmem>>, vector<8x256xf32>
      %c0_12 = arith.constant 0 : index
      %c0_13 = arith.constant 0 : index
      %13 = vector.load %arg5[%c0_12, %c0_13] : memref<2x256xf32, #tpu.memory_space<vmem>>, vector<1x256xf32>
      %14 = vector.broadcast %13 : vector<1x256xf32> to vector<8x256xf32>
      %15 = arith.mulf %12, %14 : vector<8x256xf32>
      %c1 = arith.constant 1 : index
      %c0_14 = arith.constant 0 : index
      %16 = vector.load %arg5[%c1, %c0_14] : memref<2x256xf32, #tpu.memory_space<vmem>>, vector<1x256xf32>
      %17 = vector.broadcast %16 : vector<1x256xf32> to vector<8x256xf32>
      %18 = arith.addf %15, %17 : vector<8x256xf32>
      %19 = arith.truncf %18 : vector<8x256xf32> to vector<8x256xbf16>
      %c0_15 = arith.constant 0 : index
      %c0_16 = arith.constant 0 : index
      %20 = vector.load %arg6[%c0_15, %c0_16] : memref<8x256xbf16, #tpu.memory_space<vmem>>, vector<8x256xbf16>
      tpu.vector_store %arg6[%c0_15, %c0_16], %19 {strides = array<i32>} : memref<8x256xbf16, #tpu.memory_space<vmem>>, vector<8x256xbf16>,
    } else {
    }
    return
  }
  func.func @transform_0(%arg0: i32, %arg1: i32, %arg2: i32) -> (i32, i32) {
    %c0_i32 = arith.constant 0 : i32
    return %arg0, %arg2 : i32, i32
  }
  func.func @transform_1(%arg0: i32, %arg1: i32, %arg2: i32) -> (i32, i32) {
    %c0_i32 = arith.constant 0 : i32
    return %arg2, %arg1 : i32, i32
  }
  func.func @transform_2(%arg0: i32, %arg1: i32, %arg2: i32) -> (i32, i32) {
    %c0_i32 = arith.constant 0 : i32
    %c0_i32_0 = arith.constant 0 : i32
    return %c0_i32, %arg1 : i32, i32
  }
  func.func @transform_3(%arg0: i32, %arg1: i32, %arg2: i32) -> (i32, i32) {
    %c0_i32 = arith.constant 0 : i32
    return %arg0, %arg1 : i32, i32
  }
}

module attributes {stable_mosaic.version = 11 : i64} {
  func.func @kernel(%arg0: i32, %arg1: i32, %arg2: i32, %arg3: memref<8x768xbf16, #tpu.memory_space<vmem>>, %arg4: memref<768x512xbf16, #tpu.memory_space<vmem>>, %arg5: memref<2x512xf32, #tpu.memory_space<vmem>>, %arg6: memref<8x512xbf16, #tpu.memory_space<vmem>>, %arg7: memref<8x512xf32, #tpu.memory_space<vmem>>) attributes {dimension_semantics = [#tpu.dimension_semantics<parallel>, #tpu.dimension_semantics<parallel>, #tpu.dimension_semantics<arbitrary>], iteration_bounds = array<i64: 1, 1, 3>, scalar_prefetch = 0 : i64, scratch_operands = 1 : i64, tpu.core_type = #tpu.core_type<tc>, window_params = [{transform_indices = @transform_0, window_bounds = array<i64: 8, 768>}, {transform_indices = @transform_1, window_bounds = array<i64: 768, 512>}, {transform_indices = @transform_2, window_bounds = array<i64: 2, 512>}, {transform_indices = @transform_3, window_bounds = array<i64: 8, 512>}]} {
    %c0_i32 = arith.constant 0 : i32
    %0 = arith.cmpi eq, %arg2, %c0_i32 : i32
    %1 = arith.extui %0 : i1 to i32
    %c0_i32_0 = arith.constant 0 : i32
    %2 = arith.cmpi ne, %1, %c0_i32_0 : i32
    scf.if %2 {
      %cst_9 = arith.constant 0.000000e+00 : f32
      %12 = vector.broadcast %cst_9 : f32 to vector<8x512xf32>
      %c0_10 = arith.constant 0 : index
      %c0_11 = arith.constant 0 : index
      %13 = vector.load %arg7[%c0_10, %c0_11] : memref<8x512xf32, #tpu.memory_space<vmem>>, vector<8x512xf32>
      tpu.vector_store %arg7[%c0_10, %c0_11], %12 {strides = array<i32>} : memref<8x512xf32, #tpu.memory_space<vmem>>, vector<8x512xf32>,
    } else {
    }
    %c0 = arith.constant 0 : index
    %c0_1 = arith.constant 0 : index
    %3 = vector.load %arg7[%c0, %c0_1] : memref<8x512xf32, #tpu.memory_space<vmem>>, vector<8x512xf32>
    %c0_2 = arith.constant 0 : index
    %c0_3 = arith.constant 0 : index
    %4 = vector.load %arg3[%c0_2, %c0_3] : memref<8x768xbf16, #tpu.memory_space<vmem>>, vector<8x768xbf16>
    %c0_4 = arith.constant 0 : index
    %c0_5 = arith.constant 0 : index
    %5 = vector.load %arg4[%c0_4, %c0_5] : memref<768x512xbf16, #tpu.memory_space<vmem>>, vector<768x512xbf16>
    %cst = arith.constant dense<0.000000e+00> : vector<8x512xf32>
    %6 = tpu.matmul %4, %5, %cst {dimension_numbers = #tpu.dot_dimension_numbers<[1], [0], [0], [1], [0, 0, 1, 1], [], []>} : vector<8x768xbf16>, vector<768x512xbf16>, vector<8x512xf32> -> vector<8x512xf32>
    %7 = arith.addf %3, %6 : vector<8x512xf32>
    %c0_6 = arith.constant 0 : index
    %c0_7 = arith.constant 0 : index
    %8 = vector.load %arg7[%c0_6, %c0_7] : memref<8x512xf32, #tpu.memory_space<vmem>>, vector<8x512xf32>
    tpu.vector_store %arg7[%c0_6, %c0_7], %7 {strides = array<i32>} : memref<8x512xf32, #tpu.memory_space<vmem>>, vector<8x512xf32>,
    %c2_i32 = arith.constant 2 : i32
    %9 = arith.cmpi eq, %arg2, %c2_i32 : i32
    %10 = arith.extui %9 : i1 to i32
    %c0_i32_8 = arith.constant 0 : i32
    %11 = arith.cmpi ne, %10, %c0_i32_8 : i32
    scf.if %11 {
      %c0_9 = arith.constant 0 : index
      %c0_10 = arith.constant 0 : index
      %12 = vector.load %arg7[%c0_9, %c0_10] : memref<8x512xf32, #tpu.memory_space<vmem>>, vector<8x512xf32>
      %c0_11 = arith.constant 0 : index
      %c0_12 = arith.constant 0 : index
      %13 = vector.load %arg5[%c0_11, %c0_12] : memref<2x512xf32, #tpu.memory_space<vmem>>, vector<1x512xf32>
      %14 = vector.broadcast %13 : vector<1x512xf32> to vector<8x512xf32>
      %15 = arith.mulf %12, %14 : vector<8x512xf32>
      %c1 = arith.constant 1 : index
      %c0_13 = arith.constant 0 : index
      %16 = vector.load %arg5[%c1, %c0_13] : memref<2x512xf32, #tpu.memory_space<vmem>>, vector<1x512xf32>
      %17 = vector.broadcast %16 : vector<1x512xf32> to vector<8x512xf32>
      %18 = arith.addf %15, %17 : vector<8x512xf32>
      %cst_14 = arith.constant 0.000000e+00 : f32
      %19 = vector.broadcast %cst_14 : f32 to vector<8x512xf32>
      %20 = arith.cmpf oge, %18, %19 : vector<8x512xf32>
      %cst_15 = arith.constant 0.00999999977 : f32
      %21 = vector.broadcast %cst_15 : f32 to vector<8x512xf32>
      %22 = arith.mulf %21, %18 : vector<8x512xf32>
      %23 = arith.select %20, %18, %22 : vector<8x512xi1>, vector<8x512xf32>
      %24 = arith.truncf %23 : vector<8x512xf32> to vector<8x512xbf16>
      %c0_16 = arith.constant 0 : index
      %c0_17 = arith.constant 0 : index
      %25 = vector.load %arg6[%c0_16, %c0_17] : memref<8x512xbf16, #tpu.memory_space<vmem>>, vector<8x512xbf16>
      tpu.vector_store %arg6[%c0_16, %c0_17], %24 {strides = array<i32>} : memref<8x512xbf16, #tpu.memory_space<vmem>>, vector<8x512xbf16>,
    } else {
    }
    return
  }
  func.func @transform_0(%arg0: i32, %arg1: i32, %arg2: i32) -> (i32, i32) {
    %c0_i32 = arith.constant 0 : i32
    return %arg0, %arg2 : i32, i32
  }
  func.func @transform_1(%arg0: i32, %arg1: i32, %arg2: i32) -> (i32, i32) {
    %c0_i32 = arith.constant 0 : i32
    return %arg2, %arg1 : i32, i32
  }
  func.func @transform_2(%arg0: i32, %arg1: i32, %arg2: i32) -> (i32, i32) {
    %c0_i32 = arith.constant 0 : i32
    %c0_i32_0 = arith.constant 0 : i32
    return %c0_i32, %arg1 : i32, i32
  }
  func.func @transform_3(%arg0: i32, %arg1: i32, %arg2: i32) -> (i32, i32) {
    %c0_i32 = arith.constant 0 : i32
    return %arg0, %arg1 : i32, i32
  }
}

module attributes {stable_mosaic.version = 11 : i64} {
  func.func @kernel(%arg0: i32, %arg1: i32, %arg2: i32, %arg3: memref<8x256xbf16, #tpu.memory_space<vmem>>, %arg4: memref<256x512xbf16, #tpu.memory_space<vmem>>, %arg5: memref<2x512xf32, #tpu.memory_space<vmem>>, %arg6: memref<8x512xbf16, #tpu.memory_space<vmem>>, %arg7: memref<8x512xf32, #tpu.memory_space<vmem>>) attributes {dimension_semantics = [#tpu.dimension_semantics<parallel>, #tpu.dimension_semantics<parallel>, #tpu.dimension_semantics<arbitrary>], iteration_bounds = array<i64: 1, 1, 1>, scalar_prefetch = 0 : i64, scratch_operands = 1 : i64, tpu.core_type = #tpu.core_type<tc>, window_params = [{transform_indices = @transform_0, window_bounds = array<i64: 8, 256>}, {transform_indices = @transform_1, window_bounds = array<i64: 256, 512>}, {transform_indices = @transform_2, window_bounds = array<i64: 2, 512>}, {transform_indices = @transform_3, window_bounds = array<i64: 8, 512>}]} {
    %c0_i32 = arith.constant 0 : i32
    %0 = arith.cmpi eq, %arg2, %c0_i32 : i32
    %1 = arith.extui %0 : i1 to i32
    %c0_i32_0 = arith.constant 0 : i32
    %2 = arith.cmpi ne, %1, %c0_i32_0 : i32
    scf.if %2 {
      %cst_10 = arith.constant 0.000000e+00 : f32
      %12 = vector.broadcast %cst_10 : f32 to vector<8x512xf32>
      %c0_11 = arith.constant 0 : index
      %c0_12 = arith.constant 0 : index
      %13 = vector.load %arg7[%c0_11, %c0_12] : memref<8x512xf32, #tpu.memory_space<vmem>>, vector<8x512xf32>
      tpu.vector_store %arg7[%c0_11, %c0_12], %12 {strides = array<i32>} : memref<8x512xf32, #tpu.memory_space<vmem>>, vector<8x512xf32>,
    } else {
    }
    %c0 = arith.constant 0 : index
    %c0_1 = arith.constant 0 : index
    %3 = vector.load %arg7[%c0, %c0_1] : memref<8x512xf32, #tpu.memory_space<vmem>>, vector<8x512xf32>
    %c0_2 = arith.constant 0 : index
    %c0_3 = arith.constant 0 : index
    %4 = vector.load %arg3[%c0_2, %c0_3] : memref<8x256xbf16, #tpu.memory_space<vmem>>, vector<8x256xbf16>
    %c0_4 = arith.constant 0 : index
    %c0_5 = arith.constant 0 : index
    %5 = vector.load %arg4[%c0_4, %c0_5] : memref<256x512xbf16, #tpu.memory_space<vmem>>, vector<256x512xbf16>
    %cst = arith.constant dense<0.000000e+00> : vector<8x512xf32>
    %6 = tpu.matmul %4, %5, %cst {dimension_numbers = #tpu.dot_dimension_numbers<[1], [0], [0], [1], [0, 0, 1, 1], [], []>} : vector<8x256xbf16>, vector<256x512xbf16>, vector<8x512xf32> -> vector<8x512xf32>
    %7 = arith.addf %3, %6 : vector<8x512xf32>
    %c0_6 = arith.constant 0 : index
    %c0_7 = arith.constant 0 : index
    %8 = vector.load %arg7[%c0_6, %c0_7] : memref<8x512xf32, #tpu.memory_space<vmem>>, vector<8x512xf32>
    tpu.vector_store %arg7[%c0_6, %c0_7], %7 {strides = array<i32>} : memref<8x512xf32, #tpu.memory_space<vmem>>, vector<8x512xf32>,
    %c0_i32_8 = arith.constant 0 : i32
    %9 = arith.cmpi eq, %arg2, %c0_i32_8 : i32
    %10 = arith.extui %9 : i1 to i32
    %c0_i32_9 = arith.constant 0 : i32
    %11 = arith.cmpi ne, %10, %c0_i32_9 : i32
    scf.if %11 {
      %c0_10 = arith.constant 0 : index
      %c0_11 = arith.constant 0 : index
      %12 = vector.load %arg7[%c0_10, %c0_11] : memref<8x512xf32, #tpu.memory_space<vmem>>, vector<8x512xf32>
      %c0_12 = arith.constant 0 : index
      %c0_13 = arith.constant 0 : index
      %13 = vector.load %arg5[%c0_12, %c0_13] : memref<2x512xf32, #tpu.memory_space<vmem>>, vector<1x512xf32>
      %14 = vector.broadcast %13 : vector<1x512xf32> to vector<8x512xf32>
      %15 = arith.mulf %12, %14 : vector<8x512xf32>
      %c1 = arith.constant 1 : index
      %c0_14 = arith.constant 0 : index
      %16 = vector.load %arg5[%c1, %c0_14] : memref<2x512xf32, #tpu.memory_space<vmem>>, vector<1x512xf32>
      %17 = vector.broadcast %16 : vector<1x512xf32> to vector<8x512xf32>
      %18 = arith.addf %15, %17 : vector<8x512xf32>
      %19 = arith.truncf %18 : vector<8x512xf32> to vector<8x512xbf16>
      %c0_15 = arith.constant 0 : index
      %c0_16 = arith.constant 0 : index
      %20 = vector.load %arg6[%c0_15, %c0_16] : memref<8x512xbf16, #tpu.memory_space<vmem>>, vector<8x512xbf16>
      tpu.vector_store %arg6[%c0_15, %c0_16], %19 {strides = array<i32>} : memref<8x512xbf16, #tpu.memory_space<vmem>>, vector<8x512xbf16>,
    } else {
    }
    return
  }
  func.func @transform_0(%arg0: i32, %arg1: i32, %arg2: i32) -> (i32, i32) {
    %c0_i32 = arith.constant 0 : i32
    return %arg0, %arg2 : i32, i32
  }
  func.func @transform_1(%arg0: i32, %arg1: i32, %arg2: i32) -> (i32, i32) {
    %c0_i32 = arith.constant 0 : i32
    return %arg2, %arg1 : i32, i32
  }
  func.func @transform_2(%arg0: i32, %arg1: i32, %arg2: i32) -> (i32, i32) {
    %c0_i32 = arith.constant 0 : i32
    %c0_i32_0 = arith.constant 0 : i32
    return %c0_i32, %arg1 : i32, i32
  }
  func.func @transform_3(%arg0: i32, %arg1: i32, %arg2: i32) -> (i32, i32) {
    %c0_i32 = arith.constant 0 : i32
    return %arg0, %arg1 : i32, i32
  }
}

module attributes {stable_mosaic.version = 11 : i64} {
  func.func @kernel(%arg0: i32, %arg1: i32, %arg2: i32, %arg3: memref<8x768xbf16, #tpu.memory_space<vmem>>, %arg4: memref<768x512xbf16, #tpu.memory_space<vmem>>, %arg5: memref<2x512xf32, #tpu.memory_space<vmem>>, %arg6: memref<8x512xbf16, #tpu.memory_space<vmem>>, %arg7: memref<8x512xbf16, #tpu.memory_space<vmem>>, %arg8: memref<8x512xf32, #tpu.memory_space<vmem>>) attributes {dimension_semantics = [#tpu.dimension_semantics<parallel>, #tpu.dimension_semantics<parallel>, #tpu.dimension_semantics<arbitrary>], iteration_bounds = array<i64: 1, 1, 6>, scalar_prefetch = 0 : i64, scratch_operands = 1 : i64, tpu.core_type = #tpu.core_type<tc>, window_params = [{transform_indices = @transform_0, window_bounds = array<i64: 8, 768>}, {transform_indices = @transform_1, window_bounds = array<i64: 768, 512>}, {transform_indices = @transform_2, window_bounds = array<i64: 2, 512>}, {transform_indices = @transform_3, window_bounds = array<i64: 8, 512>}, {transform_indices = @transform_4, window_bounds = array<i64: 8, 512>}]} {
    %c0_i32 = arith.constant 0 : i32
    %0 = arith.cmpi eq, %arg2, %c0_i32 : i32
    %1 = arith.extui %0 : i1 to i32
    %c0_i32_0 = arith.constant 0 : i32
    %2 = arith.cmpi ne, %1, %c0_i32_0 : i32
    scf.if %2 {
      %cst_9 = arith.constant 0.000000e+00 : f32
      %12 = vector.broadcast %cst_9 : f32 to vector<8x512xf32>
      %c0_10 = arith.constant 0 : index
      %c0_11 = arith.constant 0 : index
      %13 = vector.load %arg8[%c0_10, %c0_11] : memref<8x512xf32, #tpu.memory_space<vmem>>, vector<8x512xf32>
      tpu.vector_store %arg8[%c0_10, %c0_11], %12 {strides = array<i32>} : memref<8x512xf32, #tpu.memory_space<vmem>>, vector<8x512xf32>,
    } else {
    }
    %c0 = arith.constant 0 : index
    %c0_1 = arith.constant 0 : index
    %3 = vector.load %arg8[%c0, %c0_1] : memref<8x512xf32, #tpu.memory_space<vmem>>, vector<8x512xf32>
    %c0_2 = arith.constant 0 : index
    %c0_3 = arith.constant 0 : index
    %4 = vector.load %arg3[%c0_2, %c0_3] : memref<8x768xbf16, #tpu.memory_space<vmem>>, vector<8x768xbf16>
    %c0_4 = arith.constant 0 : index
    %c0_5 = arith.constant 0 : index
    %5 = vector.load %arg4[%c0_4, %c0_5] : memref<768x512xbf16, #tpu.memory_space<vmem>>, vector<768x512xbf16>
    %cst = arith.constant dense<0.000000e+00> : vector<8x512xf32>
    %6 = tpu.matmul %4, %5, %cst {dimension_numbers = #tpu.dot_dimension_numbers<[1], [0], [0], [1], [0, 0, 1, 1], [], []>} : vector<8x768xbf16>, vector<768x512xbf16>, vector<8x512xf32> -> vector<8x512xf32>
    %7 = arith.addf %3, %6 : vector<8x512xf32>
    %c0_6 = arith.constant 0 : index
    %c0_7 = arith.constant 0 : index
    %8 = vector.load %arg8[%c0_6, %c0_7] : memref<8x512xf32, #tpu.memory_space<vmem>>, vector<8x512xf32>
    tpu.vector_store %arg8[%c0_6, %c0_7], %7 {strides = array<i32>} : memref<8x512xf32, #tpu.memory_space<vmem>>, vector<8x512xf32>,
    %c5_i32 = arith.constant 5 : i32
    %9 = arith.cmpi eq, %arg2, %c5_i32 : i32
    %10 = arith.extui %9 : i1 to i32
    %c0_i32_8 = arith.constant 0 : i32
    %11 = arith.cmpi ne, %10, %c0_i32_8 : i32
    scf.if %11 {
      %c0_9 = arith.constant 0 : index
      %c0_10 = arith.constant 0 : index
      %12 = vector.load %arg8[%c0_9, %c0_10] : memref<8x512xf32, #tpu.memory_space<vmem>>, vector<8x512xf32>
      %c0_11 = arith.constant 0 : index
      %c0_12 = arith.constant 0 : index
      %13 = vector.load %arg5[%c0_11, %c0_12] : memref<2x512xf32, #tpu.memory_space<vmem>>, vector<1x512xf32>
      %14 = vector.broadcast %13 : vector<1x512xf32> to vector<8x512xf32>
      %15 = arith.mulf %12, %14 : vector<8x512xf32>
      %c1 = arith.constant 1 : index
      %c0_13 = arith.constant 0 : index
      %16 = vector.load %arg5[%c1, %c0_13] : memref<2x512xf32, #tpu.memory_space<vmem>>, vector<1x512xf32>
      %17 = vector.broadcast %16 : vector<1x512xf32> to vector<8x512xf32>
      %18 = arith.addf %15, %17 : vector<8x512xf32>
      %c0_14 = arith.constant 0 : index
      %c0_15 = arith.constant 0 : index
      %19 = vector.load %arg6[%c0_14, %c0_15] : memref<8x512xbf16, #tpu.memory_space<vmem>>, vector<8x512xbf16>
      %20 = arith.extf %19 : vector<8x512xbf16> to vector<8x512xf32>
      %21 = arith.addf %18, %20 : vector<8x512xf32>
      %cst_16 = arith.constant 0.000000e+00 : f32
      %22 = vector.broadcast %cst_16 : f32 to vector<8x512xf32>
      %23 = arith.cmpf oge, %21, %22 : vector<8x512xf32>
      %cst_17 = arith.constant 0.00999999977 : f32
      %24 = vector.broadcast %cst_17 : f32 to vector<8x512xf32>
      %25 = arith.mulf %24, %21 : vector<8x512xf32>
      %26 = arith.select %23, %21, %25 : vector<8x512xi1>, vector<8x512xf32>
      %27 = arith.truncf %26 : vector<8x512xf32> to vector<8x512xbf16>
      %c0_18 = arith.constant 0 : index
      %c0_19 = arith.constant 0 : index
      %28 = vector.load %arg7[%c0_18, %c0_19] : memref<8x512xbf16, #tpu.memory_space<vmem>>, vector<8x512xbf16>
      tpu.vector_store %arg7[%c0_18, %c0_19], %27 {strides = array<i32>} : memref<8x512xbf16, #tpu.memory_space<vmem>>, vector<8x512xbf16>,
    } else {
    }
    return
  }
  func.func @transform_0(%arg0: i32, %arg1: i32, %arg2: i32) -> (i32, i32) {
    %c0_i32 = arith.constant 0 : i32
    return %arg0, %arg2 : i32, i32
  }
  func.func @transform_1(%arg0: i32, %arg1: i32, %arg2: i32) -> (i32, i32) {
    %c0_i32 = arith.constant 0 : i32
    return %arg2, %arg1 : i32, i32
  }
  func.func @transform_2(%arg0: i32, %arg1: i32, %arg2: i32) -> (i32, i32) {
    %c0_i32 = arith.constant 0 : i32
    %c0_i32_0 = arith.constant 0 : i32
    return %c0_i32, %arg1 : i32, i32
  }
  func.func @transform_3(%arg0: i32, %arg1: i32, %arg2: i32) -> (i32, i32) {
    %c0_i32 = arith.constant 0 : i32
    return %arg0, %arg1 : i32, i32
  }
  func.func @transform_4(%arg0: i32, %arg1: i32, %arg2: i32) -> (i32, i32) {
    %c0_i32 = arith.constant 0 : i32
    return %arg0, %arg1 : i32, i32
  }
}

</mosaic_0001>

<bundles_post_ra>
// kernel: a_call__.14
= control target key start
LH: loop header
LB: loop body
LE: loop exit
PB: predicated region body
PF: predicated region fallthrough
CT: control target
= control target key end

     0   :  { %vm27_vm0 = vcmask 1043456   ;;  %s196_s0 = inlined_call_operand.vmem [shape: bf16[9,16,128], index: 0, kind: input, shape index: {}]   ;;  %s197_s1 = inlined_call_operand.vmem [shape: bf16[16,128], index: 1, kind: output, shape index: {}]  }
   0x1   :  { %v9_v0 = vld [vmem:[%s196_s0] sm:$0xf]  ;;  %v11_v1 = vld [vmem:[%s196_s0 + $0x8] sm:$0xf]  ;;  %v13_v2 = vld [vmem:[%s196_s0 + $0x10] sm:$0xf] }
   0x2   :  { %v10_v3 = vld [vmem:[%s196_s0 + $0x4] sm:$0xf]  ;;  %v12_v4 = vld [vmem:[%s196_s0 + $0xc] sm:$0xf]  ;;  %v14_v5 = vld [vmem:[%s196_s0 + $0x14] sm:$0xf] }
   0x3   :  { %v15_v6 = vld [vmem:[%s196_s0 + $0x18] sm:$0xf]  ;;  %v17_v7 = vld [vmem:[%s196_s0 + $0x20] sm:$0xf]  ;;  %v19_v8 = vld [vmem:[%s196_s0 + $0x28] sm:$0xf] }
   0x4   :  { %v16_v9 = vld [vmem:[%s196_s0 + $0x1c] sm:$0xf]  ;;  %v18_v10 = vld [vmem:[%s196_s0 + $0x24] sm:$0xf]  ;;  %v21_v11 = vld [vmem:[%s196_s0 + $0x30] sm:$0xf] }
   0x5   :  { %v23_v12 = vld [vmem:[%s196_s0 + $0x38] sm:$0xf]  ;;  %v25_v13 = vld [vmem:[%s196_s0 + $0x40] sm:$0xf]  ;;  %v20_v14 = vld [vmem:[%s196_s0 + $0x2c] sm:$0xf] }
   0x6   :  { %v22_v15 = vld [vmem:[%s196_s0 + $0x34] sm:$0xf]  ;;  %v30_v16 = vsel %vm27_vm0, %v9_v0, 4286644096  ;;  %v33_v17 = vsel %vm27_vm0, %v11_v1, 4286644096 }
   0x7   :  { %v36_v18 = vsel %vm27_vm0, %v13_v2, 4286644096  ;;  %v24_v19 = vld [vmem:[%s196_s0 + $0x3c] sm:$0xf]  ;;  %v40_v21 = vsel %vm27_vm0, %v15_v6, 4286644096 }
   0x8   :  { %v38_v20 = vmax.bf16 %v36_v18, %v30_v16  ;;  %v44_v22 = vsel %vm27_vm0, %v17_v7, 4286644096  ;;  %v48_v23 = vsel %vm27_vm0, %v19_v8, 4286644096  ;;  %v42_v24 = vmax.bf16 %v40_v21, %v33_v17  ;;  %v26_v32 = vld [vmem:[%s196_s0 + $0x44] sm:$0xf] }
   0x9   :  { %v52_v25 = vsel %vm27_vm0, %v21_v11, 4286644096  ;;  %v56_v26 = vsel %vm27_vm0, %v23_v12, 4286644096  ;;  %v60_v27 = vsel %vm27_vm0, %v25_v13, 4286644096 }
   0xa   :  { %v46_v28 = vmax.bf16 %v44_v22, %v38_v20  ;;  %v65_v29 = vsel %vm27_vm0, %v10_v3, 4286644096  ;;  %v68_v30 = vsel %vm27_vm0, %v12_v4, 4286644096  ;;  %v71_v31 = vsel %vm27_vm0, %v14_v5, 4286644096 }
   0xb   :  { %v50_v33 = vmax.bf16 %v48_v23, %v42_v24  ;;  %v73_v34 = vmax.bf16 %v71_v31, %v65_v29  ;;  %v75_v35 = vsel %vm27_vm0, %v16_v9, 4286644096  ;;  %v79_v36 = vsel %vm27_vm0, %v18_v10, 4286644096 }
   0xc   :  { %v54_v37 = vmax.bf16 %v52_v25, %v46_v28  ;;  %v77_v38 = vmax.bf16 %v75_v35, %v68_v30  ;;  %v83_v39 = vsel %vm27_vm0, %v20_v14, 4286644096  ;;  %v87_v40 = vsel %vm27_vm0, %v22_v15, 4286644096 }
   0xd   :  { %v58_v41 = vmax.bf16 %v56_v26, %v50_v33  ;;  %v81_v42 = vmax.bf16 %v79_v36, %v73_v34  ;;  %v91_v43 = vsel %vm27_vm0, %v24_v19, 4286644096  ;;  %v95_v46 = vsel %vm27_vm0, %v26_v32, 4286644096 }
   0xe   :  { %v62_v44 = vmax.bf16 %v60_v27, %v54_v37  ;;  %v85_v45 = vmax.bf16 %v83_v39, %v77_v38 }
   0xf   :  { %v89_v47 = vmax.bf16 %v87_v40, %v81_v42 }
  0x10   :  { %v93_v48 = vmax.bf16 %v91_v43, %v85_v45  ;;  %v63_v49 = vmax.bf16 %v62_v44, %v58_v41 }
  0x11   :  { %v97_v50 = vmax.bf16 %v95_v46, %v89_v47 }
  0x13   :  { %v98_v51 = vmax.bf16 %v97_v50, %v93_v48 }
  0x15   :  { %v110_v52 = vcombine.low %v63_v49, %v98_v51 }
  0x17   :  { %109 = vst [vmem:[%s197_s1] sm:$0xff] %v110_v52  }

// kernel: a_call__.15
= control target key start
LH: loop header
LB: loop body
LE: loop exit
PB: predicated region body
PF: predicated region fallthrough
CT: control target
= control target key end

     0   :  { %s1020_s1 = inlined_call_operand.vmem [shape: bf16[640,128], index: 1, kind: input, shape index: {}]   ;;  %s1021_s0 = inlined_call_operand.vmem [shape: bf16[32,640], index: 0, kind: input, shape index: {}]   ;;  %s1022_s2 = inlined_call_operand.vmem [shape: f32[2,128], index: 2, kind: input, shape index: {}]   ;;  %s1023_s3 = inlined_call_operand.vmem [shape: bf16[32,128], index: 3, kind: output, shape index: {}]  }
   0x1   :  { %v784_v0 = vld [vmem:[%s1020_s1 + $0x78] sm:$0xff]   ;;  %v788_v4 = vld [vmem:[%s1020_s1 + $0x70] sm:$0xff]   ;;  %v792_v8 = vld [vmem:[%s1020_s1 + $0x68] sm:$0xff]  }
   0x2   :  { %v785_v1 = vld [vmem:[%s1020_s1 + $0xf8] sm:$0xff]   ;;  %698 = vmatprep.subr.bf16.mxu0 %v784_v0  ;;  %v789_v5 = vld [vmem:[%s1020_s1 + $0xf0] sm:$0xff]   ;;  %v793_v9 = vld [vmem:[%s1020_s1 + $0xe8] sm:$0xff]  }
   0x3   :  { %v786_v2 = vld [vmem:[%s1020_s1 + $0x38] sm:$0xff]   ;;  %726 = vmatprep.subr.bf16.mxu1 %v785_v1  ;;  %v790_v6 = vld [vmem:[%s1020_s1 + $0x30] sm:$0xff]   ;;  %v794_v10 = vld [vmem:[%s1020_s1 + $0x28] sm:$0xff]  }
   0x4   :  { %v787_v3 = vld [vmem:[%s1020_s1 + $0xb8] sm:$0xff]   ;;  %699 = vmatpush3.bf16.msra.mxu0 %v786_v2  ;;  %v791_v7 = vld [vmem:[%s1020_s1 + $0xb0] sm:$0xff]   ;;  %v795_v11 = vld [vmem:[%s1020_s1 + $0xa8] sm:$0xff]  }
   0x5   :  { %727 = vmatpush3.bf16.msra.mxu1 %v787_v3  ;;  %700 = vmatprep.subr.bf16.mxu0 %v788_v4  ;;  %v796_v12 = vld [vmem:[%s1020_s1 + $0x60] sm:$0xff]   ;;  %v800_v16 = vld [vmem:[%s1020_s1 + $0x58] sm:$0xff]   ;;  %v804_v20 = vld [vmem:[%s1020_s1 + $0x50] sm:$0xff]  }
   0x6   :  { %728 = vmatprep.subr.bf16.mxu1 %v789_v5  ;;  %v797_v13 = vld [vmem:[%s1020_s1 + $0xe0] sm:$0xff]   ;;  %v801_v17 = vld [vmem:[%s1020_s1 + $0xd8] sm:$0xff]   ;;  %v805_v21 = vld [vmem:[%s1020_s1 + $0xd0] sm:$0xff]  }
   0x7   :  { %v798_v14 = vld [vmem:[%s1020_s1 + $0x20] sm:$0xff]   ;;  %v802_v18 = vld [vmem:[%s1020_s1 + $0x18] sm:$0xff]   ;;  %v806_v22 = vld [vmem:[%s1020_s1 + $0x10] sm:$0xff]  }
   0x8   :  { %701 = vmatpush3.bf16.msra.mxu0 %v790_v6  ;;  %v799_v15 = vld [vmem:[%s1020_s1 + $0xa0] sm:$0xff]   ;;  %v803_v19 = vld [vmem:[%s1020_s1 + $0x98] sm:$0xff]   ;;  %v807_v23 = vld [vmem:[%s1020_s1 + $0x90] sm:$0xff]  }
   0x9   :  { %729 = vmatpush3.bf16.msra.mxu1 %v791_v7  ;;  %702 = vmatprep.subr.bf16.mxu0 %v792_v8  ;;  %v808_v24 = vld [vmem:[%s1020_s1 + $0x48] sm:$0xff]   ;;  %v812_v28 = vld [vmem:[%s1020_s1 + $0x40] sm:$0xff]   ;;  %v822_v36 = vld [vmem:[%s1020_s1 + $0x138] sm:$0xff]  }
   0xa   :  { %730 = vmatprep.subr.bf16.mxu1 %v793_v9  ;;  %v809_v25 = vld [vmem:[%s1020_s1 + $0xc8] sm:$0xff]   ;;  %v813_v29 = vld [vmem:[%s1020_s1 + $0xc0] sm:$0xff]   ;;  %v823_v37 = vld [vmem:[%s1020_s1 + $0x130] sm:$0xff]  }
   0xb   :  { %v810_v26 = vld [vmem:[%s1020_s1 + $0x8] sm:$0xff]   ;;  %v814_v30 = vld [vmem:[%s1020_s1] sm:$0xff]   ;;  %v826_v45 = vld [vmem:[%s1020_s1 + $0x118] sm:$0xff]  }
   0xc   :  { %703 = vmatpush3.bf16.msra.mxu0 %v794_v10  ;;  %v811_v27 = vld [vmem:[%s1020_s1 + $0x88] sm:$0xff]   ;;  %v815_v31 = vld [vmem:[%s1020_s1 + $0x80] sm:$0xff]   ;;  %v833_v46 = vld [vmem:[%s1020_s1 + $0x110] sm:$0xff]  }
   0xd   :  { %731 = vmatpush3.bf16.msra.mxu1 %v795_v11  ;;  %704 = vmatprep.subr.bf16.mxu0 %v796_v12  ;;  %v816_v32 = vld [vmem:[%s1021_s0] ss:$20 sps:$4 sm:$0xff]   ;;  %v818_v33 = vld [vmem:[%s1021_s0 + $0x4] ss:$20 sps:$4 sm:$0xff]   ;;  %v819_v34 = vld [vmem:[%s1021_s0 + $0x8] ss:$20 sps:$4 sm:$0xff]  }
   0xe   :  { %732 = vmatprep.subr.bf16.mxu1 %v797_v13  ;;  %v821_v35 = vld [vmem:[%s1021_s0 + $0xc] ss:$20 sps:$4 sm:$0xff]   ;;  %443 = vmatprep.mubr.bf16.mxu0 %v818_v33  ;;  %v829_v40 = vld [vmem:[%s1021_s0 + $0x34] ss:$20 sps:$4 sm:$0xff]   ;;  %v832_v42 = vld [vmem:[%s1021_s0 + $0x30] ss:$20 sps:$4 sm:$0xff]  }
   0xf   :  { %492 = vmatprep.mubr.bf16.mxu1 %v821_v35  ;;  %v824_v38 = vld [vmem:[%s1020_s1 + $0x128] sm:$0xff]   ;;  %v825_v43 = vld [vmem:[%s1020_s1 + $0x120] sm:$0xff]  }
  0x10   :  { %705 = vmatpush3.bf16.msra.mxu0 %v798_v14  ;;  %v827_v39 = vld [vmem:[%s1021_s0 + $0x2c] ss:$20 sps:$4 sm:$0xff]   ;;  %v831_v41 = vld [vmem:[%s1021_s0 + $0x28] ss:$20 sps:$4 sm:$0xff]   ;;  %v836_v44 = vld [vmem:[%s1021_s0 + $0x10] ss:$20 sps:$4 sm:$0xff]  }
  0x11   :  { %733 = vmatpush3.bf16.msra.mxu1 %v799_v15  ;;  %706 = vmatprep.subr.bf16.mxu0 %v800_v16  ;;  %v834_v47 = vld [vmem:[%s1020_s1 + $0x108] sm:$0xff]   ;;  %v835_v48 = vld [vmem:[%s1020_s1 + $0x100] sm:$0xff]  }
  0x12   :  { %734 = vmatprep.subr.bf16.mxu1 %v801_v17  ;;  %v837_v49 = vld [vmem:[%s1021_s0 + $0x38] ss:$20 sps:$4 sm:$0xff]   ;;  %v677_v10 = vld [vmem:[%s1022_s2] ss:$0 sm:$0xff]  ;;  %v678_v15 = vld [vmem:[%s1022_s2 + $0x1] ss:$0 sm:$0xff] }
  0x14   :  { %707 = vmatpush3.bf16.msra.mxu0 %v802_v18 }
  0x15   :  { %735 = vmatpush3.bf16.msra.mxu1 %v803_v19  ;;  %708 = vmatprep.subr.bf16.mxu0 %v804_v20 }
  0x16   :  { %736 = vmatprep.subr.bf16.mxu1 %v805_v21 }
  0x18   :  { %709 = vmatpush3.bf16.msra.mxu0 %v806_v22 }
  0x19   :  { %737 = vmatpush3.bf16.msra.mxu1 %v807_v23  ;;  %710 = vmatprep.subr.bf16.mxu0 %v808_v24 }
  0x1a   :  { %738 = vmatprep.subr.bf16.mxu1 %v809_v25 }
  0x1c   :  { %711 = vmatpush3.bf16.msra.mxu0 %v810_v26 }
  0x1d   :  { %739 = vmatpush3.bf16.msra.mxu1 %v811_v27  ;;  %712 = vmatprep.subr.bf16.mxu0 %v812_v28 }
  0x1e   :  { %740 = vmatprep.subr.bf16.mxu1 %v813_v29 }
  0x20   :  { %713 = vmatpush3.bf16.msra.mxu0 %v814_v30 }
  0x21   :  { %741 = vmatpush3.bf16.msra.mxu1 %v815_v31  ;;  %764 = vmatprep.subr.bf16.mxu0 %v822_v36 }
  0x23   :  { %444 = vmatmul.mubr.bf16.vlgmr.msra.gmra.mxu0 %v816_v32 }
  0x24   :  { %493 = vmatmul.mubr.bf16.vlgmr.msra.gmra.mxu1 %v819_v34  ;;  %765 = vmatpush3.bf16.msra.mxu0 %v822_v36 }
  0x25   :  { %766 = vmatprep.subr.bf16.mxu0 %v823_v37  ;;  %451 = vmatprep.mubr.bf16.mxu0 %v827_v39 }
  0x26   :  { %500 = vmatprep.mubr.bf16.mxu1 %v829_v40 }
  0x28   :  { %767 = vmatpush3.bf16.msra.mxu0 %v823_v37 }
  0x29   :  { %768 = vmatprep.subr.bf16.mxu0 %v824_v38 }
  0x2b   :  { %452 = vmatmul.mubr.bf16.gmra.mxu0 %v831_v41 }
  0x2c   :  { %501 = vmatmul.mubr.bf16.gmra.mxu1 %v832_v42  ;;  %769 = vmatpush3.bf16.msra.mxu0 %v824_v38 }
  0x2d   :  { %770 = vmatprep.subr.bf16.mxu0 %v825_v43  ;;  %780 = vmatprep.mubr.bf16.mxu0 %v836_v44 }
  0x30   :  { %771 = vmatpush3.bf16.msra.mxu0 %v825_v43 }
  0x31   :  { %772 = vmatprep.subr.bf16.mxu0 %v826_v45 }
  0x34   :  { %773 = vmatpush3.bf16.msra.mxu0 %v826_v45 }
  0x35   :  { %774 = vmatprep.subr.bf16.mxu0 %v833_v46 }
  0x38   :  { %775 = vmatpush3.bf16.msra.mxu0 %v833_v46 }
  0x39   :  { %776 = vmatprep.subr.bf16.mxu0 %v834_v47 }
  0x3c   :  { %777 = vmatpush3.bf16.msra.mxu0 %v834_v47 }
  0x3d   :  { %778 = vmatprep.subr.bf16.mxu0 %v835_v48 }
  0x40   :  { %779 = vmatpush3.bf16.msra.mxu0 %v835_v48 }
  0x43   :  { %781 = vmatmul.mubr.bf16.vlgmr.msra.gmra.mxu0 %v837_v49 }
  0xe3   :  { %v714_v50 = vpop.f32.mrf.mxu0 }
  0xe4   :  { %v742_v51 = vpop.f32.mrf.mxu1 }
  0xe5   :  { %v715_v52 = vpop.f32.mrf.mxu0 }
  0xe6   :  { %v743_v53 = vpop.f32.mrf.mxu1  ;;  %v716_v4 = vadd.f32 %v715_v52, %v714_v50 }
  0xe7   :  { %v717_v54 = vpop.f32.mrf.mxu0  ;;  %v744_v5 = vadd.f32 %v743_v53, %v742_v51 }
  0xe8   :  { %v745_v55 = vpop.f32.mrf.mxu1 }
  0xe9   :  { %v718_v56 = vpop.f32.mrf.mxu0  ;;  %v495_v12 = vadd.f32 %v744_v5, %v716_v4 }
  0xea   :  { %v746_v57 = vpop.f32.mrf.mxu1  ;;  %v719_v13 = vadd.f32 %v718_v56, %v717_v54 }
  0xeb   :  { %v720_v58 = vpop.f32.mrf.mxu0  ;;  %v747_v14 = vadd.f32 %v746_v57, %v745_v55 }
  0xec   :  { %v748_v59 = vpop.f32.mrf.mxu1 }
  0xed   :  { %v721_v60 = vpop.f32.mrf.mxu0  ;;  %v498_v24 = vadd.f32 %v747_v14, %v719_v13 }
  0xee   :  { %v749_v61 = vpop.f32.mrf.mxu1  ;;  %v722_v0 = vadd.f32 %v721_v60, %v720_v58 }
  0xef   :  { %v723_v62 = vpop.f32.mrf.mxu0  ;;  %v750_v1 = vadd.f32 %v749_v61, %v748_v59 }
  0xf0   :  { %v751_v63 = vpop.f32.mrf.mxu1 }
  0xf1   :  { %v724_v2 = vpop.f32.mrf.mxu0  ;;  %v503_v8 = vadd.f32 %v750_v1, %v722_v0 }
  0xf2   :  { %v752_v3 = vpop.f32.mrf.mxu1  ;;  %v725_v6 = vadd.f32 %v724_v2, %v723_v62 }
  0xf3   :  { %v753_v7 = vadd.f32 %v752_v3, %v751_v63 }
  0xf5   :  { %v506_v19 = vadd.f32 %v753_v7, %v725_v6 }
 0x103   :  { %v782_v9 = vpop.f32.mrf.mxu0 }
 0x104   :  { %v552_v11 = vadd.f32 %v782_v9, %v503_v8 }
 0x105   :  { %v543_v16 = vpop.f32.mrf.mxu0 }
 0x106   :  { %v580_v17 = vmul.f32 %v677_v10, %v552_v11  ;;  %v544_v18 = vadd.f32 %v543_v16, %v495_v12 }
 0x107   :  { %v783_v20 = vpop.f32.mrf.mxu0 }
 0x108   :  { %v589_v21 = vadd.f32 %v678_v15, %v580_v17  ;;  %v578_v22 = vmul.f32 %v677_v10, %v544_v18  ;;  %v555_v23 = vadd.f32 %v783_v20, %v506_v19 }
 0x109   :  { %v546_v25 = vpop.f32.mrf.mxu0 }
 0x10a   :  { %v581_v26 = vmul.f32 %v677_v10, %v555_v23  ;;  %v587_v27 = vadd.f32 %v678_v15, %v578_v22  ;;  %v547_v28 = vadd.f32 %v546_v25, %v498_v24  ;;  %v597_v29 = vmul.f32 0.01, %v589_v21 }
 0x10b   :  { %vm593_vm0 = vcmp.ge.f32.partialorder %v589_v21, 0.0 }
 0x10c   :  { %v590_v30 = vadd.f32 %v678_v15, %v581_v26  ;;  %v579_v31 = vmul.f32 %v677_v10, %v547_v28  ;;  %v595_v33 = vmul.f32 0.01, %v587_v27  ;;  %v601_v35 = vsel %vm593_vm0, %v589_v21, %v597_v29 }
 0x10d   :  { %vm591_vm2 = vcmp.ge.f32.partialorder %v587_v27, 0.0 }
 0x10e   :  { %vm594_vm1 = vcmp.ge.f32.partialorder %v590_v30, 0.0  ;;  %v598_v32 = vmul.f32 0.01, %v590_v30  ;;  %v588_v34 = vadd.f32 %v678_v15, %v579_v31  ;;  %v599_v39 = vsel %vm591_vm2, %v587_v27, %v595_v33 }
 0x110   :  { %v602_v36 = vsel %vm594_vm1, %v590_v30, %v598_v32  ;;  %vm592_vm3 = vcmp.ge.f32.partialorder %v588_v34, 0.0  ;;  %v596_v38 = vmul.f32 0.01, %v588_v34 }
 0x111   :  { %v695_v37 = vpack.c.bf16 %v602_v36, %v601_v35 }
 0x112   :  { %v600_v40 = vsel %vm592_vm3, %v588_v34, %v596_v38 }
 0x113   :  { %697 = vst [vmem:[%s1023_s3 + $0x8] sm:$0xff] %v695_v37   ;;  %v690_v41 = vpack.c.bf16 %v600_v40, %v599_v39 }
 0x115   :  { %691 = vst [vmem:[%s1023_s3] sm:$0xff] %v690_v41  }

// kernel: a_call__.13
= control target key start
LH: loop header
LB: loop body
LE: loop exit
PB: predicated region body
PF: predicated region fallthrough
CT: control target
= control target key end

     0   :  { %s964_s1 = inlined_call_operand.vmem [shape: bf16[256,128], index: 1, kind: input, shape index: {}]   ;;  %s965_s0 = inlined_call_operand.vmem [shape: bf16[128,256], index: 0, kind: input, shape index: {}]   ;;  %s966_s2 = inlined_call_operand.vmem [shape: f32[2,128], index: 2, kind: input, shape index: {}]   ;;  %s967_s3 = inlined_call_operand.vmem [shape: bf16[128,128], index: 3, kind: output, shape index: {}]  }
   0x1   :  { %v742_v0 = vld [vmem:[%s964_s1 + $0x78] sm:$0xff]   ;;  %v744_v2 = vld [vmem:[%s964_s1 + $0x70] sm:$0xff]   ;;  %v746_v4 = vld [vmem:[%s964_s1 + $0x68] sm:$0xff]  }
   0x2   :  { %v743_v1 = vld [vmem:[%s964_s1 + $0x38] sm:$0xff]   ;;  %662 = vmatprep.subr.bf16.mxu0 %v742_v0  ;;  %726 = vmatprep.subr.bf16.mxu1 %v742_v0  ;;  %v745_v3 = vld [vmem:[%s964_s1 + $0x30] sm:$0xff]   ;;  %v747_v5 = vld [vmem:[%s964_s1 + $0x28] sm:$0xff]  }
   0x3   :  { %663 = vmatpush3.bf16.msra.mxu0 %v743_v1  ;;  %734 = vmatpush3.bf16.msra.mxu1 %v743_v1  ;;  %v748_v6 = vld [vmem:[%s964_s1 + $0x60] sm:$0xff]   ;;  %v750_v8 = vld [vmem:[%s964_s1 + $0x58] sm:$0xff]   ;;  %v752_v10 = vld [vmem:[%s964_s1 + $0x50] sm:$0xff]  }
   0x4   :  { %664 = vmatprep.subr.bf16.mxu0 %v744_v2  ;;  %727 = vmatprep.subr.bf16.mxu1 %v744_v2  ;;  %v749_v7 = vld [vmem:[%s964_s1 + $0x20] sm:$0xff]   ;;  %v751_v9 = vld [vmem:[%s964_s1 + $0x18] sm:$0xff]   ;;  %v753_v13 = vld [vmem:[%s964_s1 + $0x10] sm:$0xff]  }
   0x5   :  { %v760_v11 = vld [vmem:[%s965_s0 + $0x4] ss:$8 sps:$4 sm:$0xff]   ;;  %v758_v18 = vld [vmem:[%s965_s0] ss:$8 sps:$4 sm:$0xff]   ;;  %v764_v20 = vld [vmem:[%s965_s0 + $0x14] ss:$8 sps:$4 sm:$0xff]  }
   0x6   :  { %v763_v12 = vld [vmem:[%s965_s0 + $0x44] ss:$8 sps:$4 sm:$0xff]   ;;  %307 = vmatprep.mubr.bf16.mxu0 %v760_v11  ;;  %v761_v19 = vld [vmem:[%s965_s0 + $0x40] ss:$8 sps:$4 sm:$0xff]   ;;  %v766_v21 = vld [vmem:[%s965_s0 + $0x54] ss:$8 sps:$4 sm:$0xff]  }
   0x7   :  { %665 = vmatpush3.bf16.msra.mxu0 %v745_v3  ;;  %735 = vmatpush3.bf16.msra.mxu1 %v745_v3  ;;  %v754_v14 = vld [vmem:[%s964_s1 + $0x48] sm:$0xff]   ;;  %v756_v16 = vld [vmem:[%s964_s1 + $0x40] sm:$0xff]   ;;  %v768_v22 = vld [vmem:[%s965_s0 + $0x10] ss:$8 sps:$4 sm:$0xff]  }
   0x8   :  { %666 = vmatprep.subr.bf16.mxu0 %v746_v4  ;;  %728 = vmatprep.subr.bf16.mxu1 %v746_v4  ;;  %v755_v15 = vld [vmem:[%s964_s1 + $0x8] sm:$0xff]   ;;  %v757_v17 = vld [vmem:[%s964_s1] sm:$0xff]   ;;  %v769_v23 = vld [vmem:[%s965_s0 + $0x50] ss:$8 sps:$4 sm:$0xff]  }
   0x9   :  { %339 = vmatprep.mubr.bf16.mxu1 %v763_v12  ;;  %v770_v24 = vld [vmem:[%s965_s0 + $0x24] ss:$8 sps:$4 sm:$0xff]   ;;  %v774_v26 = vld [vmem:[%s965_s0 + $0x20] ss:$8 sps:$4 sm:$0xff]   ;;  %v776_v28 = vld [vmem:[%s965_s0 + $0x34] ss:$8 sps:$4 sm:$0xff]  }
   0xa   :  { %v772_v25 = vld [vmem:[%s965_s0 + $0x64] ss:$8 sps:$4 sm:$0xff]   ;;  %v775_v27 = vld [vmem:[%s965_s0 + $0x60] ss:$8 sps:$4 sm:$0xff]   ;;  %v778_v29 = vld [vmem:[%s965_s0 + $0x74] ss:$8 sps:$4 sm:$0xff]  }
   0xb   :  { %667 = vmatpush3.bf16.msra.mxu0 %v747_v5  ;;  %736 = vmatpush3.bf16.msra.mxu1 %v747_v5  ;;  %v780_v30 = vld [vmem:[%s965_s0 + $0x30] ss:$8 sps:$4 sm:$0xff]   ;;  %v901_v37 = vld [vmem:[%s966_s2] ss:$0 sm:$0xff]  ;;  %v908_v45 = vld [vmem:[%s966_s2 + $0x1] ss:$0 sm:$0xff] }
   0xc   :  { %668 = vmatprep.subr.bf16.mxu0 %v748_v6  ;;  %729 = vmatprep.subr.bf16.mxu1 %v748_v6  ;;  %v781_v31 = vld [vmem:[%s965_s0 + $0x70] ss:$8 sps:$4 sm:$0xff]  }
   0xf   :  { %669 = vmatpush3.bf16.msra.mxu0 %v749_v7  ;;  %737 = vmatpush3.bf16.msra.mxu1 %v749_v7 }
  0x10   :  { %670 = vmatprep.subr.bf16.mxu0 %v750_v8  ;;  %730 = vmatprep.subr.bf16.mxu1 %v750_v8 }
  0x13   :  { %671 = vmatpush3.bf16.msra.mxu0 %v751_v9  ;;  %738 = vmatpush3.bf16.msra.mxu1 %v751_v9 }
  0x14   :  { %672 = vmatprep.subr.bf16.mxu0 %v752_v10  ;;  %731 = vmatprep.subr.bf16.mxu1 %v752_v10 }
  0x17   :  { %673 = vmatpush3.bf16.msra.mxu0 %v753_v13  ;;  %739 = vmatpush3.bf16.msra.mxu1 %v753_v13 }
  0x18   :  { %674 = vmatprep.subr.bf16.mxu0 %v754_v14  ;;  %732 = vmatprep.subr.bf16.mxu1 %v754_v14 }
  0x1b   :  { %675 = vmatpush3.bf16.msra.mxu0 %v755_v15  ;;  %740 = vmatpush3.bf16.msra.mxu1 %v755_v15 }
  0x1c   :  { %676 = vmatprep.subr.bf16.mxu0 %v756_v16  ;;  %733 = vmatprep.subr.bf16.mxu1 %v756_v16 }
  0x1f   :  { %677 = vmatpush3.bf16.msra.mxu0 %v757_v17  ;;  %741 = vmatpush3.bf16.msra.mxu1 %v757_v17 }
  0x22   :  { %308 = vmatmul.mubr.bf16.vlgmr.msra.gmra.mxu0 %v758_v18  ;;  %340 = vmatmul.mubr.bf16.vlgmr.msra.gmra.mxu1 %v761_v19 }
  0x23   :  { %315 = vmatprep.mubr.bf16.mxu0 %v764_v20  ;;  %347 = vmatprep.mubr.bf16.mxu1 %v766_v21 }
  0x2a   :  { %316 = vmatmul.mubr.bf16.gmra.mxu0 %v768_v22  ;;  %348 = vmatmul.mubr.bf16.gmra.mxu1 %v769_v23 }
  0x2b   :  { %323 = vmatprep.mubr.bf16.mxu0 %v770_v24  ;;  %355 = vmatprep.mubr.bf16.mxu1 %v772_v25 }
  0x32   :  { %324 = vmatmul.mubr.bf16.gmra.mxu0 %v774_v26  ;;  %356 = vmatmul.mubr.bf16.gmra.mxu1 %v775_v27 }
  0x33   :  { %331 = vmatprep.mubr.bf16.mxu0 %v776_v28  ;;  %363 = vmatprep.mubr.bf16.mxu1 %v778_v29 }
  0x3a   :  { %332 = vmatmul.mubr.bf16.gmra.mxu0 %v780_v30  ;;  %364 = vmatmul.mubr.bf16.gmra.mxu1 %v781_v31 }
  0xe2   :  { %v678_v32 = vpop.f32.mrf.mxu0  ;;  %v702_v33 = vpop.f32.mrf.mxu1 }
  0xe4   :  { %v679_v34 = vpop.f32.mrf.mxu0  ;;  %v703_v35 = vpop.f32.mrf.mxu1 }
  0xe5   :  { %v680_v36 = vadd.f32 %v679_v34, %v678_v32  ;;  %v704_v38 = vadd.f32 %v703_v35, %v702_v33 }
  0xe6   :  { %v681_v39 = vpop.f32.mrf.mxu0  ;;  %v705_v40 = vpop.f32.mrf.mxu1 }
  0xe7   :  { %v428_v41 = vmul.f32 %v680_v36, %v901_v37  ;;  %v436_v42 = vmul.f32 %v704_v38, %v901_v37 }
  0xe8   :  { %v682_v43 = vpop.f32.mrf.mxu0  ;;  %v706_v44 = vpop.f32.mrf.mxu1 }
  0xe9   :  { %v683_v46 = vadd.f32 %v682_v43, %v681_v39  ;;  %v707_v47 = vadd.f32 %v706_v44, %v705_v40  ;;  %v449_v52 = vadd.f32 %v908_v45, %v428_v41  ;;  %v457_v53 = vadd.f32 %v908_v45, %v436_v42 }
  0xea   :  { %v684_v48 = vpop.f32.mrf.mxu0  ;;  %v708_v49 = vpop.f32.mrf.mxu1 }
  0xeb   :  { %v429_v50 = vmul.f32 %v683_v46, %v901_v37  ;;  %v437_v51 = vmul.f32 %v707_v47, %v901_v37 }
  0xec   :  { %v685_v54 = vpop.f32.mrf.mxu0  ;;  %v709_v55 = vpop.f32.mrf.mxu1 }
  0xed   :  { %v450_v56 = vadd.f32 %v908_v45, %v429_v50  ;;  %v458_v57 = vadd.f32 %v908_v45, %v437_v51  ;;  %v686_v58 = vadd.f32 %v685_v54, %v684_v48  ;;  %v710_v59 = vadd.f32 %v709_v55, %v708_v49 }
  0xee   :  { %v687_v60 = vpop.f32.mrf.mxu0  ;;  %v711_v61 = vpop.f32.mrf.mxu1 }
  0xef   :  { %v618_v62 = vpack.c.bf16 %v450_v56, %v449_v52  ;;  %v638_v63 = vpack.c.bf16 %v458_v57, %v457_v53  ;;  %v430_v0 = vmul.f32 %v686_v58, %v901_v37  ;;  %v438_v1 = vmul.f32 %v710_v59, %v901_v37 }
  0xf0   :  { %v688_v2 = vpop.f32.mrf.mxu0  ;;  %v712_v3 = vpop.f32.mrf.mxu1 }
  0xf1   :  { %619 = vst [vmem:[%s967_s3] sm:$0xff] %v618_v62   ;;  %658 = vst [vmem:[%s967_s3 + $0x20] sm:$0xff] %v638_v63   ;;  %v689_v4 = vadd.f32 %v688_v2, %v687_v60  ;;  %v713_v5 = vadd.f32 %v712_v3, %v711_v61  ;;  %v451_v10 = vadd.f32 %v908_v45, %v430_v0 }
  0xf2   :  { %v690_v6 = vpop.f32.mrf.mxu0  ;;  %v714_v7 = vpop.f32.mrf.mxu1  ;;  %v459_v11 = vadd.f32 %v908_v45, %v438_v1 }
  0xf3   :  { %v431_v8 = vmul.f32 %v689_v4, %v901_v37  ;;  %v439_v9 = vmul.f32 %v713_v5, %v901_v37 }
  0xf4   :  { %v691_v12 = vpop.f32.mrf.mxu0  ;;  %v715_v13 = vpop.f32.mrf.mxu1 }
  0xf5   :  { %v452_v14 = vadd.f32 %v908_v45, %v431_v8  ;;  %v460_v15 = vadd.f32 %v908_v45, %v439_v9  ;;  %v692_v16 = vadd.f32 %v691_v12, %v690_v6  ;;  %v716_v17 = vadd.f32 %v715_v13, %v714_v7 }
  0xf6   :  { %v693_v18 = vpop.f32.mrf.mxu0  ;;  %v717_v19 = vpop.f32.mrf.mxu1 }
  0xf7   :  { %v623_v20 = vpack.c.bf16 %v452_v14, %v451_v10  ;;  %v643_v21 = vpack.c.bf16 %v460_v15, %v459_v11  ;;  %v432_v22 = vmul.f32 %v692_v16, %v901_v37  ;;  %v440_v23 = vmul.f32 %v716_v17, %v901_v37 }
  0xf8   :  { %v694_v24 = vpop.f32.mrf.mxu0  ;;  %v718_v25 = vpop.f32.mrf.mxu1 }
  0xf9   :  { %655 = vst [vmem:[%s967_s3 + $0x8] sm:$0xff] %v623_v20   ;;  %659 = vst [vmem:[%s967_s3 + $0x28] sm:$0xff] %v643_v21   ;;  %v695_v26 = vadd.f32 %v694_v24, %v693_v18  ;;  %v719_v27 = vadd.f32 %v718_v25, %v717_v19  ;;  %v453_v32 = vadd.f32 %v908_v45, %v432_v22 }
  0xfa   :  { %v696_v28 = vpop.f32.mrf.mxu0  ;;  %v720_v29 = vpop.f32.mrf.mxu1  ;;  %v461_v33 = vadd.f32 %v908_v45, %v440_v23 }
  0xfb   :  { %v433_v30 = vmul.f32 %v695_v26, %v901_v37  ;;  %v441_v31 = vmul.f32 %v719_v27, %v901_v37 }
  0xfc   :  { %v697_v34 = vpop.f32.mrf.mxu0  ;;  %v721_v35 = vpop.f32.mrf.mxu1 }
  0xfd   :  { %v454_v36 = vadd.f32 %v908_v45, %v433_v30  ;;  %v462_v38 = vadd.f32 %v908_v45, %v441_v31  ;;  %v698_v39 = vadd.f32 %v697_v34, %v696_v28  ;;  %v722_v40 = vadd.f32 %v721_v35, %v720_v29 }
  0xfe   :  { %v699_v41 = vpop.f32.mrf.mxu0  ;;  %v723_v42 = vpop.f32.mrf.mxu1 }
  0xff   :  { %v628_v43 = vpack.c.bf16 %v454_v36, %v453_v32  ;;  %v648_v44 = vpack.c.bf16 %v462_v38, %v461_v33  ;;  %v434_v48 = vmul.f32 %v698_v39, %v901_v37  ;;  %v442_v49 = vmul.f32 %v722_v40, %v901_v37 }
 0x100   :  { %v700_v46 = vpop.f32.mrf.mxu0  ;;  %v724_v47 = vpop.f32.mrf.mxu1 }
 0x101   :  { %656 = vst [vmem:[%s967_s3 + $0x10] sm:$0xff] %v628_v43   ;;  %660 = vst [vmem:[%s967_s3 + $0x30] sm:$0xff] %v648_v44   ;;  %v701_v50 = vadd.f32 %v700_v46, %v699_v41  ;;  %v725_v51 = vadd.f32 %v724_v47, %v723_v42  ;;  %v455_v54 = vadd.f32 %v908_v45, %v434_v48 }
 0x102   :  { %v463_v55 = vadd.f32 %v908_v45, %v442_v49 }
 0x103   :  { %v435_v52 = vmul.f32 %v701_v50, %v901_v37  ;;  %v443_v53 = vmul.f32 %v725_v51, %v901_v37 }
 0x105   :  { %v456_v56 = vadd.f32 %v908_v45, %v435_v52  ;;  %v464_v57 = vadd.f32 %v908_v45, %v443_v53 }
 0x107   :  { %v633_v58 = vpack.c.bf16 %v456_v56, %v455_v54  ;;  %v653_v59 = vpack.c.bf16 %v464_v57, %v463_v55 }
 0x109   :  { %657 = vst [vmem:[%s967_s3 + $0x18] sm:$0xff] %v633_v58   ;;  %661 = vst [vmem:[%s967_s3 + $0x38] sm:$0xff] %v653_v59  }

// kernel: a_call__.16
= control target key start
LH: loop header
LB: loop body
LE: loop exit
PB: predicated region body
PF: predicated region fallthrough
CT: control target
= control target key end

     0   :  { %s1055_s1 = inlined_call_operand.vmem [shape: bf16[640,128], index: 1, kind: input, shape index: {}]   ;;  %s1056_s0 = inlined_call_operand.vmem [shape: bf16[32,640], index: 0, kind: input, shape index: {}]   ;;  %s1057_s2 = inlined_call_operand.vmem [shape: f32[2,128], index: 2, kind: input, shape index: {}]   ;;  %s1058_s3 = inlined_call_operand.vmem [shape: bf16[32,128], index: 3, kind: input, shape index: {}]   ;;  %s1059_s4 = inlined_call_operand.vmem [shape: bf16[32,128], index: 4, kind: output, shape index: {}]  }
   0x1   :  { %v808_v0 = vld [vmem:[%s1055_s1 + $0x78] sm:$0xff]   ;;  %v812_v4 = vld [vmem:[%s1055_s1 + $0x70] sm:$0xff]   ;;  %v816_v8 = vld [vmem:[%s1055_s1 + $0x68] sm:$0xff]  }
   0x2   :  { %v809_v1 = vld [vmem:[%s1055_s1 + $0xf8] sm:$0xff]   ;;  %722 = vmatprep.subr.bf16.mxu0 %v808_v0  ;;  %v813_v5 = vld [vmem:[%s1055_s1 + $0xf0] sm:$0xff]   ;;  %v817_v9 = vld [vmem:[%s1055_s1 + $0xe8] sm:$0xff]  }
   0x3   :  { %v810_v2 = vld [vmem:[%s1055_s1 + $0x38] sm:$0xff]   ;;  %750 = vmatprep.subr.bf16.mxu1 %v809_v1  ;;  %v814_v6 = vld [vmem:[%s1055_s1 + $0x30] sm:$0xff]   ;;  %v818_v10 = vld [vmem:[%s1055_s1 + $0x28] sm:$0xff]  }
   0x4   :  { %v811_v3 = vld [vmem:[%s1055_s1 + $0xb8] sm:$0xff]   ;;  %723 = vmatpush3.bf16.msra.mxu0 %v810_v2  ;;  %v815_v7 = vld [vmem:[%s1055_s1 + $0xb0] sm:$0xff]   ;;  %v819_v11 = vld [vmem:[%s1055_s1 + $0xa8] sm:$0xff]  }
   0x5   :  { %751 = vmatpush3.bf16.msra.mxu1 %v811_v3  ;;  %724 = vmatprep.subr.bf16.mxu0 %v812_v4  ;;  %v820_v12 = vld [vmem:[%s1055_s1 + $0x60] sm:$0xff]   ;;  %v824_v16 = vld [vmem:[%s1055_s1 + $0x58] sm:$0xff]   ;;  %v828_v20 = vld [vmem:[%s1055_s1 + $0x50] sm:$0xff]  }
   0x6   :  { %752 = vmatprep.subr.bf16.mxu1 %v813_v5  ;;  %v821_v13 = vld [vmem:[%s1055_s1 + $0xe0] sm:$0xff]   ;;  %v825_v17 = vld [vmem:[%s1055_s1 + $0xd8] sm:$0xff]   ;;  %v829_v21 = vld [vmem:[%s1055_s1 + $0xd0] sm:$0xff]  }
   0x7   :  { %v822_v14 = vld [vmem:[%s1055_s1 + $0x20] sm:$0xff]   ;;  %v826_v18 = vld [vmem:[%s1055_s1 + $0x18] sm:$0xff]   ;;  %v830_v22 = vld [vmem:[%s1055_s1 + $0x10] sm:$0xff]  }
   0x8   :  { %725 = vmatpush3.bf16.msra.mxu0 %v814_v6  ;;  %v823_v15 = vld [vmem:[%s1055_s1 + $0xa0] sm:$0xff]   ;;  %v827_v19 = vld [vmem:[%s1055_s1 + $0x98] sm:$0xff]   ;;  %v831_v23 = vld [vmem:[%s1055_s1 + $0x90] sm:$0xff]  }
   0x9   :  { %753 = vmatpush3.bf16.msra.mxu1 %v815_v7  ;;  %726 = vmatprep.subr.bf16.mxu0 %v816_v8  ;;  %v832_v24 = vld [vmem:[%s1055_s1 + $0x48] sm:$0xff]   ;;  %v836_v28 = vld [vmem:[%s1055_s1 + $0x40] sm:$0xff]   ;;  %v846_v36 = vld [vmem:[%s1055_s1 + $0x138] sm:$0xff]  }
   0xa   :  { %754 = vmatprep.subr.bf16.mxu1 %v817_v9  ;;  %v833_v25 = vld [vmem:[%s1055_s1 + $0xc8] sm:$0xff]   ;;  %v837_v29 = vld [vmem:[%s1055_s1 + $0xc0] sm:$0xff]   ;;  %v847_v37 = vld [vmem:[%s1055_s1 + $0x130] sm:$0xff]  }
   0xb   :  { %v834_v26 = vld [vmem:[%s1055_s1 + $0x8] sm:$0xff]   ;;  %v838_v30 = vld [vmem:[%s1055_s1] sm:$0xff]   ;;  %v850_v45 = vld [vmem:[%s1055_s1 + $0x118] sm:$0xff]  }
   0xc   :  { %727 = vmatpush3.bf16.msra.mxu0 %v818_v10  ;;  %v835_v27 = vld [vmem:[%s1055_s1 + $0x88] sm:$0xff]   ;;  %v839_v31 = vld [vmem:[%s1055_s1 + $0x80] sm:$0xff]   ;;  %v857_v46 = vld [vmem:[%s1055_s1 + $0x110] sm:$0xff]  }
   0xd   :  { %755 = vmatpush3.bf16.msra.mxu1 %v819_v11  ;;  %728 = vmatprep.subr.bf16.mxu0 %v820_v12  ;;  %v840_v32 = vld [vmem:[%s1056_s0] ss:$20 sps:$4 sm:$0xff]   ;;  %v842_v33 = vld [vmem:[%s1056_s0 + $0x4] ss:$20 sps:$4 sm:$0xff]   ;;  %v843_v34 = vld [vmem:[%s1056_s0 + $0x8] ss:$20 sps:$4 sm:$0xff]  }
   0xe   :  { %756 = vmatprep.subr.bf16.mxu1 %v821_v13  ;;  %v845_v35 = vld [vmem:[%s1056_s0 + $0xc] ss:$20 sps:$4 sm:$0xff]   ;;  %446 = vmatprep.mubr.bf16.mxu0 %v842_v33  ;;  %v853_v40 = vld [vmem:[%s1056_s0 + $0x34] ss:$20 sps:$4 sm:$0xff]   ;;  %v856_v42 = vld [vmem:[%s1056_s0 + $0x30] ss:$20 sps:$4 sm:$0xff]  }
   0xf   :  { %495 = vmatprep.mubr.bf16.mxu1 %v845_v35  ;;  %v848_v38 = vld [vmem:[%s1055_s1 + $0x128] sm:$0xff]   ;;  %v849_v43 = vld [vmem:[%s1055_s1 + $0x120] sm:$0xff]  }
  0x10   :  { %729 = vmatpush3.bf16.msra.mxu0 %v822_v14  ;;  %v851_v39 = vld [vmem:[%s1056_s0 + $0x2c] ss:$20 sps:$4 sm:$0xff]   ;;  %v855_v41 = vld [vmem:[%s1056_s0 + $0x28] ss:$20 sps:$4 sm:$0xff]   ;;  %v860_v44 = vld [vmem:[%s1056_s0 + $0x10] ss:$20 sps:$4 sm:$0xff]  }
  0x11   :  { %757 = vmatpush3.bf16.msra.mxu1 %v823_v15  ;;  %730 = vmatprep.subr.bf16.mxu0 %v824_v16  ;;  %v858_v47 = vld [vmem:[%s1055_s1 + $0x108] sm:$0xff]   ;;  %v859_v48 = vld [vmem:[%s1055_s1 + $0x100] sm:$0xff]  }
  0x12   :  { %758 = vmatprep.subr.bf16.mxu1 %v825_v17  ;;  %v861_v49 = vld [vmem:[%s1056_s0 + $0x38] ss:$20 sps:$4 sm:$0xff]   ;;  %v692_v10 = vld [vmem:[%s1057_s2] ss:$0 sm:$0xff]  ;;  %v693_v16 = vld [vmem:[%s1057_s2 + $0x1] ss:$0 sm:$0xff] }
  0x13   :  { %v720_v11 = vld [vmem:[%s1058_s3 + $0x8] sm:$0xff]  }
  0x14   :  { %731 = vmatpush3.bf16.msra.mxu0 %v826_v18 }
  0x15   :  { %759 = vmatpush3.bf16.msra.mxu1 %v827_v19  ;;  %732 = vmatprep.subr.bf16.mxu0 %v828_v20  ;;  %v708_v19 = vunpack.c.l.bf16 %v720_v11 }
  0x16   :  { %760 = vmatprep.subr.bf16.mxu1 %v829_v21  ;;  %v703_v21 = vld [vmem:[%s1058_s3] sm:$0xff]  }
  0x18   :  { %733 = vmatpush3.bf16.msra.mxu0 %v830_v22 }
  0x19   :  { %761 = vmatpush3.bf16.msra.mxu1 %v831_v23  ;;  %734 = vmatprep.subr.bf16.mxu0 %v832_v24 }
  0x1a   :  { %762 = vmatprep.subr.bf16.mxu1 %v833_v25 }
  0x1c   :  { %735 = vmatpush3.bf16.msra.mxu0 %v834_v26 }
  0x1d   :  { %763 = vmatpush3.bf16.msra.mxu1 %v835_v27  ;;  %736 = vmatprep.subr.bf16.mxu0 %v836_v28  ;;  %v704_v28 = vunpack.c.l.bf16 %v703_v21 }
  0x1e   :  { %764 = vmatprep.subr.bf16.mxu1 %v837_v29  ;;  %v709_v29 = vunpack.c.h.bf16 %v720_v11 }
  0x20   :  { %737 = vmatpush3.bf16.msra.mxu0 %v838_v30 }
  0x21   :  { %765 = vmatpush3.bf16.msra.mxu1 %v839_v31  ;;  %788 = vmatprep.subr.bf16.mxu0 %v846_v36 }
  0x23   :  { %447 = vmatmul.mubr.bf16.vlgmr.msra.gmra.mxu0 %v840_v32 }
  0x24   :  { %496 = vmatmul.mubr.bf16.vlgmr.msra.gmra.mxu1 %v843_v34  ;;  %789 = vmatpush3.bf16.msra.mxu0 %v846_v36 }
  0x25   :  { %790 = vmatprep.subr.bf16.mxu0 %v847_v37  ;;  %454 = vmatprep.mubr.bf16.mxu0 %v851_v39 }
  0x26   :  { %503 = vmatprep.mubr.bf16.mxu1 %v853_v40 }
  0x28   :  { %791 = vmatpush3.bf16.msra.mxu0 %v847_v37 }
  0x29   :  { %792 = vmatprep.subr.bf16.mxu0 %v848_v38 }
  0x2b   :  { %455 = vmatmul.mubr.bf16.gmra.mxu0 %v855_v41 }
  0x2c   :  { %504 = vmatmul.mubr.bf16.gmra.mxu1 %v856_v42  ;;  %793 = vmatpush3.bf16.msra.mxu0 %v848_v38  ;;  %v705_v38 = vunpack.c.h.bf16 %v703_v21 }
  0x2d   :  { %794 = vmatprep.subr.bf16.mxu0 %v849_v43  ;;  %804 = vmatprep.mubr.bf16.mxu0 %v860_v44 }
  0x30   :  { %795 = vmatpush3.bf16.msra.mxu0 %v849_v43 }
  0x31   :  { %796 = vmatprep.subr.bf16.mxu0 %v850_v45 }
  0x34   :  { %797 = vmatpush3.bf16.msra.mxu0 %v850_v45 }
  0x35   :  { %798 = vmatprep.subr.bf16.mxu0 %v857_v46 }
  0x38   :  { %799 = vmatpush3.bf16.msra.mxu0 %v857_v46 }
  0x39   :  { %800 = vmatprep.subr.bf16.mxu0 %v858_v47 }
  0x3c   :  { %801 = vmatpush3.bf16.msra.mxu0 %v858_v47 }
  0x3d   :  { %802 = vmatprep.subr.bf16.mxu0 %v859_v48 }
  0x40   :  { %803 = vmatpush3.bf16.msra.mxu0 %v859_v48 }
  0x43   :  { %805 = vmatmul.mubr.bf16.vlgmr.msra.gmra.mxu0 %v861_v49 }
  0xe3   :  { %v738_v50 = vpop.f32.mrf.mxu0 }
  0xe4   :  { %v766_v51 = vpop.f32.mrf.mxu1 }
  0xe5   :  { %v739_v52 = vpop.f32.mrf.mxu0 }
  0xe6   :  { %v767_v53 = vpop.f32.mrf.mxu1  ;;  %v740_v4 = vadd.f32 %v739_v52, %v738_v50 }
  0xe7   :  { %v741_v54 = vpop.f32.mrf.mxu0  ;;  %v768_v5 = vadd.f32 %v767_v53, %v766_v51 }
  0xe8   :  { %v769_v55 = vpop.f32.mrf.mxu1 }
  0xe9   :  { %v742_v56 = vpop.f32.mrf.mxu0  ;;  %v498_v15 = vadd.f32 %v768_v5, %v740_v4 }
  0xea   :  { %v770_v57 = vpop.f32.mrf.mxu1  ;;  %v743_v12 = vadd.f32 %v742_v56, %v741_v54 }
  0xeb   :  { %v744_v58 = vpop.f32.mrf.mxu0  ;;  %v771_v13 = vadd.f32 %v770_v57, %v769_v55 }
  0xec   :  { %v772_v59 = vpop.f32.mrf.mxu1 }
  0xed   :  { %v745_v60 = vpop.f32.mrf.mxu0  ;;  %v501_v27 = vadd.f32 %v771_v13, %v743_v12 }
  0xee   :  { %v773_v61 = vpop.f32.mrf.mxu1  ;;  %v746_v0 = vadd.f32 %v745_v60, %v744_v58 }
  0xef   :  { %v747_v62 = vpop.f32.mrf.mxu0  ;;  %v774_v1 = vadd.f32 %v773_v61, %v772_v59 }
  0xf0   :  { %v775_v63 = vpop.f32.mrf.mxu1 }
  0xf1   :  { %v748_v2 = vpop.f32.mrf.mxu0  ;;  %v506_v8 = vadd.f32 %v774_v1, %v746_v0 }
  0xf2   :  { %v776_v3 = vpop.f32.mrf.mxu1  ;;  %v749_v6 = vadd.f32 %v748_v2, %v747_v62 }
  0xf3   :  { %v777_v7 = vadd.f32 %v776_v3, %v775_v63 }
  0xf5   :  { %v509_v22 = vadd.f32 %v777_v7, %v749_v6 }
 0x103   :  { %v806_v9 = vpop.f32.mrf.mxu0 }
 0x104   :  { %v555_v14 = vadd.f32 %v806_v9, %v506_v8 }
 0x105   :  { %v546_v17 = vpop.f32.mrf.mxu0 }
 0x106   :  { %v583_v18 = vmul.f32 %v692_v10, %v555_v14  ;;  %v547_v20 = vadd.f32 %v546_v17, %v498_v15 }
 0x107   :  { %v807_v23 = vpop.f32.mrf.mxu0 }
 0x108   :  { %v592_v24 = vadd.f32 %v693_v16, %v583_v18  ;;  %v581_v25 = vmul.f32 %v692_v10, %v547_v20  ;;  %v558_v26 = vadd.f32 %v807_v23, %v509_v22 }
 0x109   :  { %v549_v30 = vpop.f32.mrf.mxu0 }
 0x10a   :  { %v604_v31 = vadd.f32 %v708_v19, %v592_v24  ;;  %v590_v32 = vadd.f32 %v693_v16, %v581_v25  ;;  %v584_v33 = vmul.f32 %v692_v10, %v558_v26  ;;  %v550_v34 = vadd.f32 %v549_v30, %v501_v27 }
 0x10c   :  { %v593_v35 = vadd.f32 %v693_v16, %v584_v33  ;;  %v602_v36 = vadd.f32 %v704_v28, %v590_v32  ;;  %v582_v37 = vmul.f32 %v692_v10, %v550_v34  ;;  %v612_v39 = vmul.f32 0.01, %v604_v31 }
 0x10d   :  { %vm608_vm0 = vcmp.ge.f32.partialorder %v604_v31, 0.0 }
 0x10e   :  { %v605_v40 = vadd.f32 %v709_v29, %v593_v35  ;;  %v591_v41 = vadd.f32 %v693_v16, %v582_v37  ;;  %v610_v43 = vmul.f32 0.01, %v602_v36  ;;  %v616_v45 = vsel %vm608_vm0, %v604_v31, %v612_v39 }
 0x10f   :  { %vm606_vm2 = vcmp.ge.f32.partialorder %v602_v36, 0.0 }
 0x110   :  { %vm609_vm1 = vcmp.ge.f32.partialorder %v605_v40, 0.0  ;;  %v613_v42 = vmul.f32 0.01, %v605_v40  ;;  %v603_v44 = vadd.f32 %v705_v38, %v591_v41  ;;  %v614_v49 = vsel %vm606_vm2, %v602_v36, %v610_v43 }
 0x112   :  { %v617_v46 = vsel %vm609_vm1, %v605_v40, %v613_v42  ;;  %vm607_vm3 = vcmp.ge.f32.partialorder %v603_v44, 0.0  ;;  %v611_v48 = vmul.f32 0.01, %v603_v44 }
 0x113   :  { %v718_v47 = vpack.c.bf16 %v617_v46, %v616_v45 }
 0x114   :  { %v615_v50 = vsel %vm607_vm3, %v603_v44, %v611_v48 }
 0x115   :  { %721 = vst [vmem:[%s1059_s4 + $0x8] sm:$0xff] %v718_v47   ;;  %v713_v51 = vpack.c.bf16 %v615_v50, %v614_v49 }
 0x117   :  { %714 = vst [vmem:[%s1059_s4] sm:$0xff] %v713_v51  }

// kernel: a_call__.18
= control target key start
LH: loop header
LB: loop body
LE: loop exit
PB: predicated region body
PF: predicated region fallthrough
CT: control target
= control target key end

     0   :  { %v676_v36 = vmov 0.0   ;;  %vm677_vm0 = vmmov 0   ;;  %s836_s1 = inlined_call_operand.vmem [shape: bf16[640,128], index: 1, kind: input, shape index: {}]   ;;  %s837_s0 = inlined_call_operand.vmem [shape: bf16[8,640], index: 0, kind: input, shape index: {}]   ;;  %s838_s2 = inlined_call_operand.vmem [shape: f32[2,128], index: 2, kind: input, shape index: {}]   ;;  %s839_s3 = inlined_call_operand.vmem [shape: bf16[8,128], index: 3, kind: output, shape index: {}]  }
   0x1   :  { %v631_v0 = vld [vmem:[%s836_s1 + $0x78] sm:$0xff]   ;;  %v635_v4 = vld [vmem:[%s836_s1 + $0x70] sm:$0xff]   ;;  %v639_v8 = vld [vmem:[%s836_s1 + $0x68] sm:$0xff]  }
   0x2   :  { %v632_v1 = vld [vmem:[%s836_s1 + $0xf8] sm:$0xff]   ;;  %556 = vmatprep.subr.bf16.mxu0 %v631_v0  ;;  %v636_v5 = vld [vmem:[%s836_s1 + $0xf0] sm:$0xff]   ;;  %v640_v9 = vld [vmem:[%s836_s1 + $0xe8] sm:$0xff]  }
   0x3   :  { %v633_v2 = vld [vmem:[%s836_s1 + $0x38] sm:$0xff]   ;;  %578 = vmatprep.subr.bf16.mxu1 %v632_v1  ;;  %v637_v6 = vld [vmem:[%s836_s1 + $0x30] sm:$0xff]   ;;  %v641_v10 = vld [vmem:[%s836_s1 + $0x28] sm:$0xff]  }
   0x4   :  { %v634_v3 = vld [vmem:[%s836_s1 + $0xb8] sm:$0xff]   ;;  %557 = vmatpush3.bf16.msra.mxu0 %v633_v2  ;;  %v638_v7 = vld [vmem:[%s836_s1 + $0xb0] sm:$0xff]   ;;  %v642_v11 = vld [vmem:[%s836_s1 + $0xa8] sm:$0xff]  }
   0x5   :  { %579 = vmatpush3.bf16.msra.mxu1 %v634_v3  ;;  %558 = vmatprep.subr.bf16.mxu0 %v635_v4  ;;  %v643_v12 = vld [vmem:[%s836_s1 + $0x60] sm:$0xff]   ;;  %v647_v16 = vld [vmem:[%s836_s1 + $0x58] sm:$0xff]   ;;  %v651_v20 = vld [vmem:[%s836_s1 + $0x50] sm:$0xff]  }
   0x6   :  { %580 = vmatprep.subr.bf16.mxu1 %v636_v5  ;;  %v644_v13 = vld [vmem:[%s836_s1 + $0xe0] sm:$0xff]   ;;  %v648_v17 = vld [vmem:[%s836_s1 + $0xd8] sm:$0xff]   ;;  %v652_v21 = vld [vmem:[%s836_s1 + $0xd0] sm:$0xff]  }
   0x7   :  { %v645_v14 = vld [vmem:[%s836_s1 + $0x20] sm:$0xff]   ;;  %v649_v18 = vld [vmem:[%s836_s1 + $0x18] sm:$0xff]   ;;  %v653_v22 = vld [vmem:[%s836_s1 + $0x10] sm:$0xff]  }
   0x8   :  { %559 = vmatpush3.bf16.msra.mxu0 %v637_v6  ;;  %v646_v15 = vld [vmem:[%s836_s1 + $0xa0] sm:$0xff]   ;;  %v650_v19 = vld [vmem:[%s836_s1 + $0x98] sm:$0xff]   ;;  %v654_v23 = vld [vmem:[%s836_s1 + $0x90] sm:$0xff]  }
   0x9   :  { %581 = vmatpush3.bf16.msra.mxu1 %v638_v7  ;;  %560 = vmatprep.subr.bf16.mxu0 %v639_v8  ;;  %v655_v24 = vld [vmem:[%s836_s1 + $0x48] sm:$0xff]   ;;  %v659_v28 = vld [vmem:[%s836_s1 + $0x40] sm:$0xff]   ;;  %v668_v39 = vld [vmem:[%s836_s1 + $0x138] sm:$0xff]  }
   0xa   :  { %582 = vmatprep.subr.bf16.mxu1 %v640_v9  ;;  %v656_v25 = vld [vmem:[%s836_s1 + $0xc8] sm:$0xff]   ;;  %v660_v29 = vld [vmem:[%s836_s1 + $0xc0] sm:$0xff]   ;;  %v669_v40 = vld [vmem:[%s836_s1 + $0x130] sm:$0xff]  }
   0xb   :  { %v657_v26 = vld [vmem:[%s836_s1 + $0x8] sm:$0xff]   ;;  %v661_v30 = vld [vmem:[%s836_s1] sm:$0xff]   ;;  %v672_v43 = vld [vmem:[%s836_s1 + $0x118] sm:$0xff]  }
   0xc   :  { %561 = vmatpush3.bf16.msra.mxu0 %v641_v10  ;;  %v658_v27 = vld [vmem:[%s836_s1 + $0x88] sm:$0xff]   ;;  %v662_v31 = vld [vmem:[%s836_s1 + $0x80] sm:$0xff]   ;;  %v673_v44 = vld [vmem:[%s836_s1 + $0x110] sm:$0xff]  }
   0xd   :  { %583 = vmatpush3.bf16.msra.mxu1 %v642_v11  ;;  %562 = vmatprep.subr.bf16.mxu0 %v643_v12  ;;  %v21_v32 = vld [vmem:[%s837_s0] sm:$0xff]  ;;  %v22_v35 = vld [vmem:[%s837_s0 + $0x8] sm:$0xff]  ;;  %v665_v47 = vld [vmem:[%s837_s0 + $0x10] ss:$0 sps:$4 sm:$0xff]  }
   0xe   :  { %584 = vmatprep.subr.bf16.mxu1 %v644_v13  ;;  %v509_v33 = vcombine.low %v21_v32, %v21_v32  ;;  %v510_v34 = vcombine.high %v21_v32, %v21_v32  ;;  %v511_v37 = vcombine.low %v22_v35, %v22_v35  ;;  %v512_v38 = vcombine.high %v22_v35, %v22_v35  ;;  %v670_v41 = vld [vmem:[%s836_s1 + $0x128] sm:$0xff]   ;;  %v671_v42 = vld [vmem:[%s836_s1 + $0x120] sm:$0xff]  }
   0xf   :  { %v674_v45 = vld [vmem:[%s836_s1 + $0x108] sm:$0xff]   ;;  %v675_v46 = vld [vmem:[%s836_s1 + $0x100] sm:$0xff]  }
  0x10   :  { %563 = vmatpush3.bf16.msra.mxu0 %v645_v14  ;;  %394 = vmatprep.mubr.bf16.mxu0 %v510_v34  ;;  %v554_v60 = vld [vmem:[%s838_s2] ss:$0 sm:$0xff]  ;;  %v555_v62 = vld [vmem:[%s838_s2 + $0x1] ss:$0 sm:$0xff] }
  0x11   :  { %585 = vmatpush3.bf16.msra.mxu1 %v646_v15  ;;  %564 = vmatprep.subr.bf16.mxu0 %v647_v16 }
  0x12   :  { %586 = vmatprep.subr.bf16.mxu1 %v648_v17  ;;  %434 = vmatprep.mubr.bf16.mxu1 %v512_v38 }
  0x14   :  { %565 = vmatpush3.bf16.msra.mxu0 %v649_v18 }
  0x15   :  { %587 = vmatpush3.bf16.msra.mxu1 %v650_v19  ;;  %566 = vmatprep.subr.bf16.mxu0 %v651_v20 }
  0x16   :  { %588 = vmatprep.subr.bf16.mxu1 %v652_v21 }
  0x18   :  { %567 = vmatpush3.bf16.msra.mxu0 %v653_v22 }
  0x19   :  { %589 = vmatpush3.bf16.msra.mxu1 %v654_v23  ;;  %568 = vmatprep.subr.bf16.mxu0 %v655_v24 }
  0x1a   :  { %590 = vmatprep.subr.bf16.mxu1 %v656_v25 }
  0x1c   :  { %569 = vmatpush3.bf16.msra.mxu0 %v657_v26 }
  0x1d   :  { %591 = vmatpush3.bf16.msra.mxu1 %v658_v27  ;;  %570 = vmatprep.subr.bf16.mxu0 %v659_v28 }
  0x1e   :  { %592 = vmatprep.subr.bf16.mxu1 %v660_v29 }
  0x20   :  { %571 = vmatpush3.bf16.msra.mxu0 %v661_v30 }
  0x21   :  { %593 = vmatpush3.bf16.msra.mxu1 %v662_v31  ;;  %609 = vmatprep.subr.bf16.mxu0 %v676_v36 }
  0x23   :  { %395 = vmatmul.mubr.bf16.vlgmr.msra.gmra.mxu0 %v509_v33 }
  0x24   :  { %435 = vmatmul.mubr.bf16.vlgmr.msra.gmra.mxu1 %v511_v37  ;;  %610 = vmatpush3.bf16.msra.mxu0 %v668_v39 }
  0x25   :  { %611 = vmatprep.subr.bf16.mxu0 %v676_v36  ;;  %625 = vmatprep.mubr.msk.bf16.mxu0 %vm677_vm0, %v676_v36 }
  0x28   :  { %612 = vmatpush3.bf16.msra.mxu0 %v669_v40 }
  0x29   :  { %613 = vmatprep.subr.bf16.mxu0 %v676_v36 }
  0x2c   :  { %614 = vmatpush3.bf16.msra.mxu0 %v670_v41 }
  0x2d   :  { %615 = vmatprep.subr.bf16.mxu0 %v676_v36 }
  0x30   :  { %616 = vmatpush3.bf16.msra.mxu0 %v671_v42 }
  0x31   :  { %617 = vmatprep.subr.bf16.mxu0 %v676_v36 }
  0x34   :  { %618 = vmatpush3.bf16.msra.mxu0 %v672_v43 }
  0x35   :  { %619 = vmatprep.subr.bf16.mxu0 %v676_v36 }
  0x38   :  { %620 = vmatpush3.bf16.msra.mxu0 %v673_v44 }
  0x39   :  { %621 = vmatprep.subr.bf16.mxu0 %v676_v36 }
  0x3c   :  { %622 = vmatpush3.bf16.msra.mxu0 %v674_v45 }
  0x3d   :  { %623 = vmatprep.subr.bf16.mxu0 %v676_v36 }
  0x40   :  { %624 = vmatpush3.bf16.msra.mxu0 %v675_v46 }
  0x43   :  { %626 = vmatmul.mubr.bf16.vlgmr.msra.gmra.mxu0 %v665_v47 }
  0xe3   :  { %v572_v48 = vpop.f32.mrf.mxu0 }
  0xe4   :  { %v594_v49 = vpop.f32.mrf.mxu1 }
  0xe5   :  { %v573_v50 = vpop.f32.mrf.mxu0 }
  0xe6   :  { %v595_v51 = vpop.f32.mrf.mxu1  ;;  %v574_v56 = vadd.f32 %v573_v50, %v572_v48 }
  0xe7   :  { %v575_v52 = vpop.f32.mrf.mxu0  ;;  %v596_v57 = vadd.f32 %v595_v51, %v594_v49 }
  0xe8   :  { %v597_v53 = vpop.f32.mrf.mxu1 }
  0xe9   :  { %v576_v54 = vpop.f32.mrf.mxu0  ;;  %v437_v58 = vadd.f32 %v596_v57, %v574_v56 }
  0xea   :  { %v598_v55 = vpop.f32.mrf.mxu1 }
 0x103   :  { %v476_v59 = vpop.f32.mrf.mxu0 }
 0x104   :  { %v477_v61 = vadd.f32 %v476_v59, %v437_v58 }
 0x105   :  { %v627_v63 = vpop.f32.mrf.mxu0 }
 0x106   :  { %v493_v0 = vmul.f32 %v554_v60, %v477_v61 }
 0x107   :  { %v479_v1 = vpop.f32.mrf.mxu0 }
 0x108   :  { %v499_v2 = vadd.f32 %v555_v62, %v493_v0 }
 0x109   :  { %v628_v3 = vpop.f32.mrf.mxu0 }
 0x10a   :  { %vm500_vm1 = vcmp.ge.f32.partialorder %v499_v2, 0.0  ;;  %v501_v4 = vmul.f32 0.01, %v499_v2 }
 0x10c   :  { %v502_v5 = vsel %vm500_vm1, %v499_v2, %v501_v4 }
 0x10d   :  { %v503_v6 = vpack.c.bf16 %v502_v5, %v502_v5 }
 0x10f   :  { %504 = vst [vmem:[%s839_s3] sm:$0xf] %v503_v6 }

// kernel: a_call__.19
= control target key start
LH: loop header
LB: loop body
LE: loop exit
PB: predicated region body
PF: predicated region fallthrough
CT: control target
= control target key end

     0   :  { %s961_s15 = smov 0   ;;  %s963_s16 = smov 0   ;;  %s1042_s0 = inlined_call_operand.vmem [shape: bf16[8,1152], index: 0, kind: input, shape index: {}]   ;;  %s1043_s1 = inlined_call_operand.vmem [shape: bf16[1152,128], index: 1, kind: input, shape index: {}]   ;;  %s1044_s2 = inlined_call_operand.vmem [shape: f32[2,128], index: 2, kind: input, shape index: {}]   ;;  %s1045_s3 = inlined_call_operand.vmem [shape: bf16[8,128], index: 3, kind: input, shape index: {}]   ;;  %s1046_s4 = inlined_call_operand.vmem [shape: bf16[8,128], index: 4, kind: output, shape index: {}]  }
   0x1   :  { %s965_s17 = smov 0  }
   0x2 LB: > { %s26_s18 = sadd.s32 1, %s927_s16  ;;  %p767_p0 = scmp.ge.s32.totalorder %s931_s17, 1  ;;  %s931_s17 = sphi %s965_s17, %s14_s17   ;;  %s927_s16 = sphi %s963_s16, %s1048_s16   ;;  %s923_s15 = sphi %s961_s15, %s1047_s15  }
   0x3   : > { %p27_p1 = scmp.ge.s32.totalorder %s26_s18, 3  ;;  %p229_p2 = scmp.lt.s32.totalorder %s931_s17, 4 }
   0x5   : > { %s1050_s18 = smov (%p27_p1, %s26_s18), 0  ;;  %p230_p3 = pnand %p767_p0, %p229_p2 }
   0x6   : > { %s280_s19 = smul.u32 (!%p230_p3), 3, %s923_s15  ;;  %p770_p6 = scmp.ne.s32.totalorder (!%p230_p3), %s923_s15, 0 }
   0x7   : > { %233 = sbr.rel (%p230_p3) target bundleno = 277 (0x115), region = 36 }
   0x8   : > { %s290_s20 = smul.u32 (!%p230_p3), 48, %s923_s15  ;;  %p283_p4 = scmp.lt.s32.totalorder (!%p230_p3), %s280_s19, 8 }
   0xa   : > { %p291_p5 = scmp.lt.s32.totalorder (!%p230_p3), %s290_s20, 143 }
   0xc   : > { %s1052_s19 = smov (!%p283_p4, %s280_s19), 8  ;;  %s1054_s20 = smov (!%p291_p5, %s290_s20), 143 }
   0xd   : > { %s768_s21 = sshll.u32 %s1052_s19, 2  ;;  %s769_s25 = sshll.u32 %s1054_s20, 2 }
   0xe   : > { %s986_s24 = scalar_lea.vmem %s1042_s0, %s768_s21  ;;  %s991_s28 = scalar_lea.vmem %s1043_s1, %s769_s25 }
   0xf   : > { %321 = sbr.rel (%p770_p6) target bundleno = 22 (0x16), region = 40 }
  0x14   : > { %v933_v0 = vmov 0.0  }
  0x15   : > { %322 = vst [vmem:[#allocation2] sm:$0xff] %v933_v0 }
  0x16 PF: > { %v882_v1 = vld [vmem:[%s991_s28 + $0x78] sm:$0xff]   ;;  %v934_v2 = vmov 0.0   ;;  %vm935_vm0 = vmmov 0   ;;  %v885_v5 = vld [vmem:[%s991_s28 + $0x70] sm:$0xff]   ;;  %v888_v8 = vld [vmem:[%s991_s28 + $0x68] sm:$0xff]   ;;  %p798_p7 = scmp.ne.s32.totalorder %s923_s15, 2 }
  0x17   : > { %835 = vmatprep.subr.bf16.mxu1 %v934_v2  ;;  %v883_v3 = vld [vmem:[%s991_s28 + $0xb8] sm:$0xff]   ;;  %804 = vmatprep.subr.bf16.mxu0 %v882_v1  ;;  %v886_v6 = vld [vmem:[%s991_s28 + $0xb0] sm:$0xff]   ;;  %v889_v9 = vld [vmem:[%s991_s28 + $0xa8] sm:$0xff]  }
  0x18   : > { %v884_v4 = vld [vmem:[%s991_s28 + $0x38] sm:$0xff]   ;;  %851 = vmatprep.mubr.msk.bf16.mxu1 %vm935_vm0, %v934_v2  ;;  %836 = vmatpush3.bf16.msra.mxu1 %v883_v3  ;;  %v887_v7 = vld [vmem:[%s991_s28 + $0x30] sm:$0xff]   ;;  %v890_v10 = vld [vmem:[%s991_s28 + $0x28] sm:$0xff]  }
  0x19   : > { %805 = vmatpush3.bf16.msra.mxu0 %v884_v4  ;;  %837 = vmatprep.subr.bf16.mxu1 %v934_v2  ;;  %v891_v11 = vld [vmem:[%s991_s28 + $0x60] sm:$0xff]   ;;  %v894_v14 = vld [vmem:[%s991_s28 + $0x58] sm:$0xff]   ;;  %v897_v17 = vld [vmem:[%s991_s28 + $0x50] sm:$0xff]  }
  0x1a   : > { %806 = vmatprep.subr.bf16.mxu0 %v885_v5  ;;  %v892_v12 = vld [vmem:[%s991_s28 + $0xa0] sm:$0xff]   ;;  %v895_v15 = vld [vmem:[%s991_s28 + $0x98] sm:$0xff]   ;;  %v898_v18 = vld [vmem:[%s991_s28 + $0x90] sm:$0xff]  }
  0x1b   : > { %v893_v13 = vld [vmem:[%s991_s28 + $0x20] sm:$0xff]   ;;  %v896_v16 = vld [vmem:[%s991_s28 + $0x18] sm:$0xff]   ;;  %v899_v19 = vld [vmem:[%s991_s28 + $0x10] sm:$0xff]  }
  0x1c   : > { %838 = vmatpush3.bf16.msra.mxu1 %v886_v6  ;;  %v900_v20 = vld [vmem:[%s991_s28 + $0x48] sm:$0xff]   ;;  %v324_v23 = vld [vmem:[%s986_s24] sm:$0xff] }
  0x1d   : > { %807 = vmatpush3.bf16.msra.mxu0 %v887_v7  ;;  %839 = vmatprep.subr.bf16.mxu1 %v934_v2  ;;  %v901_v21 = vld [vmem:[%s991_s28 + $0x88] sm:$0xff]   ;;  %v903_v24 = vld [vmem:[%s991_s28 + $0x40] sm:$0xff]   ;;  %v772_v25 = vcombine.high %v324_v23, %v324_v23  ;;  %v771_v29 = vcombine.low %v324_v23, %v324_v23 }
  0x1e   : > { %808 = vmatprep.subr.bf16.mxu0 %v888_v8  ;;  %v902_v22 = vld [vmem:[%s991_s28 + $0x8] sm:$0xff]   ;;  %v904_v26 = vld [vmem:[%s991_s28 + $0x80] sm:$0xff]  }
  0x1f   : > { %561 = vmatprep.mubr.bf16.mxu0 %v772_v25  ;;  %v905_v27 = vld [vmem:[%s991_s28] sm:$0xff]   ;;  %v908_v28 = vld [vmem:[%s986_s24 + $0x8] ss:$0 sps:$4 sm:$0xff]  }
  0x20   : > { %840 = vmatpush3.bf16.msra.mxu1 %v889_v9  ;;  %v323_v36 = vld [vmem:[#allocation2] sm:$0xff] }
  0x21   : > { %809 = vmatpush3.bf16.msra.mxu0 %v890_v10  ;;  %841 = vmatprep.subr.bf16.mxu1 %v934_v2 }
  0x22   : > { %810 = vmatprep.subr.bf16.mxu0 %v891_v11 }
  0x24   : > { %842 = vmatpush3.bf16.msra.mxu1 %v892_v12 }
  0x25   : > { %811 = vmatpush3.bf16.msra.mxu0 %v893_v13  ;;  %843 = vmatprep.subr.bf16.mxu1 %v934_v2 }
  0x26   : > { %812 = vmatprep.subr.bf16.mxu0 %v894_v14 }
  0x28   : > { %844 = vmatpush3.bf16.msra.mxu1 %v895_v15 }
  0x29   : > { %813 = vmatpush3.bf16.msra.mxu0 %v896_v16  ;;  %845 = vmatprep.subr.bf16.mxu1 %v934_v2 }
  0x2a   : > { %814 = vmatprep.subr.bf16.mxu0 %v897_v17 }
  0x2c   : > { %846 = vmatpush3.bf16.msra.mxu1 %v898_v18 }
  0x2d   : > { %815 = vmatpush3.bf16.msra.mxu0 %v899_v19  ;;  %847 = vmatprep.subr.bf16.mxu1 %v934_v2 }
  0x2e   : > { %816 = vmatprep.subr.bf16.mxu0 %v900_v20 }
  0x30   : > { %848 = vmatpush3.bf16.msra.mxu1 %v901_v21 }
  0x31   : > { %817 = vmatpush3.bf16.msra.mxu0 %v902_v22  ;;  %849 = vmatprep.subr.bf16.mxu1 %v934_v2 }
  0x32   : > { %818 = vmatprep.subr.bf16.mxu0 %v903_v24 }
  0x34   : > { %850 = vmatpush3.bf16.msra.mxu1 %v904_v26 }
  0x35   : > { %819 = vmatpush3.bf16.msra.mxu0 %v905_v27 }
  0x37   : > { %852 = vmatmul.mubr.bf16.vlgmr.msra.gmra.mxu1 %v908_v28 }
  0x38   : > { %562 = vmatmul.mubr.bf16.vlgmr.msra.gmra.mxu0 %v771_v29 }
  0xf7   : > { %v603_v30 = vpop.f32.mrf.mxu1 }
  0xf8   : > { %v820_v31 = vpop.f32.mrf.mxu0 }
  0xf9   : > { %v853_v32 = vpop.f32.mrf.mxu1 }
  0xfa   : > { %v821_v33 = vpop.f32.mrf.mxu0 }
  0xfb   : > { %v822_v34 = vadd.f32 %v821_v33, %v820_v31  ;;  %v606_v35 = vpop.f32.mrf.mxu1 }
  0xfc   : > { %v823_v37 = vpop.f32.mrf.mxu0 }
  0xfd   : > { %v604_v38 = vadd.f32 %v822_v34, %v603_v30  ;;  %v854_v39 = vpop.f32.mrf.mxu1  ;;  %614 = sbr.rel (%p798_p7) target bundleno = 277 (0x115), region = 44 }
  0xfe   : > { %v824_v40 = vpop.f32.mrf.mxu0 }
  0xff   : > { %v609_v41 = vadd.f32 %v604_v38, %v323_v36 }
 0x101   : > { %610 = vst [vmem:[#allocation2] sm:$0xff] %v609_v41 }
 0x102   : > { %v799_v43 = vld [vmem:[%s1044_s2] ss:$0 sm:$0xff]  ;;  %v800_v44 = vld [vmem:[%s1044_s2 + $0x1] ss:$0 sm:$0xff] }
 0x103   : > { %v628_v46 = vld [vmem:[%s1045_s3] sm:$0xf] }
 0x104   : > { %v629_v47 = vunpack.c.l.bf16 %v628_v46 }
 0x108   : > { %v615_v42 = vld [vmem:[#allocation2] sm:$0xff] }
 0x109   : > { %v621_v45 = vmul.f32 %v799_v43, %v615_v42 }
 0x10b   : > { %v627_v48 = vadd.f32 %v800_v44, %v621_v45 }
 0x10d   : > { %v630_v49 = vadd.f32 %v629_v47, %v627_v48 }
 0x10f   : > { %vm631_vm1 = vcmp.ge.f32.partialorder %v630_v49, 0.0  ;;  %v632_v50 = vmul.f32 0.01, %v630_v49 }
 0x111   : > { %v633_v51 = vsel %vm631_vm1, %v630_v49, %v632_v50 }
 0x112   : > { %v634_v52 = vpack.c.bf16 %v633_v51, %v633_v51 }
 0x114   : > { %635 = vst [vmem:[%s1046_s4] sm:$0xf] %v634_v52 }
 0x115 PF: > { %s14_s17 = sadd.s32 1, %s931_s17   ;;  %s1047_s15 = smov %s927_s16 }
 0x116   : > { %p11_p8 = scmp.ge.s32.totalorder %s14_s17, 5   ;;  %s1048_s16 = smov %s1050_s18 }
 0x118   :  { %13 = sbr.rel (!%p11_p8) target bundleno = 2 (0x2), region = 83 }

// kernel: a_call__.17
= control target key start
LH: loop header
LB: loop body
LE: loop exit
PB: predicated region body
PF: predicated region fallthrough
CT: control target
= control target key end

     0   :  { %v199_v0 = vmov 0.0   ;;  %vm200_vm0 = vmmov 0   ;;  %s257_s1 = inlined_call_operand.vmem [shape: bf16[128,128], index: 1, kind: input, shape index: {}]   ;;  %s258_s0 = inlined_call_operand.vmem [shape: bf16[8,128], index: 0, kind: input, shape index: {}]   ;;  %s259_s2 = inlined_call_operand.vmem [shape: f32[2,128], index: 2, kind: input, shape index: {}]   ;;  %s260_s3 = inlined_call_operand.vmem [shape: bf16[8,128], index: 3, kind: output, shape index: {}]  }
   0x1   :  { %169 = vmatprep.subr.bf16.mxu0 %v199_v0  ;;  %v191_v1 = vld [vmem:[%s257_s1 + $0x38] sm:$0xff]   ;;  %185 = vmatprep.mubr.msk.bf16.mxu0 %vm200_vm0, %v199_v0  ;;  %v192_v2 = vld [vmem:[%s257_s1 + $0x30] sm:$0xff]   ;;  %v193_v3 = vld [vmem:[%s257_s1 + $0x28] sm:$0xff]  }
   0x2   :  { %170 = vmatpush3.bf16.msra.mxu0 %v191_v1  ;;  %v194_v4 = vld [vmem:[%s257_s1 + $0x20] sm:$0xff]   ;;  %v195_v5 = vld [vmem:[%s257_s1 + $0x18] sm:$0xff]   ;;  %v196_v6 = vld [vmem:[%s257_s1 + $0x10] sm:$0xff]  }
   0x3   :  { %171 = vmatprep.subr.bf16.mxu0 %v199_v0  ;;  %v197_v7 = vld [vmem:[%s257_s1 + $0x8] sm:$0xff]   ;;  %v198_v8 = vld [vmem:[%s257_s1] sm:$0xff]  }
   0x4   :  { %v21_v9 = vld [vmem:[%s258_s0] sm:$0xf] }
   0x5   :  { %v158_v10 = vld [vmem:[%s259_s2] ss:$0 sm:$0xff]  ;;  %v159_v12 = vld [vmem:[%s259_s2 + $0x1] ss:$0 sm:$0xff] }
   0x6   :  { %172 = vmatpush3.bf16.msra.mxu0 %v192_v2 }
   0x7   :  { %173 = vmatprep.subr.bf16.mxu0 %v199_v0 }
   0xa   :  { %174 = vmatpush3.bf16.msra.mxu0 %v193_v3 }
   0xb   :  { %175 = vmatprep.subr.bf16.mxu0 %v199_v0 }
   0xe   :  { %176 = vmatpush3.bf16.msra.mxu0 %v194_v4 }
   0xf   :  { %177 = vmatprep.subr.bf16.mxu0 %v199_v0 }
  0x12   :  { %178 = vmatpush3.bf16.msra.mxu0 %v195_v5 }
  0x13   :  { %179 = vmatprep.subr.bf16.mxu0 %v199_v0 }
  0x16   :  { %180 = vmatpush3.bf16.msra.mxu0 %v196_v6 }
  0x17   :  { %181 = vmatprep.subr.bf16.mxu0 %v199_v0 }
  0x1a   :  { %182 = vmatpush3.bf16.msra.mxu0 %v197_v7 }
  0x1b   :  { %183 = vmatprep.subr.bf16.mxu0 %v199_v0 }
  0x1e   :  { %184 = vmatpush3.bf16.msra.mxu0 %v198_v8 }
  0x21   :  { %186 = vmatmul.mubr.bf16.vlgmr.msra.gmra.mxu0 %v21_v9 }
  0xe1   :  { %v120_v11 = vpop.f32.mrf.mxu0 }
  0xe2   :  { %v137_v13 = vmul.f32 %v158_v10, %v120_v11 }
  0xe3   :  { %v187_v14 = vpop.f32.mrf.mxu0 }
  0xe4   :  { %v143_v15 = vadd.f32 %v159_v12, %v137_v13 }
  0xe5   :  { %v123_v16 = vpop.f32.mrf.mxu0 }
  0xe6   :  { %v144_v17 = vpack.c.bf16 %v143_v15, %v143_v15 }
  0xe7   :  { %v188_v18 = vpop.f32.mrf.mxu0 }
  0xe8   :  { %145 = vst [vmem:[%s260_s3] sm:$0xf] %v144_v17 }

// kernel: a_call__.21
= control target key start
LH: loop header
LB: loop body
LE: loop exit
PB: predicated region body
PF: predicated region fallthrough
CT: control target
= control target key end

     0   :  { %s1062_s12 = smov 0   ;;  %s1064_s13 = smov 0   ;;  %s1164_s0 = inlined_call_operand.vmem [shape: bf16[8,1152], index: 0, kind: input, shape index: {}]   ;;  %s1165_s1 = inlined_call_operand.vmem [shape: bf16[1152,256], index: 1, kind: input, shape index: {}]   ;;  %s1166_s2 = inlined_call_operand.vmem [shape: f32[2,256], index: 2, kind: input, shape index: {}]   ;;  %s1167_s3 = inlined_call_operand.vmem [shape: bf16[8,256], index: 3, kind: output, shape index: {}]  }
   0x1   :  { %s1066_s14 = smov 0  }
   0x2 LB: > { %s25_s15 = sadd.s32 1, %s1034_s13  ;;  %p850_p0 = scmp.ge.s32.totalorder %s1038_s14, 1  ;;  %s1038_s14 = sphi %s1066_s14, %s13_s14   ;;  %s1034_s13 = sphi %s1064_s13, %s1169_s13   ;;  %s1030_s12 = sphi %s1062_s12, %s1168_s12  }
   0x3   : > { %p26_p1 = scmp.ge.s32.totalorder %s25_s15, 3  ;;  %p195_p2 = scmp.lt.s32.totalorder %s1038_s14, 4 }
   0x5   : > { %s1171_s15 = smov (%p26_p1, %s25_s15), 0  ;;  %p196_p3 = pnand %p850_p0, %p195_p2 }
   0x6   : > { %s242_s16 = smul.u32 (!%p196_p3), 3, %s1030_s12  ;;  %p854_p6 = scmp.ne.s32.totalorder (!%p196_p3), %s1030_s12, 0 }
   0x7   : > { %199 = sbr.rel (%p196_p3) target bundleno = 305 (0x131), region = 32 }
   0x8   : > { %s252_s17 = smul.u32 (!%p196_p3), 48, %s1030_s12  ;;  %p245_p4 = scmp.lt.s32.totalorder (!%p196_p3), %s242_s16, 8 }
   0xa   : > { %p254_p5 = scmp.lt.s32.totalorder (!%p196_p3), %s252_s17, 143 }
   0xc   : > { %s1173_s16 = smov (!%p245_p4, %s242_s16), 8  ;;  %s1175_s17 = smov (!%p254_p5, %s252_s17), 143 }
   0xd   : > { %s851_s18 = sshll.u32 %s1173_s16, 2  ;;  %s913_s22 = sshll.u32 %s1175_s17, 3 }
   0xe   : > { %s1087_s21 = scalar_lea.vmem %s1164_s0, %s851_s18  ;;  %s1092_s25 = scalar_lea.vmem %s1165_s1, %s913_s22 }
   0xf   : > { %284 = sbr.rel (%p854_p6) target bundleno = 22 (0x16), region = 36 }
  0x14   : > { %v1040_v0 = vmov 0.0  }
  0x15   : > { %285 = vst [vmem:[#allocation2] sm:$0xff] %v1040_v0  ;;  %286 = vst [vmem:[#allocation2 + $0x8] sm:$0xff] %v1040_v0 }
  0x16 PF: > { %v941_v1 = vld [vmem:[%s1092_s25 + $0x74] ss:$8 sps:$4 sm:$0xff]   ;;  %v943_v2 = vld [vmem:[%s1092_s25 + $0x70] ss:$8 sps:$4 sm:$0xff]   ;;  %v1041_v3 = vmov 0   ;;  %v289_v34 = vld [vmem:[%s1087_s21] sm:$0xff] }
  0x17   : > { %663 = vmatprep.mubr.bf16.mxu1 %v1041_v3  ;;  %590 = vmatprep.subr.bf16.mxu0 %v941_v1  ;;  %v944_v4 = vld [vmem:[%s1092_s25 + $0x64] ss:$8 sps:$4 sm:$0xff]   ;;  %v946_v5 = vld [vmem:[%s1092_s25 + $0x60] ss:$8 sps:$4 sm:$0xff]   ;;  %v947_v6 = vld [vmem:[%s1092_s25 + $0x54] ss:$8 sps:$4 sm:$0xff]   ;;  %v856_v36 = vcombine.high %v289_v34, %v289_v34  ;;  %v855_v53 = vcombine.low %v289_v34, %v289_v34 }
  0x18   : > { %591 = vmatpush1.bf16.msra.mxu0 %v943_v2  ;;  %v949_v7 = vld [vmem:[%s1092_s25 + $0x50] ss:$8 sps:$4 sm:$0xff]   ;;  %v950_v8 = vld [vmem:[%s1092_s25 + $0x44] ss:$8 sps:$4 sm:$0xff]   ;;  %v962_v9 = vld [vmem:[%s1092_s25 + $0x174] ss:$8 sps:$4 sm:$0xff]  }
  0x19   : > { %592 = vmatprep.subr.bf16.mxu0 %v944_v4  ;;  %v964_v10 = vld [vmem:[%s1092_s25 + $0x170] ss:$8 sps:$4 sm:$0xff]   ;;  %v952_v11 = vld [vmem:[%s1092_s25 + $0x40] ss:$8 sps:$4 sm:$0xff]   ;;  %v953_v12 = vld [vmem:[%s1092_s25 + $0x34] ss:$8 sps:$4 sm:$0xff]   ;;  %631 = vmatprep.subr.bf16.mxu1 %v962_v9 }
  0x1a   : > { %v968_v13 = vld [vmem:[%s1092_s25 + $0x164] ss:$8 sps:$4 sm:$0xff]   ;;  %632 = vmatpush1.bf16.msra.mxu1 %v964_v10  ;;  %v970_v14 = vld [vmem:[%s1092_s25 + $0x160] ss:$8 sps:$4 sm:$0xff]   ;;  %v955_v15 = vld [vmem:[%s1092_s25 + $0x30] ss:$8 sps:$4 sm:$0xff]   ;;  %622 = vmatprep.mubr.bf16.mxu0 %v856_v36 }
  0x1b   : > { %633 = vmatprep.subr.bf16.mxu1 %v968_v13  ;;  %v974_v16 = vld [vmem:[%s1092_s25 + $0x154] ss:$8 sps:$4 sm:$0xff]   ;;  %v956_v17 = vld [vmem:[%s1092_s25 + $0x24] ss:$8 sps:$4 sm:$0xff]   ;;  %v976_v18 = vld [vmem:[%s1092_s25 + $0x150] ss:$8 sps:$4 sm:$0xff]  }
  0x1c   : > { %593 = vmatpush1.bf16.msra.mxu0 %v946_v5  ;;  %v980_v19 = vld [vmem:[%s1092_s25 + $0x144] ss:$8 sps:$4 sm:$0xff]   ;;  %v958_v20 = vld [vmem:[%s1092_s25 + $0x20] ss:$8 sps:$4 sm:$0xff]   ;;  %v959_v21 = vld [vmem:[%s1092_s25 + $0x14] ss:$8 sps:$4 sm:$0xff]  }
  0x1d   : > { %594 = vmatprep.subr.bf16.mxu0 %v947_v6  ;;  %v982_v22 = vld [vmem:[%s1092_s25 + $0x140] ss:$8 sps:$4 sm:$0xff]   ;;  %v986_v23 = vld [vmem:[%s1092_s25 + $0x134] ss:$8 sps:$4 sm:$0xff]   ;;  %v961_v24 = vld [vmem:[%s1092_s25 + $0x10] ss:$8 sps:$4 sm:$0xff]  }
  0x1e   : > { %634 = vmatpush1.bf16.msra.mxu1 %v970_v14  ;;  %v965_v25 = vld [vmem:[%s1092_s25 + $0x4] ss:$8 sps:$4 sm:$0xff]   ;;  %v988_v26 = vld [vmem:[%s1092_s25 + $0x130] ss:$8 sps:$4 sm:$0xff]   ;;  %v967_v28 = vld [vmem:[%s1092_s25] ss:$8 sps:$4 sm:$0xff]  }
  0x1f   : > { %635 = vmatprep.subr.bf16.mxu1 %v974_v16  ;;  %v992_v27 = vld [vmem:[%s1092_s25 + $0x124] ss:$8 sps:$4 sm:$0xff]   ;;  %v971_v29 = vld [vmem:[%s1092_s25 + $0xf4] ss:$8 sps:$4 sm:$0xff]   ;;  %v994_v30 = vld [vmem:[%s1092_s25 + $0x120] ss:$8 sps:$4 sm:$0xff]  }
  0x20   : > { %595 = vmatpush1.bf16.msra.mxu0 %v949_v7  ;;  %v998_v31 = vld [vmem:[%s1092_s25 + $0x114] ss:$8 sps:$4 sm:$0xff]   ;;  %v973_v32 = vld [vmem:[%s1092_s25 + $0xf0] ss:$8 sps:$4 sm:$0xff]   ;;  %v977_v33 = vld [vmem:[%s1092_s25 + $0xe4] ss:$8 sps:$4 sm:$0xff]  }
  0x21   : > { %596 = vmatprep.subr.bf16.mxu0 %v950_v8  ;;  %v1000_v35 = vld [vmem:[%s1092_s25 + $0x110] ss:$8 sps:$4 sm:$0xff]   ;;  %v1004_v37 = vld [vmem:[%s1092_s25 + $0x104] ss:$8 sps:$4 sm:$0xff]   ;;  %v979_v38 = vld [vmem:[%s1092_s25 + $0xe0] ss:$8 sps:$4 sm:$0xff]  }
  0x22   : > { %636 = vmatpush1.bf16.msra.mxu1 %v976_v18  ;;  %v983_v39 = vld [vmem:[%s1092_s25 + $0xd4] ss:$8 sps:$4 sm:$0xff]   ;;  %v1006_v40 = vld [vmem:[%s1092_s25 + $0x100] ss:$8 sps:$4 sm:$0xff]   ;;  %v985_v41 = vld [vmem:[%s1092_s25 + $0xd0] ss:$8 sps:$4 sm:$0xff]  }
  0x23   : > { %637 = vmatprep.subr.bf16.mxu1 %v980_v19  ;;  %v989_v42 = vld [vmem:[%s1092_s25 + $0xc4] ss:$8 sps:$4 sm:$0xff]   ;;  %v1010_v43 = vld [vmem:[%s1087_s21 + $0x8] ss:$0 sps:$4 sm:$0xff]   ;;  %v995_v45 = vld [vmem:[%s1092_s25 + $0xb4] ss:$8 sps:$4 sm:$0xff]  }
  0x24   : > { %597 = vmatpush1.bf16.msra.mxu0 %v952_v11  ;;  %v991_v44 = vld [vmem:[%s1092_s25 + $0xc0] ss:$8 sps:$4 sm:$0xff]   ;;  %v997_v46 = vld [vmem:[%s1092_s25 + $0xb0] ss:$8 sps:$4 sm:$0xff]   ;;  %v1001_v47 = vld [vmem:[%s1092_s25 + $0xa4] ss:$8 sps:$4 sm:$0xff]  }
  0x25   : > { %598 = vmatprep.subr.bf16.mxu0 %v953_v12  ;;  %v1003_v48 = vld [vmem:[%s1092_s25 + $0xa0] ss:$8 sps:$4 sm:$0xff]   ;;  %v1007_v49 = vld [vmem:[%s1092_s25 + $0x94] ss:$8 sps:$4 sm:$0xff]   ;;  %v1009_v50 = vld [vmem:[%s1092_s25 + $0x90] ss:$8 sps:$4 sm:$0xff]  }
  0x26   : > { %638 = vmatpush1.bf16.msra.mxu1 %v982_v22  ;;  %v1011_v51 = vld [vmem:[%s1092_s25 + $0x84] ss:$8 sps:$4 sm:$0xff]   ;;  %v1013_v52 = vld [vmem:[%s1092_s25 + $0x80] ss:$8 sps:$4 sm:$0xff]   ;;  %p906_p7 = scmp.ne.s32.totalorder %s1030_s12, 2 }
  0x27   : > { %639 = vmatprep.subr.bf16.mxu1 %v986_v23  ;;  %v287_v58 = vld [vmem:[#allocation2] sm:$0xff]  ;;  %v288_v61 = vld [vmem:[#allocation2 + $0x8] sm:$0xff] }
  0x28   : > { %599 = vmatpush1.bf16.msra.mxu0 %v955_v15 }
  0x29   : > { %600 = vmatprep.subr.bf16.mxu0 %v956_v17 }
  0x2a   : > { %640 = vmatpush1.bf16.msra.mxu1 %v988_v26 }
  0x2b   : > { %641 = vmatprep.subr.bf16.mxu1 %v992_v27 }
  0x2c   : > { %601 = vmatpush1.bf16.msra.mxu0 %v958_v20 }
  0x2d   : > { %602 = vmatprep.subr.bf16.mxu0 %v959_v21 }
  0x2e   : > { %642 = vmatpush1.bf16.msra.mxu1 %v994_v30 }
  0x2f   : > { %643 = vmatprep.subr.bf16.mxu1 %v998_v31 }
  0x30   : > { %603 = vmatpush1.bf16.msra.mxu0 %v961_v24 }
  0x31   : > { %604 = vmatprep.subr.bf16.mxu0 %v965_v25 }
  0x32   : > { %644 = vmatpush1.bf16.msra.mxu1 %v1000_v35 }
  0x33   : > { %645 = vmatprep.subr.bf16.mxu1 %v1004_v37 }
  0x34   : > { %605 = vmatpush1.bf16.msra.mxu0 %v967_v28 }
  0x35   : > { %606 = vmatprep.subr.bf16.mxu0 %v971_v29 }
  0x36   : > { %646 = vmatpush1.bf16.msra.mxu1 %v1006_v40 }
  0x38   : > { %607 = vmatpush2.bf16.msra.mxu0 %v973_v32 }
  0x39   : > { %608 = vmatprep.subr.bf16.mxu0 %v977_v33  ;;  %664 = vmatmul.mubr.bf16.vlgmr.msra.gmra.mxu1 %v1010_v43 }
  0x3c   : > { %609 = vmatpush2.bf16.msra.mxu0 %v979_v38 }
  0x3d   : > { %610 = vmatprep.subr.bf16.mxu0 %v983_v39 }
  0x40   : > { %611 = vmatpush2.bf16.msra.mxu0 %v985_v41 }
  0x41   : > { %612 = vmatprep.subr.bf16.mxu0 %v989_v42 }
  0x44   : > { %613 = vmatpush2.bf16.msra.mxu0 %v991_v44 }
  0x45   : > { %614 = vmatprep.subr.bf16.mxu0 %v995_v45 }
  0x48   : > { %615 = vmatpush2.bf16.msra.mxu0 %v997_v46 }
  0x49   : > { %616 = vmatprep.subr.bf16.mxu0 %v1001_v47 }
  0x4c   : > { %617 = vmatpush2.bf16.msra.mxu0 %v1003_v48 }
  0x4d   : > { %618 = vmatprep.subr.bf16.mxu0 %v1007_v49 }
  0x50   : > { %619 = vmatpush2.bf16.msra.mxu0 %v1009_v50 }
  0x51   : > { %620 = vmatprep.subr.bf16.mxu0 %v1011_v51 }
  0x54   : > { %621 = vmatpush2.bf16.msra.mxu0 %v1013_v52 }
  0x57   : > { %623 = vmatmul.mubr.bf16.vlgmr.msra.gmra.mxu0 %v855_v53 }
  0xf9   : > { %v665_v54 = vpop.f32.mrf.mxu1 }
  0xfb   : > { %v667_v55 = vpop.f32.mrf.mxu1 }
  0xfd   : > { %v669_v56 = vpop.f32.mrf.mxu1 }
  0xff   : > { %v670_v57 = vpop.f32.mrf.mxu1 }
 0x117   : > { %v624_v59 = vpop.f32.mrf.mxu0 }
 0x118   : > { %v666_v60 = vadd.f32 %v665_v54, %v624_v59 }
 0x119   : > { %v626_v62 = vpop.f32.mrf.mxu0 }
 0x11a   : > { %v672_v63 = vadd.f32 %v666_v60, %v287_v58  ;;  %v668_v0 = vadd.f32 %v667_v55, %v626_v62  ;;  %679 = sbr.rel (%p906_p7) target bundleno = 305 (0x131), region = 40 }
 0x11b   : > { %v628_v1 = vpop.f32.mrf.mxu0 }
 0x11c   : > { %674 = vst [vmem:[#allocation2] sm:$0xff] %v672_v63  ;;  %v673_v2 = vadd.f32 %v668_v0, %v288_v61 }
 0x11d   : > { %v629_v3 = vpop.f32.mrf.mxu0 }
 0x11e   : > { %675 = vst [vmem:[#allocation2 + $0x8] sm:$0xff] %v673_v2 }
 0x11f   : > { %v684_v4 = vlaneseq  ;;  %v682_v6 = vld [vmem:[%s1166_s2] ss:$2 sm:$0x3]  ;;  %v907_v7 = vld [vmem:[%s1166_s2 + $0x1] ss:$2 sm:$0x3] }
 0x121   : > { %v685_v5 = vshrl.u32 %v684_v4, 7 }
 0x123   : > { %v686_v8 = vsub.s32 0, %v685_v5  ;;  %v690_v9 = vsub.s32 1, %v685_v5  ;;  %v680_v10 = vld [vmem:[#allocation2] sm:$0xff] }
 0x125   : > { %v681_v11 = vld [vmem:[#allocation2 + $0x8] sm:$0xff]  ;;  %v687_v12 = vrot.slane %v682_v6, %v686_v8  ;;  %v691_v13 = vrot.slane %v682_v6, %v690_v9  ;;  %v702_v14 = vrot.slane %v907_v7, %v686_v8  ;;  %v706_v15 = vrot.slane %v907_v7, %v690_v9 }
 0x127   : > { %v694_v16 = vmul.f32 %v687_v12, %v680_v10  ;;  %v695_v17 = vmul.f32 %v691_v13, %v681_v11 }
 0x129   : > { %v709_v18 = vadd.f32 %v702_v14, %v694_v16  ;;  %v710_v19 = vadd.f32 %v706_v15, %v695_v17 }
 0x12b   : > { %vm711_vm0 = vcmp.ge.f32.partialorder %v709_v18, 0.0  ;;  %vm712_vm1 = vcmp.ge.f32.partialorder %v710_v19, 0.0  ;;  %v713_v20 = vmul.f32 0.01, %v709_v18  ;;  %v714_v21 = vmul.f32 0.01, %v710_v19 }
 0x12d   : > { %v715_v22 = vsel %vm711_vm0, %v709_v18, %v713_v20  ;;  %v716_v23 = vsel %vm712_vm1, %v710_v19, %v714_v21 }
 0x12e   : > { %v914_v24 = vpack.c.bf16 %v716_v23, %v715_v22 }
 0x130   : > { %725 = vst [vmem:[%s1167_s3] sm:$0xff] %v914_v24 }
 0x131 PF: > { %s13_s14 = sadd.s32 1, %s1038_s14   ;;  %s1168_s12 = smov %s1034_s13 }
 0x132   : > { %p10_p8 = scmp.ge.s32.totalorder %s13_s14, 5   ;;  %s1169_s13 = smov %s1171_s15 }
 0x134   :  { %12 = sbr.rel (!%p10_p8) target bundleno = 2 (0x2), region = 77 }

// kernel: a_call__.20
= control target key start
LH: loop header
LB: loop body
LE: loop exit
PB: predicated region body
PF: predicated region fallthrough
CT: control target
= control target key end

     0   :  { %v256_v1 = vmov 0   ;;  %v172_v18 = vlaneseq  ;;  %s337_s1 = inlined_call_operand.vmem [shape: bf16[128,256], index: 1, kind: input, shape index: {}]   ;;  %s338_s0 = inlined_call_operand.vmem [shape: bf16[8,128], index: 0, kind: input, shape index: {}]   ;;  %s339_s2 = inlined_call_operand.vmem [shape: f32[2,256], index: 2, kind: input, shape index: {}]   ;;  %s340_s3 = inlined_call_operand.vmem [shape: bf16[8,256], index: 3, kind: output, shape index: {}]  }
   0x1   :  { %v232_v0 = vld [vmem:[%s337_s1 + $0x74] ss:$8 sps:$4 sm:$0xff]   ;;  %152 = vmatprep.mubr.bf16.mxu0 %v256_v1  ;;  %v234_v2 = vld [vmem:[%s337_s1 + $0x70] ss:$8 sps:$4 sm:$0xff]   ;;  %v235_v3 = vld [vmem:[%s337_s1 + $0x64] ss:$8 sps:$4 sm:$0xff]  }
   0x2   :  { %120 = vmatprep.subr.bf16.mxu0 %v232_v0  ;;  %v237_v4 = vld [vmem:[%s337_s1 + $0x60] ss:$8 sps:$4 sm:$0xff]   ;;  %v238_v5 = vld [vmem:[%s337_s1 + $0x54] ss:$8 sps:$4 sm:$0xff]   ;;  %v240_v6 = vld [vmem:[%s337_s1 + $0x50] ss:$8 sps:$4 sm:$0xff]  }
   0x3   :  { %121 = vmatpush1.bf16.msra.mxu0 %v234_v2  ;;  %v241_v7 = vld [vmem:[%s337_s1 + $0x44] ss:$8 sps:$4 sm:$0xff]   ;;  %v243_v8 = vld [vmem:[%s337_s1 + $0x40] ss:$8 sps:$4 sm:$0xff]   ;;  %v244_v9 = vld [vmem:[%s337_s1 + $0x34] ss:$8 sps:$4 sm:$0xff]  }
   0x4   :  { %122 = vmatprep.subr.bf16.mxu0 %v235_v3  ;;  %v246_v10 = vld [vmem:[%s337_s1 + $0x30] ss:$8 sps:$4 sm:$0xff]   ;;  %v247_v11 = vld [vmem:[%s337_s1 + $0x24] ss:$8 sps:$4 sm:$0xff]   ;;  %v249_v12 = vld [vmem:[%s337_s1 + $0x20] ss:$8 sps:$4 sm:$0xff]  }
   0x5   :  { %v250_v13 = vld [vmem:[%s337_s1 + $0x14] ss:$8 sps:$4 sm:$0xff]   ;;  %v252_v14 = vld [vmem:[%s337_s1 + $0x10] ss:$8 sps:$4 sm:$0xff]   ;;  %v253_v15 = vld [vmem:[%s337_s1 + $0x4] ss:$8 sps:$4 sm:$0xff]  }
   0x6   :  { %v255_v16 = vld [vmem:[%s337_s1] ss:$8 sps:$4 sm:$0xff]   ;;  %v173_v19 = vshrl.u32 %v172_v18, 7 }
   0x7   :  { %123 = vmatpush1.bf16.msra.mxu0 %v237_v4  ;;  %v23_v17 = vld [vmem:[%s338_s0] sm:$0xf] }
   0x8   :  { %124 = vmatprep.subr.bf16.mxu0 %v238_v5  ;;  %v174_v20 = vsub.s32 0, %v173_v19  ;;  %v170_v21 = vld [vmem:[%s339_s2] ss:$2 sm:$0x3]  ;;  %v178_v22 = vsub.s32 1, %v173_v19 }
   0x9   :  { %v228_v24 = vld [vmem:[%s339_s2 + $0x1] ss:$2 sm:$0x3] }
   0xa   :  { %v175_v23 = vrot.slane %v170_v21, %v174_v20  ;;  %v179_v25 = vrot.slane %v170_v21, %v178_v22  ;;  %v190_v28 = vrot.slane %v228_v24, %v174_v20  ;;  %v194_v29 = vrot.slane %v228_v24, %v178_v22 }
   0xb   :  { %125 = vmatpush1.bf16.msra.mxu0 %v240_v6 }
   0xc   :  { %126 = vmatprep.subr.bf16.mxu0 %v241_v7 }
   0xf   :  { %127 = vmatpush1.bf16.msra.mxu0 %v243_v8 }
  0x10   :  { %128 = vmatprep.subr.bf16.mxu0 %v244_v9 }
  0x13   :  { %129 = vmatpush1.bf16.msra.mxu0 %v246_v10 }
  0x14   :  { %130 = vmatprep.subr.bf16.mxu0 %v247_v11 }
  0x17   :  { %131 = vmatpush1.bf16.msra.mxu0 %v249_v12 }
  0x18   :  { %132 = vmatprep.subr.bf16.mxu0 %v250_v13 }
  0x1b   :  { %133 = vmatpush1.bf16.msra.mxu0 %v252_v14 }
  0x1c   :  { %134 = vmatprep.subr.bf16.mxu0 %v253_v15 }
  0x1f   :  { %135 = vmatpush1.bf16.msra.mxu0 %v255_v16 }
  0x22   :  { %153 = vmatmul.mubr.bf16.vlgmr.msra.gmra.mxu0 %v23_v17 }
  0xe2   :  { %v154_v26 = vpop.f32.mrf.mxu0 }
  0xe3   :  { %v182_v27 = vmul.f32 %v175_v23, %v154_v26 }
  0xe4   :  { %v156_v30 = vpop.f32.mrf.mxu0 }
  0xe5   :  { %v183_v31 = vmul.f32 %v179_v25, %v156_v30  ;;  %v197_v33 = vadd.f32 %v190_v28, %v182_v27 }
  0xe6   :  { %v158_v32 = vpop.f32.mrf.mxu0 }
  0xe7   :  { %v198_v34 = vadd.f32 %v194_v29, %v183_v31 }
  0xe8   :  { %v159_v35 = vpop.f32.mrf.mxu0 }
  0xe9   :  { %v230_v36 = vpack.c.bf16 %v198_v34, %v197_v33 }
  0xeb   :  { %207 = vst [vmem:[%s340_s3] sm:$0xff] %v230_v36 }

// kernel: a_call__.22
= control target key start
LH: loop header
LB: loop body
LE: loop exit
PB: predicated region body
PF: predicated region fallthrough
CT: control target
= control target key end

     0   :  { %s1620_s15 = smov 0   ;;  %s1622_s16 = smov 0   ;;  %s1780_s0 = inlined_call_operand.vmem [shape: bf16[8,2304], index: 0, kind: input, shape index: {}]   ;;  %s1781_s1 = inlined_call_operand.vmem [shape: bf16[2304,256], index: 1, kind: input, shape index: {}]   ;;  %s1782_s2 = inlined_call_operand.vmem [shape: f32[2,256], index: 2, kind: input, shape index: {}]   ;;  %s1783_s3 = inlined_call_operand.vmem [shape: bf16[8,256], index: 3, kind: input, shape index: {}]   ;;  %s1784_s4 = inlined_call_operand.vmem [shape: bf16[8,256], index: 4, kind: output, shape index: {}]  }
   0x1   :  { %s1624_s17 = smov 0  }
   0x2 LB: > { %s26_s18 = sadd.s32 1, %s1588_s16  ;;  %p1279_p0 = scmp.ge.s32.totalorder %s1592_s17, 1  ;;  %s1592_s17 = sphi %s1624_s17, %s14_s17   ;;  %s1588_s16 = sphi %s1622_s16, %s1786_s16   ;;  %s1584_s15 = sphi %s1620_s15, %s1785_s15  }
   0x3   : > { %p27_p1 = scmp.ge.s32.totalorder %s26_s18, 3  ;;  %p237_p2 = scmp.lt.s32.totalorder %s1592_s17, 4 }
   0x5   : > { %s1788_s18 = smov (%p27_p1, %s26_s18), 0  ;;  %p238_p3 = pnand %p1279_p0, %p237_p2 }
   0x6   : > { %s295_s19 = smul.u32 (!%p238_p3), 6, %s1584_s15  ;;  %p1283_p6 = scmp.ne.s32.totalorder (!%p238_p3), %s1584_s15, 0 }
   0x7   : > { %241 = sbr.rel (%p238_p3) target bundleno = 371 (0x173), region = 36 }
   0x8   : > { %s305_s20 = smul.u32 (!%p238_p3), 96, %s1584_s15  ;;  %p298_p4 = scmp.lt.s32.totalorder (!%p238_p3), %s295_s19, 17 }
   0xa   : > { %p307_p5 = scmp.lt.s32.totalorder (!%p238_p3), %s305_s20, 287 }
   0xc   : > { %s1790_s19 = smov (!%p298_p4, %s295_s19), 17  ;;  %s1792_s20 = smov (!%p307_p5, %s305_s20), 287 }
   0xd   : > { %s1280_s21 = sshll.u32 %s1790_s19, 2  ;;  %s1393_s25 = sshll.u32 %s1792_s20, 3 }
   0xe   : > { %s1645_s24 = scalar_lea.vmem %s1780_s0, %s1280_s21  ;;  %s1650_s28 = scalar_lea.vmem %s1781_s1, %s1393_s25 }
   0xf   : > { %346 = sbr.rel (%p1283_p6) target bundleno = 22 (0x16), region = 40 }
  0x14   : > { %v1594_v0 = vmov 0.0  }
  0x15   : > { %347 = vst [vmem:[#allocation2] sm:$0xff] %v1594_v0  ;;  %348 = vst [vmem:[#allocation2 + $0x8] sm:$0xff] %v1594_v0 }
  0x16 PF: > { %v1420_v1 = vld [vmem:[%s1650_s28 + $0x74] ss:$8 sps:$4 sm:$0xff]   ;;  %v1424_v3 = vld [vmem:[%s1650_s28 + $0x70] ss:$8 sps:$4 sm:$0xff]   ;;  %v1426_v5 = vld [vmem:[%s1650_s28 + $0x64] ss:$8 sps:$4 sm:$0xff]  }
  0x17   : > { %v1422_v2 = vld [vmem:[%s1650_s28 + $0x174] ss:$8 sps:$4 sm:$0xff]   ;;  %951 = vmatprep.subr.bf16.mxu0 %v1420_v1  ;;  %v1425_v4 = vld [vmem:[%s1650_s28 + $0x170] ss:$8 sps:$4 sm:$0xff]   ;;  %v1428_v6 = vld [vmem:[%s1650_s28 + $0x164] ss:$8 sps:$4 sm:$0xff]  }
  0x18   : > { %992 = vmatprep.subr.bf16.mxu1 %v1422_v2  ;;  %952 = vmatpush1.bf16.msra.mxu0 %v1424_v3  ;;  %v1430_v7 = vld [vmem:[%s1650_s28 + $0x60] ss:$8 sps:$4 sm:$0xff]   ;;  %v1432_v9 = vld [vmem:[%s1650_s28 + $0x54] ss:$8 sps:$4 sm:$0xff]   ;;  %v1436_v11 = vld [vmem:[%s1650_s28 + $0x50] ss:$8 sps:$4 sm:$0xff]  }
  0x19   : > { %993 = vmatpush1.bf16.msra.mxu1 %v1425_v4  ;;  %953 = vmatprep.subr.bf16.mxu0 %v1426_v5  ;;  %v1431_v8 = vld [vmem:[%s1650_s28 + $0x160] ss:$8 sps:$4 sm:$0xff]   ;;  %v1434_v10 = vld [vmem:[%s1650_s28 + $0x154] ss:$8 sps:$4 sm:$0xff]   ;;  %v1437_v12 = vld [vmem:[%s1650_s28 + $0x150] ss:$8 sps:$4 sm:$0xff]  }
  0x1a   : > { %994 = vmatprep.subr.bf16.mxu1 %v1428_v6  ;;  %v1438_v13 = vld [vmem:[%s1650_s28 + $0x44] ss:$8 sps:$4 sm:$0xff]   ;;  %v1442_v15 = vld [vmem:[%s1650_s28 + $0x40] ss:$8 sps:$4 sm:$0xff]   ;;  %v1444_v17 = vld [vmem:[%s1650_s28 + $0x34] ss:$8 sps:$4 sm:$0xff]  }
  0x1b   : > { %v1440_v14 = vld [vmem:[%s1650_s28 + $0x144] ss:$8 sps:$4 sm:$0xff]   ;;  %v1443_v16 = vld [vmem:[%s1650_s28 + $0x140] ss:$8 sps:$4 sm:$0xff]   ;;  %v1446_v18 = vld [vmem:[%s1650_s28 + $0x134] ss:$8 sps:$4 sm:$0xff]  }
  0x1c   : > { %954 = vmatpush1.bf16.msra.mxu0 %v1430_v7  ;;  %v1448_v19 = vld [vmem:[%s1650_s28 + $0x30] ss:$8 sps:$4 sm:$0xff]   ;;  %v1450_v21 = vld [vmem:[%s1650_s28 + $0x24] ss:$8 sps:$4 sm:$0xff]   ;;  %v1454_v23 = vld [vmem:[%s1650_s28 + $0x20] ss:$8 sps:$4 sm:$0xff]  }
  0x1d   : > { %995 = vmatpush1.bf16.msra.mxu1 %v1431_v8  ;;  %955 = vmatprep.subr.bf16.mxu0 %v1432_v9  ;;  %v1449_v20 = vld [vmem:[%s1650_s28 + $0x130] ss:$8 sps:$4 sm:$0xff]   ;;  %v1452_v22 = vld [vmem:[%s1650_s28 + $0x124] ss:$8 sps:$4 sm:$0xff]   ;;  %v1455_v24 = vld [vmem:[%s1650_s28 + $0x120] ss:$8 sps:$4 sm:$0xff]  }
  0x1e   : > { %996 = vmatprep.subr.bf16.mxu1 %v1434_v10  ;;  %v1456_v25 = vld [vmem:[%s1650_s28 + $0x14] ss:$8 sps:$4 sm:$0xff]   ;;  %v1460_v27 = vld [vmem:[%s1650_s28 + $0x10] ss:$8 sps:$4 sm:$0xff]   ;;  %v1462_v29 = vld [vmem:[%s1650_s28 + $0x4] ss:$8 sps:$4 sm:$0xff]  }
  0x1f   : > { %v1458_v26 = vld [vmem:[%s1650_s28 + $0x114] ss:$8 sps:$4 sm:$0xff]   ;;  %v1461_v28 = vld [vmem:[%s1650_s28 + $0x110] ss:$8 sps:$4 sm:$0xff]   ;;  %v1464_v30 = vld [vmem:[%s1650_s28 + $0x104] ss:$8 sps:$4 sm:$0xff]  }
  0x20   : > { %956 = vmatpush1.bf16.msra.mxu0 %v1436_v11  ;;  %v1466_v31 = vld [vmem:[%s1650_s28] ss:$8 sps:$4 sm:$0xff]   ;;  %v1468_v33 = vld [vmem:[%s1650_s28 + $0xf4] ss:$8 sps:$4 sm:$0xff]   ;;  %v1472_v35 = vld [vmem:[%s1650_s28 + $0xf0] ss:$8 sps:$4 sm:$0xff]  }
  0x21   : > { %997 = vmatpush1.bf16.msra.mxu1 %v1437_v12  ;;  %957 = vmatprep.subr.bf16.mxu0 %v1438_v13  ;;  %v1467_v32 = vld [vmem:[%s1650_s28 + $0x100] ss:$8 sps:$4 sm:$0xff]   ;;  %v1470_v34 = vld [vmem:[%s1650_s28 + $0x1f4] ss:$8 sps:$4 sm:$0xff]   ;;  %v1473_v36 = vld [vmem:[%s1650_s28 + $0x1f0] ss:$8 sps:$4 sm:$0xff]  }
  0x22   : > { %998 = vmatprep.subr.bf16.mxu1 %v1440_v14  ;;  %v1474_v37 = vld [vmem:[%s1650_s28 + $0xe4] ss:$8 sps:$4 sm:$0xff]   ;;  %v1478_v39 = vld [vmem:[%s1650_s28 + $0xe0] ss:$8 sps:$4 sm:$0xff]   ;;  %v1480_v41 = vld [vmem:[%s1650_s28 + $0xd4] ss:$8 sps:$4 sm:$0xff]  }
  0x23   : > { %v1476_v38 = vld [vmem:[%s1650_s28 + $0x1e4] ss:$8 sps:$4 sm:$0xff]   ;;  %v1479_v40 = vld [vmem:[%s1650_s28 + $0x1e0] ss:$8 sps:$4 sm:$0xff]   ;;  %v1482_v42 = vld [vmem:[%s1650_s28 + $0x1d4] ss:$8 sps:$4 sm:$0xff]  }
  0x24   : > { %958 = vmatpush1.bf16.msra.mxu0 %v1442_v15  ;;  %v1484_v43 = vld [vmem:[%s1650_s28 + $0xd0] ss:$8 sps:$4 sm:$0xff]   ;;  %v1486_v45 = vld [vmem:[%s1650_s28 + $0xc4] ss:$8 sps:$4 sm:$0xff]   ;;  %v1490_v50 = vld [vmem:[%s1650_s28 + $0xc0] ss:$8 sps:$4 sm:$0xff]  }
  0x25   : > { %999 = vmatpush1.bf16.msra.mxu1 %v1443_v16  ;;  %959 = vmatprep.subr.bf16.mxu0 %v1444_v17  ;;  %v1485_v44 = vld [vmem:[%s1650_s28 + $0x1d0] ss:$8 sps:$4 sm:$0xff]   ;;  %v1488_v46 = vld [vmem:[%s1650_s28 + $0x1c4] ss:$8 sps:$4 sm:$0xff]   ;;  %v1491_v51 = vld [vmem:[%s1650_s28 + $0x1c0] ss:$8 sps:$4 sm:$0xff]  }
  0x26   : > { %1000 = vmatprep.subr.bf16.mxu1 %v1446_v18  ;;  %v351_v47 = vld [vmem:[%s1645_s24] sm:$0xff]  ;;  %v352_v49 = vld [vmem:[%s1645_s24 + $0x8] sm:$0xff]  ;;  %v1492_v53 = vld [vmem:[%s1650_s28 + $0xb4] ss:$8 sps:$4 sm:$0xff]   ;;  %p1386_p7 = scmp.ne.s32.totalorder %s1584_s15, 2 }
  0x27   : > { %v1285_v48 = vcombine.high %v351_v47, %v351_v47  ;;  %v1287_v52 = vcombine.high %v352_v49, %v352_v49  ;;  %v1494_v54 = vld [vmem:[%s1650_s28 + $0x1b4] ss:$8 sps:$4 sm:$0xff]   ;;  %v1496_v55 = vld [vmem:[%s1650_s28 + $0xb0] ss:$8 sps:$4 sm:$0xff]   ;;  %v1498_v57 = vld [vmem:[%s1650_s28 + $0xa4] ss:$8 sps:$4 sm:$0xff]   ;;  %v1284_v6 = vcombine.low %v351_v47, %v351_v47  ;;  %v1286_v7 = vcombine.low %v352_v49, %v352_v49 }
  0x28   : > { %960 = vmatpush1.bf16.msra.mxu0 %v1448_v19  ;;  %v1497_v56 = vld [vmem:[%s1650_s28 + $0x1b0] ss:$8 sps:$4 sm:$0xff]   ;;  %v1500_v58 = vld [vmem:[%s1650_s28 + $0x1a4] ss:$8 sps:$4 sm:$0xff]   ;;  %v1502_v59 = vld [vmem:[%s1650_s28 + $0xa0] ss:$8 sps:$4 sm:$0xff]  }
  0x29   : > { %1001 = vmatpush1.bf16.msra.mxu1 %v1449_v20  ;;  %961 = vmatprep.subr.bf16.mxu0 %v1450_v21  ;;  %v1503_v60 = vld [vmem:[%s1650_s28 + $0x1a0] ss:$8 sps:$4 sm:$0xff]   ;;  %v1504_v61 = vld [vmem:[%s1650_s28 + $0x94] ss:$8 sps:$4 sm:$0xff]   ;;  %v1508_v63 = vld [vmem:[%s1650_s28 + $0x90] ss:$8 sps:$4 sm:$0xff]  }
  0x2a   : > { %1002 = vmatprep.subr.bf16.mxu1 %v1452_v22  ;;  %983 = vmatprep.mubr.bf16.mxu0 %v1285_v48  ;;  %v1506_v62 = vld [vmem:[%s1650_s28 + $0x194] ss:$8 sps:$4 sm:$0xff]   ;;  %v1509_v0 = vld [vmem:[%s1650_s28 + $0x190] ss:$8 sps:$4 sm:$0xff]   ;;  %v1510_v1 = vld [vmem:[%s1650_s28 + $0x84] ss:$8 sps:$4 sm:$0xff]  }
  0x2b   : > { %1024 = vmatprep.mubr.bf16.mxu1 %v1287_v52  ;;  %v1512_v2 = vld [vmem:[%s1650_s28 + $0x184] ss:$8 sps:$4 sm:$0xff]   ;;  %v1514_v3 = vld [vmem:[%s1650_s28 + $0x80] ss:$8 sps:$4 sm:$0xff]   ;;  %v1522_v5 = vld [vmem:[%s1650_s28 + $0x274] ss:$8 sps:$4 sm:$0xff]  }
  0x2c   : > { %962 = vmatpush1.bf16.msra.mxu0 %v1454_v23  ;;  %v1515_v4 = vld [vmem:[%s1650_s28 + $0x180] ss:$8 sps:$4 sm:$0xff]   ;;  %v1520_v8 = vld [vmem:[%s1650_s28 + $0x270] ss:$8 sps:$4 sm:$0xff]   ;;  %v1525_v10 = vld [vmem:[%s1650_s28 + $0x264] ss:$8 sps:$4 sm:$0xff]  }
  0x2d   : > { %1003 = vmatpush1.bf16.msra.mxu1 %v1455_v24  ;;  %963 = vmatprep.subr.bf16.mxu0 %v1456_v25  ;;  %v1722_v9 = vld [vmem:[%s1645_s24 + $0x10] sm:$0xff]  ;;  %v1523_v12 = vld [vmem:[%s1650_s28 + $0x260] ss:$8 sps:$4 sm:$0xff]   ;;  %v1531_v15 = vld [vmem:[%s1650_s28 + $0x244] ss:$8 sps:$4 sm:$0xff]  }
  0x2e   : > { %1004 = vmatprep.subr.bf16.mxu1 %v1458_v26  ;;  %v1289_v11 = vcombine.high %v1722_v9, %v1722_v9  ;;  %v1528_v13 = vld [vmem:[%s1650_s28 + $0x254] ss:$8 sps:$4 sm:$0xff]   ;;  %v1526_v14 = vld [vmem:[%s1650_s28 + $0x250] ss:$8 sps:$4 sm:$0xff]   ;;  %v1529_v16 = vld [vmem:[%s1650_s28 + $0x240] ss:$8 sps:$4 sm:$0xff]  }
  0x2f   : > { %v1534_v17 = vld [vmem:[%s1650_s28 + $0x234] ss:$8 sps:$4 sm:$0xff]   ;;  %v1532_v18 = vld [vmem:[%s1650_s28 + $0x230] ss:$8 sps:$4 sm:$0xff]   ;;  %v1537_v19 = vld [vmem:[%s1650_s28 + $0x224] ss:$8 sps:$4 sm:$0xff]  }
  0x30   : > { %964 = vmatpush1.bf16.msra.mxu0 %v1460_v27  ;;  %v1535_v20 = vld [vmem:[%s1650_s28 + $0x220] ss:$8 sps:$4 sm:$0xff]   ;;  %v1540_v21 = vld [vmem:[%s1650_s28 + $0x214] ss:$8 sps:$4 sm:$0xff]   ;;  %v1538_v22 = vld [vmem:[%s1650_s28 + $0x210] ss:$8 sps:$4 sm:$0xff]  }
  0x31   : > { %1005 = vmatpush1.bf16.msra.mxu1 %v1461_v28  ;;  %965 = vmatprep.subr.bf16.mxu0 %v1462_v29  ;;  %v1543_v23 = vld [vmem:[%s1650_s28 + $0x204] ss:$8 sps:$4 sm:$0xff]   ;;  %v1541_v24 = vld [vmem:[%s1650_s28 + $0x200] ss:$8 sps:$4 sm:$0xff]   ;;  %v1546_v25 = vld [vmem:[%s1650_s28 + $0x2f4] ss:$8 sps:$4 sm:$0xff]  }
  0x32   : > { %1006 = vmatprep.subr.bf16.mxu1 %v1464_v30  ;;  %v1544_v26 = vld [vmem:[%s1650_s28 + $0x2f0] ss:$8 sps:$4 sm:$0xff]   ;;  %v1549_v27 = vld [vmem:[%s1650_s28 + $0x2e4] ss:$8 sps:$4 sm:$0xff]   ;;  %v1547_v28 = vld [vmem:[%s1650_s28 + $0x2e0] ss:$8 sps:$4 sm:$0xff]  }
  0x33   : > { %v1552_v29 = vld [vmem:[%s1650_s28 + $0x2d4] ss:$8 sps:$4 sm:$0xff]   ;;  %v1550_v30 = vld [vmem:[%s1650_s28 + $0x2d0] ss:$8 sps:$4 sm:$0xff]  }
  0x34   : > { %966 = vmatpush1.bf16.msra.mxu0 %v1466_v31  ;;  %v1555_v31 = vld [vmem:[%s1650_s28 + $0x2c4] ss:$8 sps:$4 sm:$0xff]  }
  0x35   : > { %1007 = vmatpush1.bf16.msra.mxu1 %v1467_v32  ;;  %967 = vmatprep.subr.bf16.mxu0 %v1468_v33  ;;  %v1553_v32 = vld [vmem:[%s1650_s28 + $0x2c0] ss:$8 sps:$4 sm:$0xff]   ;;  %v1558_v33 = vld [vmem:[%s1650_s28 + $0x2b4] ss:$8 sps:$4 sm:$0xff]  }
  0x36   : > { %1008 = vmatprep.subr.bf16.mxu1 %v1470_v34  ;;  %v1556_v34 = vld [vmem:[%s1650_s28 + $0x2b0] ss:$8 sps:$4 sm:$0xff]  }
  0x38   : > { %968 = vmatpush2.bf16.msra.mxu0 %v1472_v35  ;;  %v1561_v35 = vld [vmem:[%s1650_s28 + $0x2a4] ss:$8 sps:$4 sm:$0xff]  }
  0x39   : > { %1009 = vmatpush2.bf16.msra.mxu1 %v1473_v36  ;;  %969 = vmatprep.subr.bf16.mxu0 %v1474_v37  ;;  %v1559_v36 = vld [vmem:[%s1650_s28 + $0x2a0] ss:$8 sps:$4 sm:$0xff]   ;;  %v1564_v37 = vld [vmem:[%s1650_s28 + $0x294] ss:$8 sps:$4 sm:$0xff]  }
  0x3a   : > { %1010 = vmatprep.subr.bf16.mxu1 %v1476_v38  ;;  %v1562_v38 = vld [vmem:[%s1650_s28 + $0x290] ss:$8 sps:$4 sm:$0xff]  }
  0x3c   : > { %970 = vmatpush2.bf16.msra.mxu0 %v1478_v39  ;;  %v1567_v39 = vld [vmem:[%s1650_s28 + $0x284] ss:$8 sps:$4 sm:$0xff]  }
  0x3d   : > { %1011 = vmatpush2.bf16.msra.mxu1 %v1479_v40  ;;  %971 = vmatprep.subr.bf16.mxu0 %v1480_v41  ;;  %v1565_v40 = vld [vmem:[%s1650_s28 + $0x280] ss:$8 sps:$4 sm:$0xff]   ;;  %v1288_v41 = vcombine.low %v1722_v9, %v1722_v9 }
  0x3e   : > { %1012 = vmatprep.subr.bf16.mxu1 %v1482_v42 }
  0x40   : > { %972 = vmatpush2.bf16.msra.mxu0 %v1484_v43 }
  0x41   : > { %1013 = vmatpush2.bf16.msra.mxu1 %v1485_v44  ;;  %973 = vmatprep.subr.bf16.mxu0 %v1486_v45 }
  0x42   : > { %1014 = vmatprep.subr.bf16.mxu1 %v1488_v46 }
  0x44   : > { %974 = vmatpush2.bf16.msra.mxu0 %v1490_v50 }
  0x45   : > { %1015 = vmatpush2.bf16.msra.mxu1 %v1491_v51  ;;  %975 = vmatprep.subr.bf16.mxu0 %v1492_v53  ;;  %v349_v51 = vld [vmem:[#allocation2] sm:$0xff] }
  0x46   : > { %1016 = vmatprep.subr.bf16.mxu1 %v1494_v54 }
  0x48   : > { %976 = vmatpush2.bf16.msra.mxu0 %v1496_v55  ;;  %v350_v55 = vld [vmem:[#allocation2 + $0x8] sm:$0xff] }
  0x49   : > { %1017 = vmatpush2.bf16.msra.mxu1 %v1497_v56  ;;  %977 = vmatprep.subr.bf16.mxu0 %v1498_v57 }
  0x4a   : > { %1018 = vmatprep.subr.bf16.mxu1 %v1500_v58 }
  0x4c   : > { %978 = vmatpush2.bf16.msra.mxu0 %v1502_v59 }
  0x4d   : > { %1019 = vmatpush2.bf16.msra.mxu1 %v1503_v60  ;;  %979 = vmatprep.subr.bf16.mxu0 %v1504_v61 }
  0x4e   : > { %1020 = vmatprep.subr.bf16.mxu1 %v1506_v62 }
  0x50   : > { %980 = vmatpush2.bf16.msra.mxu0 %v1508_v63 }
  0x51   : > { %1021 = vmatpush2.bf16.msra.mxu1 %v1509_v0  ;;  %981 = vmatprep.subr.bf16.mxu0 %v1510_v1 }
  0x52   : > { %1022 = vmatprep.subr.bf16.mxu1 %v1512_v2 }
  0x54   : > { %982 = vmatpush2.bf16.msra.mxu0 %v1514_v3 }
  0x55   : > { %1023 = vmatpush2.bf16.msra.mxu1 %v1515_v4  ;;  %1033 = vmatprep.subr.bf16.mxu0 %v1522_v5 }
  0x57   : > { %984 = vmatmul.mubr.bf16.vlgmr.msra.gmra.mxu0 %v1284_v6 }
  0x58   : > { %1025 = vmatmul.mubr.bf16.vlgmr.msra.gmra.mxu1 %v1286_v7  ;;  %1034 = vmatpush1.bf16.msra.mxu0 %v1520_v8 }
  0x59   : > { %1065 = vmatprep.mubr.bf16.mxu0 %v1289_v11  ;;  %1035 = vmatprep.subr.bf16.mxu0 %v1525_v10 }
  0x5c   : > { %1036 = vmatpush1.bf16.msra.mxu0 %v1523_v12 }
  0x5d   : > { %1037 = vmatprep.subr.bf16.mxu0 %v1528_v13 }
  0x60   : > { %1038 = vmatpush1.bf16.msra.mxu0 %v1526_v14 }
  0x61   : > { %1039 = vmatprep.subr.bf16.mxu0 %v1531_v15 }
  0x64   : > { %1040 = vmatpush1.bf16.msra.mxu0 %v1529_v16 }
  0x65   : > { %1041 = vmatprep.subr.bf16.mxu0 %v1534_v17 }
  0x68   : > { %1042 = vmatpush1.bf16.msra.mxu0 %v1532_v18 }
  0x69   : > { %1043 = vmatprep.subr.bf16.mxu0 %v1537_v19 }
  0x6c   : > { %1044 = vmatpush1.bf16.msra.mxu0 %v1535_v20 }
  0x6d   : > { %1045 = vmatprep.subr.bf16.mxu0 %v1540_v21 }
  0x70   : > { %1046 = vmatpush1.bf16.msra.mxu0 %v1538_v22 }
  0x71   : > { %1047 = vmatprep.subr.bf16.mxu0 %v1543_v23 }
  0x74   : > { %1048 = vmatpush1.bf16.msra.mxu0 %v1541_v24 }
  0x75   : > { %1049 = vmatprep.subr.bf16.mxu0 %v1546_v25 }
  0x78   : > { %1050 = vmatpush2.bf16.msra.mxu0 %v1544_v26 }
  0x79   : > { %1051 = vmatprep.subr.bf16.mxu0 %v1549_v27 }
  0x7c   : > { %1052 = vmatpush2.bf16.msra.mxu0 %v1547_v28 }
  0x7d   : > { %1053 = vmatprep.subr.bf16.mxu0 %v1552_v29 }
  0x80   : > { %1054 = vmatpush2.bf16.msra.mxu0 %v1550_v30 }
  0x81   : > { %1055 = vmatprep.subr.bf16.mxu0 %v1555_v31 }
  0x84   : > { %1056 = vmatpush2.bf16.msra.mxu0 %v1553_v32 }
  0x85   : > { %1057 = vmatprep.subr.bf16.mxu0 %v1558_v33 }
  0x88   : > { %1058 = vmatpush2.bf16.msra.mxu0 %v1556_v34 }
  0x89   : > { %1059 = vmatprep.subr.bf16.mxu0 %v1561_v35 }
  0x8c   : > { %1060 = vmatpush2.bf16.msra.mxu0 %v1559_v36 }
  0x8d   : > { %1061 = vmatprep.subr.bf16.mxu0 %v1564_v37 }
  0x90   : > { %1062 = vmatpush2.bf16.msra.mxu0 %v1562_v38 }
  0x91   : > { %1063 = vmatprep.subr.bf16.mxu0 %v1567_v39 }
  0x94   : > { %1064 = vmatpush2.bf16.msra.mxu0 %v1565_v40 }
  0x97   : > { %1066 = vmatmul.mubr.bf16.vlgmr.msra.gmra.mxu0 %v1288_v41 }
 0x117   : > { %v985_v42 = vpop.f32.mrf.mxu0 }
 0x118   : > { %v1026_v43 = vpop.f32.mrf.mxu1 }
 0x119   : > { %v987_v44 = vpop.f32.mrf.mxu0  ;;  %v1027_v50 = vadd.f32 %v1026_v43, %v985_v42 }
 0x11a   : > { %v1028_v45 = vpop.f32.mrf.mxu1 }
 0x11b   : > { %v989_v46 = vpop.f32.mrf.mxu0  ;;  %v1029_v53 = vadd.f32 %v1028_v45, %v987_v44 }
 0x11c   : > { %v1030_v47 = vpop.f32.mrf.mxu1 }
 0x11d   : > { %v990_v48 = vpop.f32.mrf.mxu0 }
 0x11e   : > { %v1031_v49 = vpop.f32.mrf.mxu1 }
 0x157   : > { %v1067_v52 = vpop.f32.mrf.mxu0 }
 0x158   : > { %v1068_v54 = vadd.f32 %v1067_v52, %v1027_v50 }
 0x159   : > { %v1069_v56 = vpop.f32.mrf.mxu0 }
 0x15a   : > { %v1074_v57 = vadd.f32 %v1068_v54, %v349_v51  ;;  %v1070_v58 = vadd.f32 %v1069_v56, %v1029_v53  ;;  %1081 = sbr.rel (%p1386_p7) target bundleno = 371 (0x173), region = 44 }
 0x15b   : > { %v1071_v59 = vpop.f32.mrf.mxu0 }
 0x15c   : > { %1076 = vst [vmem:[#allocation2] sm:$0xff] %v1074_v57  ;;  %v1075_v60 = vadd.f32 %v1070_v58, %v350_v55 }
 0x15d   : > { %v1072_v61 = vpop.f32.mrf.mxu0 }
 0x15e   : > { %1077 = vst [vmem:[#allocation2 + $0x8] sm:$0xff] %v1075_v60 }
 0x15f   : > { %v1086_v62 = vlaneseq  ;;  %v1084_v0 = vld [vmem:[%s1782_s2] ss:$2 sm:$0x3]  ;;  %v1387_v1 = vld [vmem:[%s1782_s2 + $0x1] ss:$2 sm:$0x3] }
 0x160   : > { %v1113_v6 = vld [vmem:[%s1783_s3] sm:$0xff] }
 0x161   : > { %v1087_v63 = vshrl.u32 %v1086_v62, 7  ;;  %v1114_v13 = vunpack.c.l.bf16 %v1113_v6  ;;  %v1115_v14 = vunpack.c.h.bf16 %v1113_v6 }
 0x163   : > { %v1088_v2 = vsub.s32 0, %v1087_v63  ;;  %v1092_v3 = vsub.s32 1, %v1087_v63  ;;  %v1082_v4 = vld [vmem:[#allocation2] sm:$0xff] }
 0x165   : > { %v1083_v5 = vld [vmem:[#allocation2 + $0x8] sm:$0xff]  ;;  %v1089_v7 = vrot.slane %v1084_v0, %v1088_v2  ;;  %v1093_v8 = vrot.slane %v1084_v0, %v1092_v3  ;;  %v1104_v9 = vrot.slane %v1387_v1, %v1088_v2  ;;  %v1108_v10 = vrot.slane %v1387_v1, %v1092_v3 }
 0x167   : > { %v1096_v11 = vmul.f32 %v1089_v7, %v1082_v4  ;;  %v1097_v12 = vmul.f32 %v1093_v8, %v1083_v5 }
 0x169   : > { %v1111_v15 = vadd.f32 %v1104_v9, %v1096_v11  ;;  %v1112_v16 = vadd.f32 %v1108_v10, %v1097_v12 }
 0x16b   : > { %v1116_v17 = vadd.f32 %v1114_v13, %v1111_v15  ;;  %v1117_v18 = vadd.f32 %v1115_v14, %v1112_v16 }
 0x16d   : > { %vm1118_vm0 = vcmp.ge.f32.partialorder %v1116_v17, 0.0  ;;  %vm1119_vm1 = vcmp.ge.f32.partialorder %v1117_v18, 0.0  ;;  %v1120_v19 = vmul.f32 0.01, %v1116_v17  ;;  %v1121_v20 = vmul.f32 0.01, %v1117_v18 }
 0x16f   : > { %v1122_v21 = vsel %vm1118_vm0, %v1116_v17, %v1120_v19  ;;  %v1123_v22 = vsel %vm1119_vm1, %v1117_v18, %v1121_v20 }
 0x170   : > { %v1394_v23 = vpack.c.bf16 %v1123_v22, %v1122_v21 }
 0x172   : > { %1132 = vst [vmem:[%s1784_s4] sm:$0xff] %v1394_v23 }
 0x173 PF: > { %s14_s17 = sadd.s32 1, %s1592_s17   ;;  %s1785_s15 = smov %s1588_s16 }
 0x174   : > { %p11_p8 = scmp.ge.s32.totalorder %s14_s17, 5   ;;  %s1786_s16 = smov %s1788_s18 }
 0x176   :  { %13 = sbr.rel (!%p11_p8) target bundleno = 2 (0x2), region = 84 }

// kernel: a_call__.23
= control target key start
LH: loop header
LB: loop body
LE: loop exit
PB: predicated region body
PF: predicated region fallthrough
CT: control target
= control target key end

     0   :  { %s986_s1 = inlined_call_operand.vmem [shape: bf16[256,512], index: 1, kind: input, shape index: {}]   ;;  %s987_s0 = inlined_call_operand.vmem [shape: bf16[8,256], index: 0, kind: input, shape index: {}]   ;;  %s988_s2 = inlined_call_operand.vmem [shape: f32[2,512], index: 2, kind: input, shape index: {}]   ;;  %s989_s3 = inlined_call_operand.vmem [shape: bf16[8,512], index: 3, kind: output, shape index: {}]  }
   0x1   :  { %v661_v0 = vld [vmem:[%s986_s1 + $0xe4] ss:$16 sps:$4 sm:$0xff]   ;;  %v663_v1 = vld [vmem:[%s986_s1 + $0xec] ss:$16 sps:$4 sm:$0xff]   ;;  %v665_v2 = vld [vmem:[%s986_s1 + $0xe0] ss:$16 sps:$4 sm:$0xff]  }
   0x2   :  { %418 = vmatprep.subr.bf16.mxu0 %v661_v0  ;;  %v666_v3 = vld [vmem:[%s986_s1 + $0xe8] ss:$16 sps:$4 sm:$0xff]   ;;  %459 = vmatprep.subr.bf16.mxu1 %v663_v1  ;;  %v667_v4 = vld [vmem:[%s986_s1 + $0xc4] ss:$16 sps:$4 sm:$0xff]   ;;  %v669_v5 = vld [vmem:[%s986_s1 + $0xcc] ss:$16 sps:$4 sm:$0xff]  }
   0x3   :  { %419 = vmatpush1.bf16.msra.mxu0 %v665_v2  ;;  %460 = vmatpush1.bf16.msra.mxu1 %v666_v3  ;;  %v671_v6 = vld [vmem:[%s986_s1 + $0xc0] ss:$16 sps:$4 sm:$0xff]   ;;  %v672_v7 = vld [vmem:[%s986_s1 + $0xc8] ss:$16 sps:$4 sm:$0xff]   ;;  %v673_v8 = vld [vmem:[%s986_s1 + $0xa4] ss:$16 sps:$4 sm:$0xff]   ;;  %v517_v3 = vlaneseq }
   0x4   :  { %420 = vmatprep.subr.bf16.mxu0 %v667_v4  ;;  %461 = vmatprep.subr.bf16.mxu1 %v669_v5  ;;  %v675_v9 = vld [vmem:[%s986_s1 + $0xac] ss:$16 sps:$4 sm:$0xff]   ;;  %v677_v10 = vld [vmem:[%s986_s1 + $0xa0] ss:$16 sps:$4 sm:$0xff]   ;;  %v678_v11 = vld [vmem:[%s986_s1 + $0xa8] ss:$16 sps:$4 sm:$0xff]  }
   0x5   :  { %v679_v12 = vld [vmem:[%s986_s1 + $0x84] ss:$16 sps:$4 sm:$0xff]   ;;  %v681_v13 = vld [vmem:[%s986_s1 + $0x8c] ss:$16 sps:$4 sm:$0xff]   ;;  %v683_v14 = vld [vmem:[%s986_s1 + $0x80] ss:$16 sps:$4 sm:$0xff]  }
   0x6   :  { %v684_v15 = vld [vmem:[%s986_s1 + $0x88] ss:$16 sps:$4 sm:$0xff]   ;;  %v685_v16 = vld [vmem:[%s986_s1 + $0x64] ss:$16 sps:$4 sm:$0xff]   ;;  %v687_v17 = vld [vmem:[%s986_s1 + $0x6c] ss:$16 sps:$4 sm:$0xff]  }
   0x7   :  { %421 = vmatpush1.bf16.msra.mxu0 %v671_v6  ;;  %462 = vmatpush1.bf16.msra.mxu1 %v672_v7  ;;  %v689_v18 = vld [vmem:[%s986_s1 + $0x60] ss:$16 sps:$4 sm:$0xff]   ;;  %v690_v19 = vld [vmem:[%s986_s1 + $0x68] ss:$16 sps:$4 sm:$0xff]   ;;  %v691_v20 = vld [vmem:[%s986_s1 + $0x44] ss:$16 sps:$4 sm:$0xff]  }
   0x8   :  { %422 = vmatprep.subr.bf16.mxu0 %v673_v8  ;;  %463 = vmatprep.subr.bf16.mxu1 %v675_v9  ;;  %v693_v21 = vld [vmem:[%s986_s1 + $0x4c] ss:$16 sps:$4 sm:$0xff]   ;;  %v695_v22 = vld [vmem:[%s986_s1 + $0x40] ss:$16 sps:$4 sm:$0xff]   ;;  %v696_v23 = vld [vmem:[%s986_s1 + $0x48] ss:$16 sps:$4 sm:$0xff]  }
   0x9   :  { %v697_v24 = vld [vmem:[%s986_s1 + $0x24] ss:$16 sps:$4 sm:$0xff]   ;;  %v699_v25 = vld [vmem:[%s986_s1 + $0x2c] ss:$16 sps:$4 sm:$0xff]   ;;  %v701_v26 = vld [vmem:[%s986_s1 + $0x20] ss:$16 sps:$4 sm:$0xff]  }
   0xa   :  { %v702_v27 = vld [vmem:[%s986_s1 + $0x28] ss:$16 sps:$4 sm:$0xff]   ;;  %v703_v28 = vld [vmem:[%s986_s1 + $0x4] ss:$16 sps:$4 sm:$0xff]   ;;  %v705_v29 = vld [vmem:[%s986_s1 + $0xc] ss:$16 sps:$4 sm:$0xff]  }
   0xb   :  { %423 = vmatpush1.bf16.msra.mxu0 %v677_v10  ;;  %464 = vmatpush1.bf16.msra.mxu1 %v678_v11  ;;  %v707_v30 = vld [vmem:[%s986_s1] ss:$16 sps:$4 sm:$0xff]   ;;  %v708_v31 = vld [vmem:[%s986_s1 + $0x8] ss:$16 sps:$4 sm:$0xff]   ;;  %v709_v32 = vld [vmem:[%s986_s1 + $0x1e4] ss:$16 sps:$4 sm:$0xff]  }
   0xc   :  { %424 = vmatprep.subr.bf16.mxu0 %v679_v12  ;;  %465 = vmatprep.subr.bf16.mxu1 %v681_v13  ;;  %v711_v33 = vld [vmem:[%s986_s1 + $0x1ec] ss:$16 sps:$4 sm:$0xff]   ;;  %v713_v34 = vld [vmem:[%s986_s1 + $0x1e0] ss:$16 sps:$4 sm:$0xff]   ;;  %v714_v35 = vld [vmem:[%s986_s1 + $0x1e8] ss:$16 sps:$4 sm:$0xff]  }
   0xd   :  { %v715_v36 = vld [vmem:[%s986_s1 + $0x1c4] ss:$16 sps:$4 sm:$0xff]   ;;  %v717_v37 = vld [vmem:[%s986_s1 + $0x1cc] ss:$16 sps:$4 sm:$0xff]   ;;  %v719_v38 = vld [vmem:[%s986_s1 + $0x1c0] ss:$16 sps:$4 sm:$0xff]  }
   0xe   :  { %v720_v39 = vld [vmem:[%s986_s1 + $0x1c8] ss:$16 sps:$4 sm:$0xff]   ;;  %v721_v40 = vld [vmem:[%s986_s1 + $0x1a4] ss:$16 sps:$4 sm:$0xff]   ;;  %v723_v41 = vld [vmem:[%s986_s1 + $0x1ac] ss:$16 sps:$4 sm:$0xff]  }
   0xf   :  { %425 = vmatpush1.bf16.msra.mxu0 %v683_v14  ;;  %466 = vmatpush1.bf16.msra.mxu1 %v684_v15  ;;  %v725_v42 = vld [vmem:[%s986_s1 + $0x1a0] ss:$16 sps:$4 sm:$0xff]   ;;  %v726_v43 = vld [vmem:[%s986_s1 + $0x1a8] ss:$16 sps:$4 sm:$0xff]   ;;  %v727_v44 = vld [vmem:[%s986_s1 + $0x184] ss:$16 sps:$4 sm:$0xff]  }
  0x10   :  { %426 = vmatprep.subr.bf16.mxu0 %v685_v16  ;;  %467 = vmatprep.subr.bf16.mxu1 %v687_v17  ;;  %v729_v45 = vld [vmem:[%s986_s1 + $0x18c] ss:$16 sps:$4 sm:$0xff]   ;;  %v26_v46 = vld [vmem:[%s987_s0] sm:$0xff]  ;;  %v732_v49 = vld [vmem:[%s986_s1 + $0x188] ss:$16 sps:$4 sm:$0xff]   ;;  %v518_v4 = vshrl.u32 %v517_v3, 7 }
  0x11   :  { %v591_v47 = vcombine.high %v26_v46, %v26_v46  ;;  %v731_v48 = vld [vmem:[%s986_s1 + $0x180] ss:$16 sps:$4 sm:$0xff]   ;;  %v733_v50 = vld [vmem:[%s986_s1 + $0x164] ss:$16 sps:$4 sm:$0xff]   ;;  %v735_v51 = vld [vmem:[%s986_s1 + $0x16c] ss:$16 sps:$4 sm:$0xff]   ;;  %v590_v2 = vcombine.low %v26_v46, %v26_v46 }
  0x12   :  { %v737_v52 = vld [vmem:[%s986_s1 + $0x160] ss:$16 sps:$4 sm:$0xff]   ;;  %v738_v53 = vld [vmem:[%s986_s1 + $0x168] ss:$16 sps:$4 sm:$0xff]   ;;  %v739_v54 = vld [vmem:[%s986_s1 + $0x144] ss:$16 sps:$4 sm:$0xff]  }
  0x13   :  { %427 = vmatpush1.bf16.msra.mxu0 %v689_v18  ;;  %468 = vmatpush1.bf16.msra.mxu1 %v690_v19  ;;  %v741_v55 = vld [vmem:[%s986_s1 + $0x14c] ss:$16 sps:$4 sm:$0xff]   ;;  %v743_v56 = vld [vmem:[%s986_s1 + $0x140] ss:$16 sps:$4 sm:$0xff]   ;;  %v744_v57 = vld [vmem:[%s986_s1 + $0x148] ss:$16 sps:$4 sm:$0xff]  }
  0x14   :  { %428 = vmatprep.subr.bf16.mxu0 %v691_v20  ;;  %469 = vmatprep.subr.bf16.mxu1 %v693_v21  ;;  %v745_v58 = vld [vmem:[%s986_s1 + $0x124] ss:$16 sps:$4 sm:$0xff]   ;;  %v747_v59 = vld [vmem:[%s986_s1 + $0x12c] ss:$16 sps:$4 sm:$0xff]   ;;  %v749_v60 = vld [vmem:[%s986_s1 + $0x120] ss:$16 sps:$4 sm:$0xff]  }
  0x15   :  { %450 = vmatprep.mubr.bf16.mxu0 %v591_v47  ;;  %491 = vmatprep.mubr.bf16.mxu1 %v591_v47  ;;  %v750_v61 = vld [vmem:[%s986_s1 + $0x128] ss:$16 sps:$4 sm:$0xff]   ;;  %v751_v62 = vld [vmem:[%s986_s1 + $0x104] ss:$16 sps:$4 sm:$0xff]   ;;  %v753_v63 = vld [vmem:[%s986_s1 + $0x10c] ss:$16 sps:$4 sm:$0xff]  }
  0x16   :  { %v755_v0 = vld [vmem:[%s986_s1 + $0x100] ss:$16 sps:$4 sm:$0xff]   ;;  %v756_v1 = vld [vmem:[%s986_s1 + $0x108] ss:$16 sps:$4 sm:$0xff]   ;;  %v519_v5 = vsub.s32 0, %v518_v4  ;;  %v527_v6 = vsub.s32 2, %v518_v4 }
  0x17   :  { %429 = vmatpush1.bf16.msra.mxu0 %v695_v22  ;;  %470 = vmatpush1.bf16.msra.mxu1 %v696_v23  ;;  %v515_v7 = vld [vmem:[%s988_s2] ss:$2 sm:$0xf]  ;;  %v523_v8 = vsub.s32 1, %v518_v4  ;;  %v531_v9 = vsub.s32 3, %v518_v4 }
  0x18   :  { %430 = vmatprep.subr.bf16.mxu0 %v697_v24  ;;  %471 = vmatprep.subr.bf16.mxu1 %v699_v25  ;;  %v520_v10 = vrot.slane %v515_v7, %v519_v5  ;;  %v656_v11 = vld [vmem:[%s988_s2 + $0x1] ss:$2 sm:$0xf]  ;;  %v528_v12 = vrot.slane %v515_v7, %v527_v6 }
  0x19   :  { %v524_v13 = vrot.slane %v515_v7, %v523_v8  ;;  %v532_v14 = vrot.slane %v515_v7, %v531_v9  ;;  %v547_v16 = vrot.slane %v656_v11, %v519_v5  ;;  %v555_v18 = vrot.slane %v656_v11, %v527_v6 }
  0x1a   :  { %v551_v21 = vrot.slane %v656_v11, %v523_v8  ;;  %v559_v22 = vrot.slane %v656_v11, %v531_v9 }
  0x1b   :  { %431 = vmatpush1.bf16.msra.mxu0 %v701_v26  ;;  %472 = vmatpush1.bf16.msra.mxu1 %v702_v27 }
  0x1c   :  { %432 = vmatprep.subr.bf16.mxu0 %v703_v28  ;;  %473 = vmatprep.subr.bf16.mxu1 %v705_v29 }
  0x1f   :  { %433 = vmatpush1.bf16.msra.mxu0 %v707_v30  ;;  %474 = vmatpush1.bf16.msra.mxu1 %v708_v31 }
  0x20   :  { %434 = vmatprep.subr.bf16.mxu0 %v709_v32  ;;  %475 = vmatprep.subr.bf16.mxu1 %v711_v33 }
  0x23   :  { %435 = vmatpush2.bf16.msra.mxu0 %v713_v34  ;;  %476 = vmatpush2.bf16.msra.mxu1 %v714_v35 }
  0x24   :  { %436 = vmatprep.subr.bf16.mxu0 %v715_v36  ;;  %477 = vmatprep.subr.bf16.mxu1 %v717_v37 }
  0x27   :  { %437 = vmatpush2.bf16.msra.mxu0 %v719_v38  ;;  %478 = vmatpush2.bf16.msra.mxu1 %v720_v39 }
  0x28   :  { %438 = vmatprep.subr.bf16.mxu0 %v721_v40  ;;  %479 = vmatprep.subr.bf16.mxu1 %v723_v41 }
  0x2b   :  { %439 = vmatpush2.bf16.msra.mxu0 %v725_v42  ;;  %480 = vmatpush2.bf16.msra.mxu1 %v726_v43 }
  0x2c   :  { %440 = vmatprep.subr.bf16.mxu0 %v727_v44  ;;  %481 = vmatprep.subr.bf16.mxu1 %v729_v45 }
  0x2f   :  { %441 = vmatpush2.bf16.msra.mxu0 %v731_v48  ;;  %482 = vmatpush2.bf16.msra.mxu1 %v732_v49 }
  0x30   :  { %442 = vmatprep.subr.bf16.mxu0 %v733_v50  ;;  %483 = vmatprep.subr.bf16.mxu1 %v735_v51 }
  0x33   :  { %443 = vmatpush2.bf16.msra.mxu0 %v737_v52  ;;  %484 = vmatpush2.bf16.msra.mxu1 %v738_v53 }
  0x34   :  { %444 = vmatprep.subr.bf16.mxu0 %v739_v54  ;;  %485 = vmatprep.subr.bf16.mxu1 %v741_v55 }
  0x37   :  { %445 = vmatpush2.bf16.msra.mxu0 %v743_v56  ;;  %486 = vmatpush2.bf16.msra.mxu1 %v744_v57 }
  0x38   :  { %446 = vmatprep.subr.bf16.mxu0 %v745_v58  ;;  %487 = vmatprep.subr.bf16.mxu1 %v747_v59 }
  0x3b   :  { %447 = vmatpush2.bf16.msra.mxu0 %v749_v60  ;;  %488 = vmatpush2.bf16.msra.mxu1 %v750_v61 }
  0x3c   :  { %448 = vmatprep.subr.bf16.mxu0 %v751_v62  ;;  %489 = vmatprep.subr.bf16.mxu1 %v753_v63 }
  0x3f   :  { %449 = vmatpush2.bf16.msra.mxu0 %v755_v0  ;;  %490 = vmatpush2.bf16.msra.mxu1 %v756_v1 }
  0x42   :  { %451 = vmatmul.mubr.bf16.vlgmr.msra.gmra.mxu0 %v590_v2  ;;  %492 = vmatmul.mubr.bf16.vlgmr.msra.gmra.mxu1 %v590_v2 }
 0x102   :  { %v452_v15 = vpop.f32.mrf.mxu0  ;;  %v493_v17 = vpop.f32.mrf.mxu1 }
 0x103   :  { %v537_v19 = vmul.f32 %v520_v10, %v452_v15  ;;  %v539_v20 = vmul.f32 %v528_v12, %v493_v17 }
 0x104   :  { %v454_v23 = vpop.f32.mrf.mxu0  ;;  %v495_v24 = vpop.f32.mrf.mxu1 }
 0x105   :  { %v538_v25 = vmul.f32 %v524_v13, %v454_v23  ;;  %v540_v26 = vmul.f32 %v532_v14, %v495_v24  ;;  %v564_v29 = vadd.f32 %v547_v16, %v537_v19  ;;  %v566_v30 = vadd.f32 %v555_v18, %v539_v20 }
 0x106   :  { %v456_v27 = vpop.f32.mrf.mxu0  ;;  %v497_v28 = vpop.f32.mrf.mxu1 }
 0x107   :  { %v565_v31 = vadd.f32 %v551_v21, %v538_v25  ;;  %v567_v32 = vadd.f32 %v559_v22, %v540_v26 }
 0x108   :  { %v457_v33 = vpop.f32.mrf.mxu0  ;;  %v498_v34 = vpop.f32.mrf.mxu1 }
 0x109   :  { %v659_v35 = vpack.c.bf16 %v565_v31, %v564_v29  ;;  %v660_v36 = vpack.c.bf16 %v567_v32, %v566_v30 }
 0x10b   :  { %584 = vst [vmem:[%s989_s3] sm:$0xff] %v659_v35  ;;  %585 = vst [vmem:[%s989_s3 + $0x8] sm:$0xff] %v660_v36 }

// kernel: a_call__.24
= control target key start
LH: loop header
LB: loop body
LE: loop exit
PB: predicated region body
PF: predicated region fallthrough
CT: control target
= control target key end

     0   :  { %s2515_s12 = smov 0   ;;  %s2517_s13 = smov 0   ;;  %s2795_s0 = inlined_call_operand.vmem [shape: bf16[8,2304], index: 0, kind: input, shape index: {}]   ;;  %s2796_s1 = inlined_call_operand.vmem [shape: bf16[2304,512], index: 1, kind: input, shape index: {}]   ;;  %s2797_s2 = inlined_call_operand.vmem [shape: f32[2,512], index: 2, kind: input, shape index: {}]   ;;  %s2798_s3 = inlined_call_operand.vmem [shape: bf16[8,512], index: 3, kind: output, shape index: {}]  }
   0x1   :  { %s2519_s14 = smov 0  }
   0x2 LB: > { %s25_s15 = sadd.s32 1, %s2488_s13  ;;  %p1937_p0 = scmp.ge.s32.totalorder %s2492_s14, 1  ;;  %s2492_s14 = sphi %s2519_s14, %s13_s14   ;;  %s2488_s13 = sphi %s2517_s13, %s2800_s13   ;;  %s2484_s12 = sphi %s2515_s12, %s2799_s12  }
   0x3   : > { %p26_p1 = scmp.ge.s32.totalorder %s25_s15, 3  ;;  %p195_p2 = scmp.lt.s32.totalorder %s2492_s14, 4 }
   0x5   : > { %s2802_s15 = smov (%p26_p1, %s25_s15), 0  ;;  %p196_p3 = pnand %p1937_p0, %p195_p2 }
   0x6   : > { %s242_s16 = smul.u32 (!%p196_p3), 6, %s2484_s12  ;;  %p1941_p6 = scmp.ne.s32.totalorder (!%p196_p3), %s2484_s12, 0 }
   0x7   : > { %199 = sbr.rel (%p196_p3) target bundleno = 437 (0x1b5), region = 32 }
   0x8   : > { %s252_s17 = smul.u32 (!%p196_p3), 96, %s2484_s12  ;;  %p245_p4 = scmp.lt.s32.totalorder (!%p196_p3), %s242_s16, 17 }
   0xa   : > { %p254_p5 = scmp.lt.s32.totalorder (!%p196_p3), %s252_s17, 287 }
   0xc   : > { %s2804_s16 = smov (!%p245_p4, %s242_s16), 17  ;;  %s2806_s17 = smov (!%p254_p5, %s252_s17), 287 }
   0xd   : > { %s1938_s18 = sshll.u32 %s2804_s16, 2  ;;  %s2148_s22 = sshll.u32 %s2806_s17, 4 }
   0xe   : > { %s2540_s21 = scalar_lea.vmem %s2795_s0, %s1938_s18  ;;  %s2545_s25 = scalar_lea.vmem %s2796_s1, %s2148_s22 }
   0xf   : > { %283 = sbr.rel (%p1941_p6) target bundleno = 23 (0x17), region = 36 }
  0x14   : > { %v2494_v0 = vmov 0.0  }
  0x15   : > { %284 = vst [vmem:[#allocation2 + $0x10] sm:$0xff] %v2494_v0  ;;  %285 = vst [vmem:[#allocation2] sm:$0xff] %v2494_v0 }
  0x16   : > { %286 = vst [vmem:[#allocation2 + $0x18] sm:$0xff] %v2494_v0  ;;  %287 = vst [vmem:[#allocation2 + $0x8] sm:$0xff] %v2494_v0 }
  0x17 PF: > { %v2176_v1 = vld [vmem:[%s2545_s25 + $0xe4] ss:$16 sps:$4 sm:$0xff]   ;;  %v2180_v3 = vld [vmem:[%s2545_s25 + $0xe0] ss:$16 sps:$4 sm:$0xff]   ;;  %v293_v49 = vld [vmem:[%s2540_s21 + $0x8] sm:$0xff]  ;;  %p2140_p7 = scmp.ne.s32.totalorder %s2484_s12, 2 }
  0x18   : > { %v2178_v2 = vld [vmem:[%s2545_s25 + $0x2e4] ss:$16 sps:$4 sm:$0xff]   ;;  %1468 = vmatprep.subr.bf16.mxu0 %v2176_v1  ;;  %v2181_v4 = vld [vmem:[%s2545_s25 + $0x2e0] ss:$16 sps:$4 sm:$0xff]   ;;  %v2600_v52 = vcombine.high %v293_v49, %v293_v49 }
  0x19   : > { %1509 = vmatprep.subr.bf16.mxu1 %v2178_v2  ;;  %v2182_v5 = vld [vmem:[%s2545_s25 + $0xc4] ss:$16 sps:$4 sm:$0xff]   ;;  %1469 = vmatpush1.bf16.msra.mxu0 %v2180_v3  ;;  %v2186_v7 = vld [vmem:[%s2545_s25 + $0xc0] ss:$16 sps:$4 sm:$0xff]  }
  0x1a   : > { %1510 = vmatpush1.bf16.msra.mxu1 %v2181_v4  ;;  %v2184_v6 = vld [vmem:[%s2545_s25 + $0x2c4] ss:$16 sps:$4 sm:$0xff]   ;;  %1470 = vmatprep.subr.bf16.mxu0 %v2182_v5  ;;  %v2187_v8 = vld [vmem:[%s2545_s25 + $0x2c0] ss:$16 sps:$4 sm:$0xff]  }
  0x1b   : > { %1511 = vmatprep.subr.bf16.mxu1 %v2184_v6  ;;  %v2188_v9 = vld [vmem:[%s2545_s25 + $0xa4] ss:$16 sps:$4 sm:$0xff]   ;;  %v2192_v11 = vld [vmem:[%s2545_s25 + $0xa0] ss:$16 sps:$4 sm:$0xff]   ;;  %1541 = vmatprep.mubr.bf16.mxu1 %v2600_v52  ;;  %v2281_v6 = vld [vmem:[%s2545_s25 + $0xec] ss:$16 sps:$4 sm:$0xff]  }
  0x1c   : > { %v2190_v10 = vld [vmem:[%s2545_s25 + $0x2a4] ss:$16 sps:$4 sm:$0xff]   ;;  %v2193_v12 = vld [vmem:[%s2545_s25 + $0x2a0] ss:$16 sps:$4 sm:$0xff]  }
  0x1d   : > { %1471 = vmatpush1.bf16.msra.mxu0 %v2186_v7  ;;  %v2194_v13 = vld [vmem:[%s2545_s25 + $0x84] ss:$16 sps:$4 sm:$0xff]   ;;  %v2198_v15 = vld [vmem:[%s2545_s25 + $0x80] ss:$16 sps:$4 sm:$0xff]  }
  0x1e   : > { %1512 = vmatpush1.bf16.msra.mxu1 %v2187_v8  ;;  %1472 = vmatprep.subr.bf16.mxu0 %v2188_v9  ;;  %v2196_v14 = vld [vmem:[%s2545_s25 + $0x284] ss:$16 sps:$4 sm:$0xff]   ;;  %v2199_v16 = vld [vmem:[%s2545_s25 + $0x280] ss:$16 sps:$4 sm:$0xff]   ;;  %v2624_v8 = vcombine.low %v293_v49, %v293_v49 }
  0x1f   : > { %1513 = vmatprep.subr.bf16.mxu1 %v2190_v10  ;;  %v2200_v17 = vld [vmem:[%s2545_s25 + $0x64] ss:$16 sps:$4 sm:$0xff]   ;;  %v2204_v19 = vld [vmem:[%s2545_s25 + $0x60] ss:$16 sps:$4 sm:$0xff]   ;;  %v2279_v10 = vld [vmem:[%s2545_s25 + $0xe8] ss:$16 sps:$4 sm:$0xff]  }
  0x20   : > { %v2202_v18 = vld [vmem:[%s2545_s25 + $0x264] ss:$16 sps:$4 sm:$0xff]   ;;  %v2205_v20 = vld [vmem:[%s2545_s25 + $0x260] ss:$16 sps:$4 sm:$0xff]  }
  0x21   : > { %1473 = vmatpush1.bf16.msra.mxu0 %v2192_v11  ;;  %v2206_v21 = vld [vmem:[%s2545_s25 + $0x44] ss:$16 sps:$4 sm:$0xff]   ;;  %v2210_v23 = vld [vmem:[%s2545_s25 + $0x40] ss:$16 sps:$4 sm:$0xff]  }
  0x22   : > { %1514 = vmatpush1.bf16.msra.mxu1 %v2193_v12  ;;  %1474 = vmatprep.subr.bf16.mxu0 %v2194_v13  ;;  %v2208_v22 = vld [vmem:[%s2545_s25 + $0x244] ss:$16 sps:$4 sm:$0xff]   ;;  %v2211_v24 = vld [vmem:[%s2545_s25 + $0x240] ss:$16 sps:$4 sm:$0xff]   ;;  %v2287_v12 = vld [vmem:[%s2545_s25 + $0xcc] ss:$16 sps:$4 sm:$0xff]  }
  0x23   : > { %1515 = vmatprep.subr.bf16.mxu1 %v2196_v14  ;;  %v2212_v25 = vld [vmem:[%s2545_s25 + $0x24] ss:$16 sps:$4 sm:$0xff]   ;;  %v2216_v27 = vld [vmem:[%s2545_s25 + $0x20] ss:$16 sps:$4 sm:$0xff]   ;;  %v2285_v14 = vld [vmem:[%s2545_s25 + $0xc8] ss:$16 sps:$4 sm:$0xff]  }
  0x24   : > { %v2214_v26 = vld [vmem:[%s2545_s25 + $0x224] ss:$16 sps:$4 sm:$0xff]   ;;  %v2217_v28 = vld [vmem:[%s2545_s25 + $0x220] ss:$16 sps:$4 sm:$0xff]  }
  0x25   : > { %1475 = vmatpush1.bf16.msra.mxu0 %v2198_v15  ;;  %v2218_v29 = vld [vmem:[%s2545_s25 + $0x4] ss:$16 sps:$4 sm:$0xff]   ;;  %v2222_v31 = vld [vmem:[%s2545_s25] ss:$16 sps:$4 sm:$0xff]  }
  0x26   : > { %1516 = vmatpush1.bf16.msra.mxu1 %v2199_v16  ;;  %1476 = vmatprep.subr.bf16.mxu0 %v2200_v17  ;;  %v2220_v30 = vld [vmem:[%s2545_s25 + $0x204] ss:$16 sps:$4 sm:$0xff]   ;;  %v2223_v32 = vld [vmem:[%s2545_s25 + $0x200] ss:$16 sps:$4 sm:$0xff]   ;;  %v2293_v16 = vld [vmem:[%s2545_s25 + $0xac] ss:$16 sps:$4 sm:$0xff]  }
  0x27   : > { %1517 = vmatprep.subr.bf16.mxu1 %v2202_v18  ;;  %v2224_v33 = vld [vmem:[%s2545_s25 + $0x1e4] ss:$16 sps:$4 sm:$0xff]   ;;  %v2228_v35 = vld [vmem:[%s2545_s25 + $0x1e0] ss:$16 sps:$4 sm:$0xff]   ;;  %v2291_v18 = vld [vmem:[%s2545_s25 + $0xa8] ss:$16 sps:$4 sm:$0xff]  }
  0x28   : > { %v2226_v34 = vld [vmem:[%s2545_s25 + $0x3e4] ss:$16 sps:$4 sm:$0xff]   ;;  %v2229_v36 = vld [vmem:[%s2545_s25 + $0x3e0] ss:$16 sps:$4 sm:$0xff]  }
  0x29   : > { %1477 = vmatpush1.bf16.msra.mxu0 %v2204_v19  ;;  %v2230_v37 = vld [vmem:[%s2545_s25 + $0x1c4] ss:$16 sps:$4 sm:$0xff]   ;;  %v2234_v39 = vld [vmem:[%s2545_s25 + $0x1c0] ss:$16 sps:$4 sm:$0xff]  }
  0x2a   : > { %1518 = vmatpush1.bf16.msra.mxu1 %v2205_v20  ;;  %1478 = vmatprep.subr.bf16.mxu0 %v2206_v21  ;;  %v2232_v38 = vld [vmem:[%s2545_s25 + $0x3c4] ss:$16 sps:$4 sm:$0xff]   ;;  %v2235_v40 = vld [vmem:[%s2545_s25 + $0x3c0] ss:$16 sps:$4 sm:$0xff]   ;;  %v2299_v20 = vld [vmem:[%s2545_s25 + $0x8c] ss:$16 sps:$4 sm:$0xff]  }
  0x2b   : > { %1519 = vmatprep.subr.bf16.mxu1 %v2208_v22  ;;  %v2236_v41 = vld [vmem:[%s2545_s25 + $0x1a4] ss:$16 sps:$4 sm:$0xff]   ;;  %v2240_v43 = vld [vmem:[%s2545_s25 + $0x1a0] ss:$16 sps:$4 sm:$0xff]   ;;  %v2297_v22 = vld [vmem:[%s2545_s25 + $0x88] ss:$16 sps:$4 sm:$0xff]  }
  0x2c   : > { %v2238_v42 = vld [vmem:[%s2545_s25 + $0x3a4] ss:$16 sps:$4 sm:$0xff]   ;;  %v2241_v44 = vld [vmem:[%s2545_s25 + $0x3a0] ss:$16 sps:$4 sm:$0xff]  }
  0x2d   : > { %1479 = vmatpush1.bf16.msra.mxu0 %v2210_v23  ;;  %v2242_v45 = vld [vmem:[%s2545_s25 + $0x184] ss:$16 sps:$4 sm:$0xff]   ;;  %v2246_v50 = vld [vmem:[%s2545_s25 + $0x180] ss:$16 sps:$4 sm:$0xff]  }
  0x2e   : > { %1520 = vmatpush1.bf16.msra.mxu1 %v2211_v24  ;;  %1480 = vmatprep.subr.bf16.mxu0 %v2212_v25  ;;  %v2244_v46 = vld [vmem:[%s2545_s25 + $0x384] ss:$16 sps:$4 sm:$0xff]   ;;  %v2247_v51 = vld [vmem:[%s2545_s25 + $0x380] ss:$16 sps:$4 sm:$0xff]   ;;  %v2305_v24 = vld [vmem:[%s2545_s25 + $0x6c] ss:$16 sps:$4 sm:$0xff]  }
  0x2f   : > { %1521 = vmatprep.subr.bf16.mxu1 %v2214_v26  ;;  %v292_v47 = vld [vmem:[%s2540_s21] sm:$0xff]  ;;  %v2303_v26 = vld [vmem:[%s2545_s25 + $0x68] ss:$16 sps:$4 sm:$0xff]  }
  0x30   : > { %v2595_v48 = vcombine.high %v292_v47, %v292_v47  ;;  %v2248_v53 = vld [vmem:[%s2545_s25 + $0x164] ss:$16 sps:$4 sm:$0xff]   ;;  %v2252_v55 = vld [vmem:[%s2545_s25 + $0x160] ss:$16 sps:$4 sm:$0xff]   ;;  %v2622_v7 = vcombine.low %v292_v47, %v292_v47 }
  0x31   : > { %1481 = vmatpush1.bf16.msra.mxu0 %v2216_v27  ;;  %v2250_v54 = vld [vmem:[%s2545_s25 + $0x364] ss:$16 sps:$4 sm:$0xff]   ;;  %v2253_v56 = vld [vmem:[%s2545_s25 + $0x360] ss:$16 sps:$4 sm:$0xff]  }
  0x32   : > { %1522 = vmatpush1.bf16.msra.mxu1 %v2217_v28  ;;  %1482 = vmatprep.subr.bf16.mxu0 %v2218_v29  ;;  %v2254_v57 = vld [vmem:[%s2545_s25 + $0x144] ss:$16 sps:$4 sm:$0xff]   ;;  %v2258_v59 = vld [vmem:[%s2545_s25 + $0x140] ss:$16 sps:$4 sm:$0xff]   ;;  %v2311_v28 = vld [vmem:[%s2545_s25 + $0x4c] ss:$16 sps:$4 sm:$0xff]  }
  0x33   : > { %1523 = vmatprep.subr.bf16.mxu1 %v2220_v30  ;;  %1500 = vmatprep.mubr.bf16.mxu0 %v2595_v48  ;;  %v2256_v58 = vld [vmem:[%s2545_s25 + $0x344] ss:$16 sps:$4 sm:$0xff]   ;;  %v2259_v60 = vld [vmem:[%s2545_s25 + $0x340] ss:$16 sps:$4 sm:$0xff]   ;;  %v2309_v30 = vld [vmem:[%s2545_s25 + $0x48] ss:$16 sps:$4 sm:$0xff]  }
  0x34   : > { %v2260_v61 = vld [vmem:[%s2545_s25 + $0x124] ss:$16 sps:$4 sm:$0xff]   ;;  %v2264_v63 = vld [vmem:[%s2545_s25 + $0x120] ss:$16 sps:$4 sm:$0xff]  }
  0x35   : > { %1483 = vmatpush1.bf16.msra.mxu0 %v2222_v31  ;;  %v2262_v62 = vld [vmem:[%s2545_s25 + $0x324] ss:$16 sps:$4 sm:$0xff]   ;;  %v2265_v0 = vld [vmem:[%s2545_s25 + $0x320] ss:$16 sps:$4 sm:$0xff]  }
  0x36   : > { %1524 = vmatpush1.bf16.msra.mxu1 %v2223_v32  ;;  %1484 = vmatprep.subr.bf16.mxu0 %v2224_v33  ;;  %v2266_v1 = vld [vmem:[%s2545_s25 + $0x104] ss:$16 sps:$4 sm:$0xff]   ;;  %v2270_v3 = vld [vmem:[%s2545_s25 + $0x100] ss:$16 sps:$4 sm:$0xff]   ;;  %v2317_v32 = vld [vmem:[%s2545_s25 + $0x2c] ss:$16 sps:$4 sm:$0xff]  }
  0x37   : > { %1525 = vmatprep.subr.bf16.mxu1 %v2226_v34  ;;  %v2268_v2 = vld [vmem:[%s2545_s25 + $0x304] ss:$16 sps:$4 sm:$0xff]   ;;  %v2271_v4 = vld [vmem:[%s2545_s25 + $0x300] ss:$16 sps:$4 sm:$0xff]  }
  0x38   : > { %v2278_v5 = vld [vmem:[%s2545_s25 + $0x4e4] ss:$16 sps:$4 sm:$0xff]   ;;  %v2276_v9 = vld [vmem:[%s2545_s25 + $0x4e0] ss:$16 sps:$4 sm:$0xff]  }
  0x39   : > { %1485 = vmatpush2.bf16.msra.mxu0 %v2228_v35  ;;  %v2284_v11 = vld [vmem:[%s2545_s25 + $0x4c4] ss:$16 sps:$4 sm:$0xff]   ;;  %v2282_v13 = vld [vmem:[%s2545_s25 + $0x4c0] ss:$16 sps:$4 sm:$0xff]  }
  0x3a   : > { %1526 = vmatpush2.bf16.msra.mxu1 %v2229_v36  ;;  %1486 = vmatprep.subr.bf16.mxu0 %v2230_v37  ;;  %v2290_v15 = vld [vmem:[%s2545_s25 + $0x4a4] ss:$16 sps:$4 sm:$0xff]   ;;  %v2288_v17 = vld [vmem:[%s2545_s25 + $0x4a0] ss:$16 sps:$4 sm:$0xff]   ;;  %v2315_v36 = vld [vmem:[%s2545_s25 + $0x28] ss:$16 sps:$4 sm:$0xff]  }
  0x3b   : > { %1527 = vmatprep.subr.bf16.mxu1 %v2232_v38  ;;  %v2296_v19 = vld [vmem:[%s2545_s25 + $0x484] ss:$16 sps:$4 sm:$0xff]   ;;  %v2294_v21 = vld [vmem:[%s2545_s25 + $0x480] ss:$16 sps:$4 sm:$0xff]   ;;  %v2323_v38 = vld [vmem:[%s2545_s25 + $0xc] ss:$16 sps:$4 sm:$0xff]  }
  0x3c   : > { %v2302_v23 = vld [vmem:[%s2545_s25 + $0x464] ss:$16 sps:$4 sm:$0xff]   ;;  %v2300_v25 = vld [vmem:[%s2545_s25 + $0x460] ss:$16 sps:$4 sm:$0xff]  }
  0x3d   : > { %1487 = vmatpush2.bf16.msra.mxu0 %v2234_v39  ;;  %v2308_v27 = vld [vmem:[%s2545_s25 + $0x444] ss:$16 sps:$4 sm:$0xff]   ;;  %v2306_v29 = vld [vmem:[%s2545_s25 + $0x440] ss:$16 sps:$4 sm:$0xff]  }
  0x3e   : > { %1528 = vmatpush2.bf16.msra.mxu1 %v2235_v40  ;;  %1488 = vmatprep.subr.bf16.mxu0 %v2236_v41  ;;  %v2314_v31 = vld [vmem:[%s2545_s25 + $0x424] ss:$16 sps:$4 sm:$0xff]   ;;  %v2312_v34 = vld [vmem:[%s2545_s25 + $0x420] ss:$16 sps:$4 sm:$0xff]   ;;  %v2321_v40 = vld [vmem:[%s2545_s25 + $0x8] ss:$16 sps:$4 sm:$0xff]  }
  0x3f   : > { %1529 = vmatprep.subr.bf16.mxu1 %v2238_v42  ;;  %v2654_v33 = vld [vmem:[%s2540_s21 + $0x10] sm:$0xff]  ;;  %v2329_v42 = vld [vmem:[%s2545_s25 + $0x1ec] ss:$16 sps:$4 sm:$0xff]  }
  0x40   : > { %v2659_v35 = vcombine.high %v2654_v33, %v2654_v33  ;;  %v2320_v37 = vld [vmem:[%s2545_s25 + $0x404] ss:$16 sps:$4 sm:$0xff]   ;;  %v2318_v39 = vld [vmem:[%s2545_s25 + $0x400] ss:$16 sps:$4 sm:$0xff]  }
  0x41   : > { %1489 = vmatpush2.bf16.msra.mxu0 %v2240_v43  ;;  %v2326_v41 = vld [vmem:[%s2545_s25 + $0x5e4] ss:$16 sps:$4 sm:$0xff]   ;;  %v2324_v43 = vld [vmem:[%s2545_s25 + $0x5e0] ss:$16 sps:$4 sm:$0xff]  }
  0x42   : > { %1530 = vmatpush2.bf16.msra.mxu1 %v2241_v44  ;;  %1490 = vmatprep.subr.bf16.mxu0 %v2242_v45  ;;  %v2327_v44 = vld [vmem:[%s2545_s25 + $0x1e8] ss:$16 sps:$4 sm:$0xff]   ;;  %v2332_v45 = vld [vmem:[%s2545_s25 + $0x5c4] ss:$16 sps:$4 sm:$0xff]   ;;  %v2330_v47 = vld [vmem:[%s2545_s25 + $0x5c0] ss:$16 sps:$4 sm:$0xff]  }
  0x43   : > { %1531 = vmatprep.subr.bf16.mxu1 %v2244_v46  ;;  %v2335_v46 = vld [vmem:[%s2545_s25 + $0x1cc] ss:$16 sps:$4 sm:$0xff]   ;;  %v2338_v49 = vld [vmem:[%s2545_s25 + $0x5a4] ss:$16 sps:$4 sm:$0xff]  }
  0x45   : > { %1491 = vmatpush2.bf16.msra.mxu0 %v2246_v50  ;;  %v2341_v50 = vld [vmem:[%s2545_s25 + $0x1ac] ss:$16 sps:$4 sm:$0xff]  }
  0x46   : > { %1532 = vmatpush2.bf16.msra.mxu1 %v2247_v51  ;;  %1492 = vmatprep.subr.bf16.mxu0 %v2248_v53  ;;  %v2336_v51 = vld [vmem:[%s2545_s25 + $0x5a0] ss:$16 sps:$4 sm:$0xff]   ;;  %v2339_v53 = vld [vmem:[%s2545_s25 + $0x1a8] ss:$16 sps:$4 sm:$0xff]  }
  0x47   : > { %1533 = vmatprep.subr.bf16.mxu1 %v2250_v54  ;;  %v2344_v54 = vld [vmem:[%s2545_s25 + $0x584] ss:$16 sps:$4 sm:$0xff]  }
  0x49   : > { %1493 = vmatpush2.bf16.msra.mxu0 %v2252_v55  ;;  %v2347_v55 = vld [vmem:[%s2545_s25 + $0x18c] ss:$16 sps:$4 sm:$0xff]  }
  0x4a   : > { %1534 = vmatpush2.bf16.msra.mxu1 %v2253_v56  ;;  %1494 = vmatprep.subr.bf16.mxu0 %v2254_v57  ;;  %v2342_v56 = vld [vmem:[%s2545_s25 + $0x580] ss:$16 sps:$4 sm:$0xff]   ;;  %v2345_v57 = vld [vmem:[%s2545_s25 + $0x188] ss:$16 sps:$4 sm:$0xff]  }
  0x4b   : > { %1535 = vmatprep.subr.bf16.mxu1 %v2256_v58  ;;  %v2350_v58 = vld [vmem:[%s2545_s25 + $0x564] ss:$16 sps:$4 sm:$0xff]  }
  0x4d   : > { %1495 = vmatpush2.bf16.msra.mxu0 %v2258_v59  ;;  %v2353_v59 = vld [vmem:[%s2545_s25 + $0x16c] ss:$16 sps:$4 sm:$0xff]  }
  0x4e   : > { %1536 = vmatpush2.bf16.msra.mxu1 %v2259_v60  ;;  %1496 = vmatprep.subr.bf16.mxu0 %v2260_v61  ;;  %v2348_v60 = vld [vmem:[%s2545_s25 + $0x560] ss:$16 sps:$4 sm:$0xff]   ;;  %v2351_v61 = vld [vmem:[%s2545_s25 + $0x168] ss:$16 sps:$4 sm:$0xff]  }
  0x4f   : > { %1537 = vmatprep.subr.bf16.mxu1 %v2262_v62  ;;  %v2356_v62 = vld [vmem:[%s2545_s25 + $0x544] ss:$16 sps:$4 sm:$0xff]  }
  0x51   : > { %1497 = vmatpush2.bf16.msra.mxu0 %v2264_v63  ;;  %v2359_v63 = vld [vmem:[%s2545_s25 + $0x14c] ss:$16 sps:$4 sm:$0xff]  }
  0x52   : > { %1538 = vmatpush2.bf16.msra.mxu1 %v2265_v0  ;;  %1498 = vmatprep.subr.bf16.mxu0 %v2266_v1  ;;  %v2354_v0 = vld [vmem:[%s2545_s25 + $0x540] ss:$16 sps:$4 sm:$0xff]   ;;  %v2357_v1 = vld [vmem:[%s2545_s25 + $0x148] ss:$16 sps:$4 sm:$0xff]  }
  0x53   : > { %1539 = vmatprep.subr.bf16.mxu1 %v2268_v2  ;;  %v2362_v2 = vld [vmem:[%s2545_s25 + $0x524] ss:$16 sps:$4 sm:$0xff]  }
  0x55   : > { %1499 = vmatpush2.bf16.msra.mxu0 %v2270_v3  ;;  %v2365_v3 = vld [vmem:[%s2545_s25 + $0x12c] ss:$16 sps:$4 sm:$0xff]  }
  0x56   : > { %1540 = vmatpush2.bf16.msra.mxu1 %v2271_v4  ;;  %1550 = vmatprep.subr.bf16.mxu0 %v2278_v5  ;;  %v2360_v4 = vld [vmem:[%s2545_s25 + $0x520] ss:$16 sps:$4 sm:$0xff]   ;;  %v2363_v5 = vld [vmem:[%s2545_s25 + $0x128] ss:$16 sps:$4 sm:$0xff]  }
  0x57   : > { %1591 = vmatprep.subr.bf16.mxu1 %v2281_v6  ;;  %v2368_v6 = vld [vmem:[%s2545_s25 + $0x504] ss:$16 sps:$4 sm:$0xff]  }
  0x58   : > { %1501 = vmatmul.mubr.bf16.vlgmr.msra.gmra.mxu0 %v2622_v7 }
  0x59   : > { %1542 = vmatmul.mubr.bf16.vlgmr.msra.gmra.mxu1 %v2624_v8  ;;  %1551 = vmatpush1.bf16.msra.mxu0 %v2276_v9  ;;  %v2371_v9 = vld [vmem:[%s2545_s25 + $0x10c] ss:$16 sps:$4 sm:$0xff]  }
  0x5a   : > { %1592 = vmatpush1.bf16.msra.mxu1 %v2279_v10  ;;  %1552 = vmatprep.subr.bf16.mxu0 %v2284_v11  ;;  %v2366_v10 = vld [vmem:[%s2545_s25 + $0x500] ss:$16 sps:$4 sm:$0xff]   ;;  %v2369_v11 = vld [vmem:[%s2545_s25 + $0x108] ss:$16 sps:$4 sm:$0xff]  }
  0x5b   : > { %1593 = vmatprep.subr.bf16.mxu1 %v2287_v12  ;;  %1623 = vmatprep.mubr.bf16.mxu1 %v2595_v48  ;;  %v2333_v48 = vld [vmem:[%s2545_s25 + $0x1c8] ss:$16 sps:$4 sm:$0xff]   ;;  %v2376_v12 = vld [vmem:[%s2545_s25 + $0x2ec] ss:$16 sps:$4 sm:$0xff]  }
  0x5c   : > { %1582 = vmatprep.mubr.bf16.mxu0 %v2659_v35 }
  0x5d   : > { %1553 = vmatpush1.bf16.msra.mxu0 %v2282_v13  ;;  %v2379_v13 = vld [vmem:[%s2545_s25 + $0x4ec] ss:$16 sps:$4 sm:$0xff]  }
  0x5e   : > { %1594 = vmatpush1.bf16.msra.mxu1 %v2285_v14  ;;  %1554 = vmatprep.subr.bf16.mxu0 %v2290_v15  ;;  %v2703_v14 = vcombine.low %v2654_v33, %v2654_v33  ;;  %v2374_v15 = vld [vmem:[%s2545_s25 + $0x2e8] ss:$16 sps:$4 sm:$0xff]  }
  0x5f   : > { %1595 = vmatprep.subr.bf16.mxu1 %v2293_v16  ;;  %v2377_v16 = vld [vmem:[%s2545_s25 + $0x4e8] ss:$16 sps:$4 sm:$0xff]  }
  0x60   : > { %v2404_v33 = vld [vmem:[%s2545_s25 + $0x248] ss:$16 sps:$4 sm:$0xff]  }
  0x61   : > { %1555 = vmatpush1.bf16.msra.mxu0 %v2288_v17  ;;  %v2382_v17 = vld [vmem:[%s2545_s25 + $0x2cc] ss:$16 sps:$4 sm:$0xff]  }
  0x62   : > { %1596 = vmatpush1.bf16.msra.mxu1 %v2291_v18  ;;  %1556 = vmatprep.subr.bf16.mxu0 %v2296_v19  ;;  %v2385_v18 = vld [vmem:[%s2545_s25 + $0x4cc] ss:$16 sps:$4 sm:$0xff]   ;;  %v2380_v19 = vld [vmem:[%s2545_s25 + $0x2c8] ss:$16 sps:$4 sm:$0xff]  }
  0x63   : > { %1597 = vmatprep.subr.bf16.mxu1 %v2299_v20  ;;  %v2383_v20 = vld [vmem:[%s2545_s25 + $0x4c8] ss:$16 sps:$4 sm:$0xff]  }
  0x65   : > { %1557 = vmatpush1.bf16.msra.mxu0 %v2294_v21  ;;  %v2388_v21 = vld [vmem:[%s2545_s25 + $0x2ac] ss:$16 sps:$4 sm:$0xff]  }
  0x66   : > { %1598 = vmatpush1.bf16.msra.mxu1 %v2297_v22  ;;  %1558 = vmatprep.subr.bf16.mxu0 %v2302_v23  ;;  %v2391_v22 = vld [vmem:[%s2545_s25 + $0x4ac] ss:$16 sps:$4 sm:$0xff]   ;;  %v2389_v23 = vld [vmem:[%s2545_s25 + $0x4a8] ss:$16 sps:$4 sm:$0xff]  }
  0x67   : > { %1599 = vmatprep.subr.bf16.mxu1 %v2305_v24  ;;  %v2394_v24 = vld [vmem:[%s2545_s25 + $0x28c] ss:$16 sps:$4 sm:$0xff]  }
  0x69   : > { %1559 = vmatpush1.bf16.msra.mxu0 %v2300_v25  ;;  %v2397_v25 = vld [vmem:[%s2545_s25 + $0x48c] ss:$16 sps:$4 sm:$0xff]  }
  0x6a   : > { %1600 = vmatpush1.bf16.msra.mxu1 %v2303_v26  ;;  %1560 = vmatprep.subr.bf16.mxu0 %v2308_v27  ;;  %v2392_v26 = vld [vmem:[%s2545_s25 + $0x288] ss:$16 sps:$4 sm:$0xff]   ;;  %v2400_v27 = vld [vmem:[%s2545_s25 + $0x26c] ss:$16 sps:$4 sm:$0xff]  }
  0x6b   : > { %1601 = vmatprep.subr.bf16.mxu1 %v2311_v28  ;;  %v2403_v28 = vld [vmem:[%s2545_s25 + $0x46c] ss:$16 sps:$4 sm:$0xff]  }
  0x6d   : > { %1561 = vmatpush1.bf16.msra.mxu0 %v2306_v29  ;;  %v2398_v29 = vld [vmem:[%s2545_s25 + $0x268] ss:$16 sps:$4 sm:$0xff]  }
  0x6e   : > { %1602 = vmatpush1.bf16.msra.mxu1 %v2309_v30  ;;  %1562 = vmatprep.subr.bf16.mxu0 %v2314_v31  ;;  %v2401_v30 = vld [vmem:[%s2545_s25 + $0x468] ss:$16 sps:$4 sm:$0xff]   ;;  %v2406_v31 = vld [vmem:[%s2545_s25 + $0x24c] ss:$16 sps:$4 sm:$0xff]  }
  0x6f   : > { %1603 = vmatprep.subr.bf16.mxu1 %v2317_v32  ;;  %v2409_v32 = vld [vmem:[%s2545_s25 + $0x44c] ss:$16 sps:$4 sm:$0xff]  }
  0x71   : > { %1563 = vmatpush1.bf16.msra.mxu0 %v2312_v34  ;;  %v2407_v34 = vld [vmem:[%s2545_s25 + $0x448] ss:$16 sps:$4 sm:$0xff]  }
  0x72   : > { %1604 = vmatpush1.bf16.msra.mxu1 %v2315_v36  ;;  %1564 = vmatprep.subr.bf16.mxu0 %v2320_v37  ;;  %v2415_v36 = vld [vmem:[%s2545_s25 + $0x42c] ss:$16 sps:$4 sm:$0xff]   ;;  %v2410_v37 = vld [vmem:[%s2545_s25 + $0x228] ss:$16 sps:$4 sm:$0xff]  }
  0x73   : > { %1605 = vmatprep.subr.bf16.mxu1 %v2323_v38  ;;  %v2413_v38 = vld [vmem:[%s2545_s25 + $0x428] ss:$16 sps:$4 sm:$0xff]  }
  0x75   : > { %1565 = vmatpush1.bf16.msra.mxu0 %v2318_v39  ;;  %v2418_v39 = vld [vmem:[%s2545_s25 + $0x20c] ss:$16 sps:$4 sm:$0xff]  }
  0x76   : > { %1606 = vmatpush1.bf16.msra.mxu1 %v2321_v40  ;;  %1566 = vmatprep.subr.bf16.mxu0 %v2326_v41  ;;  %v2421_v40 = vld [vmem:[%s2545_s25 + $0x40c] ss:$16 sps:$4 sm:$0xff]   ;;  %v2416_v41 = vld [vmem:[%s2545_s25 + $0x208] ss:$16 sps:$4 sm:$0xff]  }
  0x77   : > { %1607 = vmatprep.subr.bf16.mxu1 %v2329_v42  ;;  %v2419_v42 = vld [vmem:[%s2545_s25 + $0x408] ss:$16 sps:$4 sm:$0xff]  }
  0x79   : > { %1567 = vmatpush2.bf16.msra.mxu0 %v2324_v43  ;;  %v2424_v43 = vld [vmem:[%s2545_s25 + $0x3ec] ss:$16 sps:$4 sm:$0xff]  }
  0x7a   : > { %1608 = vmatpush2.bf16.msra.mxu1 %v2327_v44  ;;  %1568 = vmatprep.subr.bf16.mxu0 %v2332_v45  ;;  %v2427_v44 = vld [vmem:[%s2545_s25 + $0x5ec] ss:$16 sps:$4 sm:$0xff]   ;;  %v2422_v45 = vld [vmem:[%s2545_s25 + $0x3e8] ss:$16 sps:$4 sm:$0xff]  }
  0x7b   : > { %1609 = vmatprep.subr.bf16.mxu1 %v2335_v46  ;;  %v2425_v46 = vld [vmem:[%s2545_s25 + $0x5e8] ss:$16 sps:$4 sm:$0xff]  }
  0x7d   : > { %1569 = vmatpush2.bf16.msra.mxu0 %v2330_v47  ;;  %v2430_v47 = vld [vmem:[%s2545_s25 + $0x3cc] ss:$16 sps:$4 sm:$0xff]  }
  0x7e   : > { %1610 = vmatpush2.bf16.msra.mxu1 %v2333_v48  ;;  %1570 = vmatprep.subr.bf16.mxu0 %v2338_v49  ;;  %v2433_v48 = vld [vmem:[%s2545_s25 + $0x5cc] ss:$16 sps:$4 sm:$0xff]   ;;  %v2428_v49 = vld [vmem:[%s2545_s25 + $0x3c8] ss:$16 sps:$4 sm:$0xff]  }
  0x7f   : > { %1611 = vmatprep.subr.bf16.mxu1 %v2341_v50  ;;  %v2431_v50 = vld [vmem:[%s2545_s25 + $0x5c8] ss:$16 sps:$4 sm:$0xff]  }
  0x81   : > { %1571 = vmatpush2.bf16.msra.mxu0 %v2336_v51  ;;  %v2436_v51 = vld [vmem:[%s2545_s25 + $0x3ac] ss:$16 sps:$4 sm:$0xff]  }
  0x82   : > { %1612 = vmatpush2.bf16.msra.mxu1 %v2339_v53  ;;  %1572 = vmatprep.subr.bf16.mxu0 %v2344_v54  ;;  %v2439_v53 = vld [vmem:[%s2545_s25 + $0x5ac] ss:$16 sps:$4 sm:$0xff]   ;;  %v2434_v54 = vld [vmem:[%s2545_s25 + $0x3a8] ss:$16 sps:$4 sm:$0xff]  }
  0x83   : > { %1613 = vmatprep.subr.bf16.mxu1 %v2347_v55  ;;  %v2437_v55 = vld [vmem:[%s2545_s25 + $0x5a8] ss:$16 sps:$4 sm:$0xff]  }
  0x85   : > { %1573 = vmatpush2.bf16.msra.mxu0 %v2342_v56  ;;  %v2442_v56 = vld [vmem:[%s2545_s25 + $0x38c] ss:$16 sps:$4 sm:$0xff]  }
  0x86   : > { %1614 = vmatpush2.bf16.msra.mxu1 %v2345_v57  ;;  %1574 = vmatprep.subr.bf16.mxu0 %v2350_v58  ;;  %v2445_v57 = vld [vmem:[%s2545_s25 + $0x58c] ss:$16 sps:$4 sm:$0xff]   ;;  %v2440_v58 = vld [vmem:[%s2545_s25 + $0x388] ss:$16 sps:$4 sm:$0xff]  }
  0x87   : > { %1615 = vmatprep.subr.bf16.mxu1 %v2353_v59  ;;  %v2443_v59 = vld [vmem:[%s2545_s25 + $0x588] ss:$16 sps:$4 sm:$0xff]  }
  0x89   : > { %1575 = vmatpush2.bf16.msra.mxu0 %v2348_v60  ;;  %v2448_v60 = vld [vmem:[%s2545_s25 + $0x36c] ss:$16 sps:$4 sm:$0xff]  }
  0x8a   : > { %1616 = vmatpush2.bf16.msra.mxu1 %v2351_v61  ;;  %1576 = vmatprep.subr.bf16.mxu0 %v2356_v62  ;;  %v2451_v61 = vld [vmem:[%s2545_s25 + $0x56c] ss:$16 sps:$4 sm:$0xff]   ;;  %v2446_v62 = vld [vmem:[%s2545_s25 + $0x368] ss:$16 sps:$4 sm:$0xff]  }
  0x8b   : > { %1617 = vmatprep.subr.bf16.mxu1 %v2359_v63  ;;  %v2449_v63 = vld [vmem:[%s2545_s25 + $0x568] ss:$16 sps:$4 sm:$0xff]  }
  0x8d   : > { %1577 = vmatpush2.bf16.msra.mxu0 %v2354_v0  ;;  %v2454_v0 = vld [vmem:[%s2545_s25 + $0x34c] ss:$16 sps:$4 sm:$0xff]  }
  0x8e   : > { %1618 = vmatpush2.bf16.msra.mxu1 %v2357_v1  ;;  %1578 = vmatprep.subr.bf16.mxu0 %v2362_v2  ;;  %v2457_v1 = vld [vmem:[%s2545_s25 + $0x54c] ss:$16 sps:$4 sm:$0xff]   ;;  %v2452_v2 = vld [vmem:[%s2545_s25 + $0x348] ss:$16 sps:$4 sm:$0xff]  }
  0x8f   : > { %1619 = vmatprep.subr.bf16.mxu1 %v2365_v3  ;;  %v2455_v3 = vld [vmem:[%s2545_s25 + $0x548] ss:$16 sps:$4 sm:$0xff]  }
  0x91   : > { %1579 = vmatpush2.bf16.msra.mxu0 %v2360_v4  ;;  %v2460_v4 = vld [vmem:[%s2545_s25 + $0x32c] ss:$16 sps:$4 sm:$0xff]  }
  0x92   : > { %1620 = vmatpush2.bf16.msra.mxu1 %v2363_v5  ;;  %1580 = vmatprep.subr.bf16.mxu0 %v2368_v6  ;;  %v2463_v5 = vld [vmem:[%s2545_s25 + $0x52c] ss:$16 sps:$4 sm:$0xff]   ;;  %v2458_v6 = vld [vmem:[%s2545_s25 + $0x328] ss:$16 sps:$4 sm:$0xff]  }
  0x93   : > { %1621 = vmatprep.subr.bf16.mxu1 %v2371_v9  ;;  %v2461_v9 = vld [vmem:[%s2545_s25 + $0x528] ss:$16 sps:$4 sm:$0xff]  }
  0x95   : > { %1581 = vmatpush2.bf16.msra.mxu0 %v2366_v10  ;;  %v2466_v10 = vld [vmem:[%s2545_s25 + $0x30c] ss:$16 sps:$4 sm:$0xff]  }
  0x96   : > { %1622 = vmatpush2.bf16.msra.mxu1 %v2369_v11  ;;  %1632 = vmatprep.subr.bf16.mxu0 %v2376_v12  ;;  %v2469_v11 = vld [vmem:[%s2545_s25 + $0x50c] ss:$16 sps:$4 sm:$0xff]   ;;  %v2464_v12 = vld [vmem:[%s2545_s25 + $0x308] ss:$16 sps:$4 sm:$0xff]  }
  0x97   : > { %1673 = vmatprep.subr.bf16.mxu1 %v2379_v13  ;;  %v2467_v13 = vld [vmem:[%s2545_s25 + $0x508] ss:$16 sps:$4 sm:$0xff]  }
  0x98   : > { %1583 = vmatmul.mubr.bf16.vlgmr.msra.gmra.mxu0 %v2703_v14 }
  0x99   : > { %1624 = vmatmul.mubr.bf16.vlgmr.msra.gmra.mxu1 %v2622_v7  ;;  %1633 = vmatpush1.bf16.msra.mxu0 %v2374_v15  ;;  %v2386_v7 = vld [vmem:[%s2545_s25 + $0x2a8] ss:$16 sps:$4 sm:$0xff]  }
  0x9a   : > { %1674 = vmatpush1.bf16.msra.mxu1 %v2377_v16  ;;  %1634 = vmatprep.subr.bf16.mxu0 %v2382_v17 }
  0x9b   : > { %1675 = vmatprep.subr.bf16.mxu1 %v2385_v18  ;;  %1664 = vmatprep.mubr.bf16.mxu0 %v2600_v52  ;;  %v2395_v52 = vld [vmem:[%s2545_s25 + $0x488] ss:$16 sps:$4 sm:$0xff]  }
  0x9c   : > { %1705 = vmatprep.mubr.bf16.mxu1 %v2659_v35  ;;  %v2412_v35 = vld [vmem:[%s2545_s25 + $0x22c] ss:$16 sps:$4 sm:$0xff]  }
  0x9d   : > { %1635 = vmatpush1.bf16.msra.mxu0 %v2380_v19 }
  0x9e   : > { %1676 = vmatpush1.bf16.msra.mxu1 %v2383_v20  ;;  %1636 = vmatprep.subr.bf16.mxu0 %v2388_v21 }
  0x9f   : > { %1677 = vmatprep.subr.bf16.mxu1 %v2391_v22 }
  0xa1   : > { %1637 = vmatpush1.bf16.msra.mxu0 %v2386_v7 }
  0xa2   : > { %1678 = vmatpush1.bf16.msra.mxu1 %v2389_v23  ;;  %1638 = vmatprep.subr.bf16.mxu0 %v2394_v24  ;;  %v288_v23 = vld [vmem:[#allocation2 + $0x10] sm:$0xff] }
  0xa3   : > { %1679 = vmatprep.subr.bf16.mxu1 %v2397_v25 }
  0xa5   : > { %1639 = vmatpush1.bf16.msra.mxu0 %v2392_v26 }
  0xa6   : > { %1680 = vmatpush1.bf16.msra.mxu1 %v2395_v52  ;;  %1640 = vmatprep.subr.bf16.mxu0 %v2400_v27  ;;  %v289_v27 = vld [vmem:[#allocation2] sm:$0xff] }
  0xa7   : > { %1681 = vmatprep.subr.bf16.mxu1 %v2403_v28 }
  0xa9   : > { %1641 = vmatpush1.bf16.msra.mxu0 %v2398_v29 }
  0xaa   : > { %1682 = vmatpush1.bf16.msra.mxu1 %v2401_v30  ;;  %1642 = vmatprep.subr.bf16.mxu0 %v2406_v31 }
  0xab   : > { %1683 = vmatprep.subr.bf16.mxu1 %v2409_v32 }
  0xad   : > { %1643 = vmatpush1.bf16.msra.mxu0 %v2404_v33 }
  0xae   : > { %1684 = vmatpush1.bf16.msra.mxu1 %v2407_v34  ;;  %1644 = vmatprep.subr.bf16.mxu0 %v2412_v35 }
  0xaf   : > { %1685 = vmatprep.subr.bf16.mxu1 %v2415_v36 }
  0xb1   : > { %1645 = vmatpush1.bf16.msra.mxu0 %v2410_v37 }
  0xb2   : > { %1686 = vmatpush1.bf16.msra.mxu1 %v2413_v38  ;;  %1646 = vmatprep.subr.bf16.mxu0 %v2418_v39  ;;  %v290_v38 = vld [vmem:[#allocation2 + $0x18] sm:$0xff] }
  0xb3   : > { %1687 = vmatprep.subr.bf16.mxu1 %v2421_v40 }
  0xb5   : > { %1647 = vmatpush1.bf16.msra.mxu0 %v2416_v41 }
  0xb6   : > { %1688 = vmatpush1.bf16.msra.mxu1 %v2419_v42  ;;  %1648 = vmatprep.subr.bf16.mxu0 %v2424_v43  ;;  %v291_v43 = vld [vmem:[#allocation2 + $0x8] sm:$0xff] }
  0xb7   : > { %1689 = vmatprep.subr.bf16.mxu1 %v2427_v44 }
  0xb9   : > { %1649 = vmatpush2.bf16.msra.mxu0 %v2422_v45 }
  0xba   : > { %1690 = vmatpush2.bf16.msra.mxu1 %v2425_v46  ;;  %1650 = vmatprep.subr.bf16.mxu0 %v2430_v47 }
  0xbb   : > { %1691 = vmatprep.subr.bf16.mxu1 %v2433_v48 }
  0xbd   : > { %1651 = vmatpush2.bf16.msra.mxu0 %v2428_v49 }
  0xbe   : > { %1692 = vmatpush2.bf16.msra.mxu1 %v2431_v50  ;;  %1652 = vmatprep.subr.bf16.mxu0 %v2436_v51 }
  0xbf   : > { %1693 = vmatprep.subr.bf16.mxu1 %v2439_v53 }
  0xc1   : > { %1653 = vmatpush2.bf16.msra.mxu0 %v2434_v54 }
  0xc2   : > { %1694 = vmatpush2.bf16.msra.mxu1 %v2437_v55  ;;  %1654 = vmatprep.subr.bf16.mxu0 %v2442_v56 }
  0xc3   : > { %1695 = vmatprep.subr.bf16.mxu1 %v2445_v57 }
  0xc5   : > { %1655 = vmatpush2.bf16.msra.mxu0 %v2440_v58 }
  0xc6   : > { %1696 = vmatpush2.bf16.msra.mxu1 %v2443_v59  ;;  %1656 = vmatprep.subr.bf16.mxu0 %v2448_v60 }
  0xc7   : > { %1697 = vmatprep.subr.bf16.mxu1 %v2451_v61 }
  0xc9   : > { %1657 = vmatpush2.bf16.msra.mxu0 %v2446_v62 }
  0xca   : > { %1698 = vmatpush2.bf16.msra.mxu1 %v2449_v63  ;;  %1658 = vmatprep.subr.bf16.mxu0 %v2454_v0 }
  0xcb   : > { %1699 = vmatprep.subr.bf16.mxu1 %v2457_v1 }
  0xcd   : > { %1659 = vmatpush2.bf16.msra.mxu0 %v2452_v2 }
  0xce   : > { %1700 = vmatpush2.bf16.msra.mxu1 %v2455_v3  ;;  %1660 = vmatprep.subr.bf16.mxu0 %v2460_v4 }
  0xcf   : > { %1701 = vmatprep.subr.bf16.mxu1 %v2463_v5 }
  0xd1   : > { %1661 = vmatpush2.bf16.msra.mxu0 %v2458_v6 }
  0xd2   : > { %1702 = vmatpush2.bf16.msra.mxu1 %v2461_v9  ;;  %1662 = vmatprep.subr.bf16.mxu0 %v2466_v10 }
  0xd3   : > { %1703 = vmatprep.subr.bf16.mxu1 %v2469_v11 }
  0xd5   : > { %1663 = vmatpush2.bf16.msra.mxu0 %v2464_v12 }
  0xd6   : > { %1704 = vmatpush2.bf16.msra.mxu1 %v2467_v13 }
  0xd8   : > { %1665 = vmatmul.mubr.bf16.vlgmr.msra.gmra.mxu0 %v2624_v8 }
  0xd9   : > { %1706 = vmatmul.mubr.bf16.vlgmr.msra.gmra.mxu1 %v2703_v14 }
 0x118   : > { %v1502_v15 = vpop.f32.mrf.mxu0 }
 0x119   : > { %v1543_v16 = vpop.f32.mrf.mxu1 }
 0x11a   : > { %v1504_v17 = vpop.f32.mrf.mxu0  ;;  %v1544_v7 = vadd.f32 %v1543_v16, %v1502_v15 }
 0x11b   : > { %v1545_v18 = vpop.f32.mrf.mxu1 }
 0x11c   : > { %v1506_v19 = vpop.f32.mrf.mxu0  ;;  %v1546_v26 = vadd.f32 %v1545_v18, %v1504_v17 }
 0x11d   : > { %v1547_v20 = vpop.f32.mrf.mxu1 }
 0x11e   : > { %v1507_v21 = vpop.f32.mrf.mxu0 }
 0x11f   : > { %v1548_v22 = vpop.f32.mrf.mxu1 }
 0x158   : > { %v1584_v24 = vpop.f32.mrf.mxu0 }
 0x159   : > { %v1625_v25 = vpop.f32.mrf.mxu1  ;;  %v1585_v52 = vadd.f32 %v1584_v24, %v1544_v7 }
 0x15a   : > { %v1586_v28 = vpop.f32.mrf.mxu0 }
 0x15b   : > { %v1627_v29 = vpop.f32.mrf.mxu1  ;;  %v1714_v8 = vadd.f32 %v1585_v52, %v288_v23  ;;  %v1587_v30 = vadd.f32 %v1586_v28, %v1546_v26 }
 0x15c   : > { %v1588_v14 = vpop.f32.mrf.mxu0 }
 0x15d   : > { %v1629_v31 = vpop.f32.mrf.mxu1  ;;  %1718 = vst [vmem:[#allocation2 + $0x10] sm:$0xff] %v1714_v8  ;;  %v1715_v32 = vadd.f32 %v1587_v30, %v289_v27 }
 0x15e   : > { %v1589_v33 = vpop.f32.mrf.mxu0 }
 0x15f   : > { %v1630_v34 = vpop.f32.mrf.mxu1  ;;  %1719 = vst [vmem:[#allocation2] sm:$0xff] %v1715_v32 }
 0x198   : > { %v1666_v35 = vpop.f32.mrf.mxu0 }
 0x199   : > { %v1707_v36 = vpop.f32.mrf.mxu1  ;;  %v1667_v37 = vadd.f32 %v1666_v35, %v1625_v25 }
 0x19a   : > { %v1668_v39 = vpop.f32.mrf.mxu0 }
 0x19b   : > { %v1709_v40 = vpop.f32.mrf.mxu1  ;;  %v1708_v41 = vadd.f32 %v1707_v36, %v1667_v37  ;;  %v1669_v42 = vadd.f32 %v1668_v39, %v1627_v29 }
 0x19c   : > { %v1670_v44 = vpop.f32.mrf.mxu0 }
 0x19d   : > { %v1711_v45 = vpop.f32.mrf.mxu1  ;;  %v1716_v46 = vadd.f32 %v1708_v41, %v290_v38  ;;  %v1710_v47 = vadd.f32 %v1709_v40, %v1669_v42  ;;  %1725 = sbr.rel (%p2140_p7) target bundleno = 437 (0x1b5), region = 40 }
 0x19e   : > { %v1671_v48 = vpop.f32.mrf.mxu0 }
 0x19f   : > { %v1712_v49 = vpop.f32.mrf.mxu1  ;;  %1720 = vst [vmem:[#allocation2 + $0x18] sm:$0xff] %v1716_v46  ;;  %v1717_v50 = vadd.f32 %v1710_v47, %v291_v43 }
 0x1a1   : > { %1721 = vst [vmem:[#allocation2 + $0x8] sm:$0xff] %v1717_v50 }
 0x1a2   : > { %v1732_v51 = vlaneseq  ;;  %v1730_v54 = vld [vmem:[%s2797_s2] ss:$2 sm:$0xf]  ;;  %v2141_v55 = vld [vmem:[%s2797_s2 + $0x1] ss:$2 sm:$0xf] }
 0x1a3   : > { %v1726_v60 = vld [vmem:[#allocation2 + $0x10] sm:$0xff]  ;;  %v1727_v61 = vld [vmem:[#allocation2] sm:$0xff] }
 0x1a4   : > { %v1733_v53 = vshrl.u32 %v1732_v51, 7 }
 0x1a6   : > { %v1734_v56 = vsub.s32 0, %v1733_v53  ;;  %v1738_v57 = vsub.s32 1, %v1733_v53  ;;  %v1742_v58 = vsub.s32 2, %v1733_v53  ;;  %v1746_v59 = vsub.s32 3, %v1733_v53  ;;  %v1728_v2 = vld [vmem:[#allocation2 + $0x18] sm:$0xff] }
 0x1a8   : > { %v1735_v62 = vrot.slane %v1730_v54, %v1734_v56  ;;  %v1739_v63 = vrot.slane %v1730_v54, %v1738_v57  ;;  %v1762_v0 = vrot.slane %v2141_v55, %v1734_v56  ;;  %v1766_v1 = vrot.slane %v2141_v55, %v1738_v57  ;;  %v1729_v3 = vld [vmem:[#allocation2 + $0x8] sm:$0xff] }
 0x1a9   : > { %v1743_v4 = vrot.slane %v1730_v54, %v1742_v58  ;;  %v1747_v5 = vrot.slane %v1730_v54, %v1746_v59  ;;  %v1770_v6 = vrot.slane %v2141_v55, %v1742_v58  ;;  %v1774_v9 = vrot.slane %v2141_v55, %v1746_v59 }
 0x1aa   : > { %v1752_v10 = vmul.f32 %v1735_v62, %v1726_v60  ;;  %v1753_v11 = vmul.f32 %v1739_v63, %v1727_v61 }
 0x1ab   : > { %v1754_v12 = vmul.f32 %v1743_v4, %v1728_v2  ;;  %v1755_v13 = vmul.f32 %v1747_v5, %v1729_v3 }
 0x1ac   : > { %v1779_v15 = vadd.f32 %v1762_v0, %v1752_v10  ;;  %v1780_v16 = vadd.f32 %v1766_v1, %v1753_v11 }
 0x1ad   : > { %v1781_v17 = vadd.f32 %v1770_v6, %v1754_v12  ;;  %v1782_v18 = vadd.f32 %v1774_v9, %v1755_v13 }
 0x1ae   : > { %vm1783_vm0 = vcmp.ge.f32.partialorder %v1779_v15, 0.0  ;;  %vm1784_vm1 = vcmp.ge.f32.partialorder %v1780_v16, 0.0  ;;  %v1787_v19 = vmul.f32 0.01, %v1779_v15  ;;  %v1788_v20 = vmul.f32 0.01, %v1780_v16 }
 0x1af   : > { %vm1785_vm2 = vcmp.ge.f32.partialorder %v1781_v17, 0.0  ;;  %vm1786_vm3 = vcmp.ge.f32.partialorder %v1782_v18, 0.0  ;;  %v1789_v21 = vmul.f32 0.01, %v1781_v17  ;;  %v1790_v22 = vmul.f32 0.01, %v1782_v18 }
 0x1b0   : > { %v1791_v7 = vsel %vm1783_vm0, %v1779_v15, %v1787_v19  ;;  %v1792_v23 = vsel %vm1784_vm1, %v1780_v16, %v1788_v20 }
 0x1b1   : > { %v2149_v24 = vpack.c.bf16 %v1792_v23, %v1791_v7  ;;  %v1793_v25 = vsel %vm1785_vm2, %v1781_v17, %v1789_v21  ;;  %v1794_v26 = vsel %vm1786_vm3, %v1782_v18, %v1790_v22 }
 0x1b2   : > { %v2150_v52 = vpack.c.bf16 %v1794_v26, %v1793_v25 }
 0x1b3   : > { %1811 = vst [vmem:[%s2798_s3] sm:$0xff] %v2149_v24 }
 0x1b4   : > { %1812 = vst [vmem:[%s2798_s3 + $0x8] sm:$0xff] %v2150_v52 }
 0x1b5 PF: > { %s13_s14 = sadd.s32 1, %s2492_s14   ;;  %s2799_s12 = smov %s2488_s13 }
 0x1b6   : > { %p10_p8 = scmp.ge.s32.totalorder %s13_s14, 5   ;;  %s2800_s13 = smov %s2802_s15 }
 0x1b8   :  { %12 = sbr.rel (!%p10_p8) target bundleno = 2 (0x2), region = 77 }

// kernel: a_call__.25
= control target key start
LH: loop header
LB: loop body
LE: loop exit
PB: predicated region body
PF: predicated region fallthrough
CT: control target
= control target key end

     0   :  { %s2615_s15 = smov 0   ;;  %s2617_s16 = smov 0   ;;  %s2901_s0 = inlined_call_operand.vmem [shape: bf16[8,4608], index: 0, kind: input, shape index: {}]   ;;  %s2902_s1 = inlined_call_operand.vmem [shape: bf16[4608,512], index: 1, kind: input, shape index: {}]   ;;  %s2903_s2 = inlined_call_operand.vmem [shape: f32[2,512], index: 2, kind: input, shape index: {}]   ;;  %s2904_s3 = inlined_call_operand.vmem [shape: bf16[8,512], index: 3, kind: input, shape index: {}]   ;;  %s2905_s4 = inlined_call_operand.vmem [shape: bf16[8,512], index: 4, kind: output, shape index: {}]  }
   0x1   :  { %s2619_s17 = smov 0  }
   0x2 LB: > { %s26_s18 = sadd.s32 1, %s2583_s16  ;;  %p2032_p0 = scmp.ge.s32.totalorder %s2587_s17, 1  ;;  %s2587_s17 = sphi %s2619_s17, %s14_s17   ;;  %s2583_s16 = sphi %s2617_s16, %s2907_s16   ;;  %s2579_s15 = sphi %s2615_s15, %s2906_s15  }
   0x3   : > { %p27_p1 = scmp.ge.s32.totalorder %s26_s18, 6  ;;  %p237_p2 = scmp.lt.s32.totalorder %s2587_s17, 7 }
   0x5   : > { %s2909_s18 = smov (%p27_p1, %s26_s18), 0  ;;  %p238_p3 = pnand %p2032_p0, %p237_p2 }
   0x6   : > { %s295_s19 = smul.u32 (!%p238_p3), 6, %s2579_s15  ;;  %p2036_p6 = scmp.ne.s32.totalorder (!%p238_p3), %s2579_s15, 0 }
   0x7   : > { %241 = sbr.rel (%p238_p3) target bundleno = 439 (0x1b7), region = 36 }
   0x8   : > { %s305_s20 = smul.u32 (!%p238_p3), 96, %s2579_s15  ;;  %p298_p4 = scmp.lt.s32.totalorder (!%p238_p3), %s295_s19, 35 }
   0xa   : > { %p307_p5 = scmp.lt.s32.totalorder (!%p238_p3), %s305_s20, 575 }
   0xc   : > { %s2911_s19 = smov (!%p298_p4, %s295_s19), 35  ;;  %s2913_s20 = smov (!%p307_p5, %s305_s20), 575 }
   0xd   : > { %s2033_s21 = sshll.u32 %s2911_s19, 2  ;;  %s2243_s25 = sshll.u32 %s2913_s20, 4 }
   0xe   : > { %s2640_s24 = scalar_lea.vmem %s2901_s0, %s2033_s21  ;;  %s2645_s28 = scalar_lea.vmem %s2902_s1, %s2243_s25 }
   0xf   : > { %346 = sbr.rel (%p2036_p6) target bundleno = 23 (0x17), region = 40 }
  0x14   : > { %v2589_v0 = vmov 0.0  }
  0x15   : > { %347 = vst [vmem:[#allocation2 + $0x10] sm:$0xff] %v2589_v0  ;;  %348 = vst [vmem:[#allocation2] sm:$0xff] %v2589_v0 }
  0x16   : > { %349 = vst [vmem:[#allocation2 + $0x18] sm:$0xff] %v2589_v0  ;;  %350 = vst [vmem:[#allocation2 + $0x8] sm:$0xff] %v2589_v0 }
  0x17 PF: > { %v2271_v1 = vld [vmem:[%s2645_s28 + $0xe4] ss:$16 sps:$4 sm:$0xff]   ;;  %v2275_v3 = vld [vmem:[%s2645_s28 + $0xe0] ss:$16 sps:$4 sm:$0xff]   ;;  %v356_v49 = vld [vmem:[%s2640_s24 + $0x8] sm:$0xff]  ;;  %p2235_p7 = scmp.ne.s32.totalorder %s2579_s15, 5 }
  0x18   : > { %v2273_v2 = vld [vmem:[%s2645_s28 + $0x2e4] ss:$16 sps:$4 sm:$0xff]   ;;  %1531 = vmatprep.subr.bf16.mxu0 %v2271_v1  ;;  %v2276_v4 = vld [vmem:[%s2645_s28 + $0x2e0] ss:$16 sps:$4 sm:$0xff]   ;;  %v2700_v52 = vcombine.high %v356_v49, %v356_v49 }
  0x19   : > { %1572 = vmatprep.subr.bf16.mxu1 %v2273_v2  ;;  %v2277_v5 = vld [vmem:[%s2645_s28 + $0xc4] ss:$16 sps:$4 sm:$0xff]   ;;  %1532 = vmatpush1.bf16.msra.mxu0 %v2275_v3  ;;  %v2281_v7 = vld [vmem:[%s2645_s28 + $0xc0] ss:$16 sps:$4 sm:$0xff]  }
  0x1a   : > { %1573 = vmatpush1.bf16.msra.mxu1 %v2276_v4  ;;  %v2279_v6 = vld [vmem:[%s2645_s28 + $0x2c4] ss:$16 sps:$4 sm:$0xff]   ;;  %1533 = vmatprep.subr.bf16.mxu0 %v2277_v5  ;;  %v2282_v8 = vld [vmem:[%s2645_s28 + $0x2c0] ss:$16 sps:$4 sm:$0xff]  }
  0x1b   : > { %1574 = vmatprep.subr.bf16.mxu1 %v2279_v6  ;;  %v2283_v9 = vld [vmem:[%s2645_s28 + $0xa4] ss:$16 sps:$4 sm:$0xff]   ;;  %v2287_v11 = vld [vmem:[%s2645_s28 + $0xa0] ss:$16 sps:$4 sm:$0xff]   ;;  %1604 = vmatprep.mubr.bf16.mxu1 %v2700_v52  ;;  %v2376_v6 = vld [vmem:[%s2645_s28 + $0xec] ss:$16 sps:$4 sm:$0xff]  }
  0x1c   : > { %v2285_v10 = vld [vmem:[%s2645_s28 + $0x2a4] ss:$16 sps:$4 sm:$0xff]   ;;  %v2288_v12 = vld [vmem:[%s2645_s28 + $0x2a0] ss:$16 sps:$4 sm:$0xff]  }
  0x1d   : > { %1534 = vmatpush1.bf16.msra.mxu0 %v2281_v7  ;;  %v2289_v13 = vld [vmem:[%s2645_s28 + $0x84] ss:$16 sps:$4 sm:$0xff]   ;;  %v2293_v15 = vld [vmem:[%s2645_s28 + $0x80] ss:$16 sps:$4 sm:$0xff]  }
  0x1e   : > { %1575 = vmatpush1.bf16.msra.mxu1 %v2282_v8  ;;  %1535 = vmatprep.subr.bf16.mxu0 %v2283_v9  ;;  %v2291_v14 = vld [vmem:[%s2645_s28 + $0x284] ss:$16 sps:$4 sm:$0xff]   ;;  %v2294_v16 = vld [vmem:[%s2645_s28 + $0x280] ss:$16 sps:$4 sm:$0xff]   ;;  %v2724_v8 = vcombine.low %v356_v49, %v356_v49 }
  0x1f   : > { %1576 = vmatprep.subr.bf16.mxu1 %v2285_v10  ;;  %v2295_v17 = vld [vmem:[%s2645_s28 + $0x64] ss:$16 sps:$4 sm:$0xff]   ;;  %v2299_v19 = vld [vmem:[%s2645_s28 + $0x60] ss:$16 sps:$4 sm:$0xff]   ;;  %v2374_v10 = vld [vmem:[%s2645_s28 + $0xe8] ss:$16 sps:$4 sm:$0xff]  }
  0x20   : > { %v2297_v18 = vld [vmem:[%s2645_s28 + $0x264] ss:$16 sps:$4 sm:$0xff]   ;;  %v2300_v20 = vld [vmem:[%s2645_s28 + $0x260] ss:$16 sps:$4 sm:$0xff]  }
  0x21   : > { %1536 = vmatpush1.bf16.msra.mxu0 %v2287_v11  ;;  %v2301_v21 = vld [vmem:[%s2645_s28 + $0x44] ss:$16 sps:$4 sm:$0xff]   ;;  %v2305_v23 = vld [vmem:[%s2645_s28 + $0x40] ss:$16 sps:$4 sm:$0xff]  }
  0x22   : > { %1577 = vmatpush1.bf16.msra.mxu1 %v2288_v12  ;;  %1537 = vmatprep.subr.bf16.mxu0 %v2289_v13  ;;  %v2303_v22 = vld [vmem:[%s2645_s28 + $0x244] ss:$16 sps:$4 sm:$0xff]   ;;  %v2306_v24 = vld [vmem:[%s2645_s28 + $0x240] ss:$16 sps:$4 sm:$0xff]   ;;  %v2382_v12 = vld [vmem:[%s2645_s28 + $0xcc] ss:$16 sps:$4 sm:$0xff]  }
  0x23   : > { %1578 = vmatprep.subr.bf16.mxu1 %v2291_v14  ;;  %v2307_v25 = vld [vmem:[%s2645_s28 + $0x24] ss:$16 sps:$4 sm:$0xff]   ;;  %v2311_v27 = vld [vmem:[%s2645_s28 + $0x20] ss:$16 sps:$4 sm:$0xff]   ;;  %v2380_v14 = vld [vmem:[%s2645_s28 + $0xc8] ss:$16 sps:$4 sm:$0xff]  }
  0x24   : > { %v2309_v26 = vld [vmem:[%s2645_s28 + $0x224] ss:$16 sps:$4 sm:$0xff]   ;;  %v2312_v28 = vld [vmem:[%s2645_s28 + $0x220] ss:$16 sps:$4 sm:$0xff]  }
  0x25   : > { %1538 = vmatpush1.bf16.msra.mxu0 %v2293_v15  ;;  %v2313_v29 = vld [vmem:[%s2645_s28 + $0x4] ss:$16 sps:$4 sm:$0xff]   ;;  %v2317_v31 = vld [vmem:[%s2645_s28] ss:$16 sps:$4 sm:$0xff]  }
  0x26   : > { %1579 = vmatpush1.bf16.msra.mxu1 %v2294_v16  ;;  %1539 = vmatprep.subr.bf16.mxu0 %v2295_v17  ;;  %v2315_v30 = vld [vmem:[%s2645_s28 + $0x204] ss:$16 sps:$4 sm:$0xff]   ;;  %v2318_v32 = vld [vmem:[%s2645_s28 + $0x200] ss:$16 sps:$4 sm:$0xff]   ;;  %v2388_v16 = vld [vmem:[%s2645_s28 + $0xac] ss:$16 sps:$4 sm:$0xff]  }
  0x27   : > { %1580 = vmatprep.subr.bf16.mxu1 %v2297_v18  ;;  %v2319_v33 = vld [vmem:[%s2645_s28 + $0x1e4] ss:$16 sps:$4 sm:$0xff]   ;;  %v2323_v35 = vld [vmem:[%s2645_s28 + $0x1e0] ss:$16 sps:$4 sm:$0xff]   ;;  %v2386_v18 = vld [vmem:[%s2645_s28 + $0xa8] ss:$16 sps:$4 sm:$0xff]  }
  0x28   : > { %v2321_v34 = vld [vmem:[%s2645_s28 + $0x3e4] ss:$16 sps:$4 sm:$0xff]   ;;  %v2324_v36 = vld [vmem:[%s2645_s28 + $0x3e0] ss:$16 sps:$4 sm:$0xff]  }
  0x29   : > { %1540 = vmatpush1.bf16.msra.mxu0 %v2299_v19  ;;  %v2325_v37 = vld [vmem:[%s2645_s28 + $0x1c4] ss:$16 sps:$4 sm:$0xff]   ;;  %v2329_v39 = vld [vmem:[%s2645_s28 + $0x1c0] ss:$16 sps:$4 sm:$0xff]  }
  0x2a   : > { %1581 = vmatpush1.bf16.msra.mxu1 %v2300_v20  ;;  %1541 = vmatprep.subr.bf16.mxu0 %v2301_v21  ;;  %v2327_v38 = vld [vmem:[%s2645_s28 + $0x3c4] ss:$16 sps:$4 sm:$0xff]   ;;  %v2330_v40 = vld [vmem:[%s2645_s28 + $0x3c0] ss:$16 sps:$4 sm:$0xff]   ;;  %v2394_v20 = vld [vmem:[%s2645_s28 + $0x8c] ss:$16 sps:$4 sm:$0xff]  }
  0x2b   : > { %1582 = vmatprep.subr.bf16.mxu1 %v2303_v22  ;;  %v2331_v41 = vld [vmem:[%s2645_s28 + $0x1a4] ss:$16 sps:$4 sm:$0xff]   ;;  %v2335_v43 = vld [vmem:[%s2645_s28 + $0x1a0] ss:$16 sps:$4 sm:$0xff]   ;;  %v2392_v22 = vld [vmem:[%s2645_s28 + $0x88] ss:$16 sps:$4 sm:$0xff]  }
  0x2c   : > { %v2333_v42 = vld [vmem:[%s2645_s28 + $0x3a4] ss:$16 sps:$4 sm:$0xff]   ;;  %v2336_v44 = vld [vmem:[%s2645_s28 + $0x3a0] ss:$16 sps:$4 sm:$0xff]  }
  0x2d   : > { %1542 = vmatpush1.bf16.msra.mxu0 %v2305_v23  ;;  %v2337_v45 = vld [vmem:[%s2645_s28 + $0x184] ss:$16 sps:$4 sm:$0xff]   ;;  %v2341_v50 = vld [vmem:[%s2645_s28 + $0x180] ss:$16 sps:$4 sm:$0xff]  }
  0x2e   : > { %1583 = vmatpush1.bf16.msra.mxu1 %v2306_v24  ;;  %1543 = vmatprep.subr.bf16.mxu0 %v2307_v25  ;;  %v2339_v46 = vld [vmem:[%s2645_s28 + $0x384] ss:$16 sps:$4 sm:$0xff]   ;;  %v2342_v51 = vld [vmem:[%s2645_s28 + $0x380] ss:$16 sps:$4 sm:$0xff]   ;;  %v2400_v24 = vld [vmem:[%s2645_s28 + $0x6c] ss:$16 sps:$4 sm:$0xff]  }
  0x2f   : > { %1584 = vmatprep.subr.bf16.mxu1 %v2309_v26  ;;  %v355_v47 = vld [vmem:[%s2640_s24] sm:$0xff]  ;;  %v2398_v26 = vld [vmem:[%s2645_s28 + $0x68] ss:$16 sps:$4 sm:$0xff]  }
  0x30   : > { %v2695_v48 = vcombine.high %v355_v47, %v355_v47  ;;  %v2343_v53 = vld [vmem:[%s2645_s28 + $0x164] ss:$16 sps:$4 sm:$0xff]   ;;  %v2347_v55 = vld [vmem:[%s2645_s28 + $0x160] ss:$16 sps:$4 sm:$0xff]   ;;  %v2722_v7 = vcombine.low %v355_v47, %v355_v47 }
  0x31   : > { %1544 = vmatpush1.bf16.msra.mxu0 %v2311_v27  ;;  %v2345_v54 = vld [vmem:[%s2645_s28 + $0x364] ss:$16 sps:$4 sm:$0xff]   ;;  %v2348_v56 = vld [vmem:[%s2645_s28 + $0x360] ss:$16 sps:$4 sm:$0xff]  }
  0x32   : > { %1585 = vmatpush1.bf16.msra.mxu1 %v2312_v28  ;;  %1545 = vmatprep.subr.bf16.mxu0 %v2313_v29  ;;  %v2349_v57 = vld [vmem:[%s2645_s28 + $0x144] ss:$16 sps:$4 sm:$0xff]   ;;  %v2353_v59 = vld [vmem:[%s2645_s28 + $0x140] ss:$16 sps:$4 sm:$0xff]   ;;  %v2406_v28 = vld [vmem:[%s2645_s28 + $0x4c] ss:$16 sps:$4 sm:$0xff]  }
  0x33   : > { %1586 = vmatprep.subr.bf16.mxu1 %v2315_v30  ;;  %1563 = vmatprep.mubr.bf16.mxu0 %v2695_v48  ;;  %v2351_v58 = vld [vmem:[%s2645_s28 + $0x344] ss:$16 sps:$4 sm:$0xff]   ;;  %v2354_v60 = vld [vmem:[%s2645_s28 + $0x340] ss:$16 sps:$4 sm:$0xff]   ;;  %v2404_v30 = vld [vmem:[%s2645_s28 + $0x48] ss:$16 sps:$4 sm:$0xff]  }
  0x34   : > { %v2355_v61 = vld [vmem:[%s2645_s28 + $0x124] ss:$16 sps:$4 sm:$0xff]   ;;  %v2359_v63 = vld [vmem:[%s2645_s28 + $0x120] ss:$16 sps:$4 sm:$0xff]  }
  0x35   : > { %1546 = vmatpush1.bf16.msra.mxu0 %v2317_v31  ;;  %v2357_v62 = vld [vmem:[%s2645_s28 + $0x324] ss:$16 sps:$4 sm:$0xff]   ;;  %v2360_v0 = vld [vmem:[%s2645_s28 + $0x320] ss:$16 sps:$4 sm:$0xff]  }
  0x36   : > { %1587 = vmatpush1.bf16.msra.mxu1 %v2318_v32  ;;  %1547 = vmatprep.subr.bf16.mxu0 %v2319_v33  ;;  %v2361_v1 = vld [vmem:[%s2645_s28 + $0x104] ss:$16 sps:$4 sm:$0xff]   ;;  %v2365_v3 = vld [vmem:[%s2645_s28 + $0x100] ss:$16 sps:$4 sm:$0xff]   ;;  %v2412_v32 = vld [vmem:[%s2645_s28 + $0x2c] ss:$16 sps:$4 sm:$0xff]  }
  0x37   : > { %1588 = vmatprep.subr.bf16.mxu1 %v2321_v34  ;;  %v2363_v2 = vld [vmem:[%s2645_s28 + $0x304] ss:$16 sps:$4 sm:$0xff]   ;;  %v2366_v4 = vld [vmem:[%s2645_s28 + $0x300] ss:$16 sps:$4 sm:$0xff]  }
  0x38   : > { %v2373_v5 = vld [vmem:[%s2645_s28 + $0x4e4] ss:$16 sps:$4 sm:$0xff]   ;;  %v2371_v9 = vld [vmem:[%s2645_s28 + $0x4e0] ss:$16 sps:$4 sm:$0xff]  }
  0x39   : > { %1548 = vmatpush2.bf16.msra.mxu0 %v2323_v35  ;;  %v2379_v11 = vld [vmem:[%s2645_s28 + $0x4c4] ss:$16 sps:$4 sm:$0xff]   ;;  %v2377_v13 = vld [vmem:[%s2645_s28 + $0x4c0] ss:$16 sps:$4 sm:$0xff]  }
  0x3a   : > { %1589 = vmatpush2.bf16.msra.mxu1 %v2324_v36  ;;  %1549 = vmatprep.subr.bf16.mxu0 %v2325_v37  ;;  %v2385_v15 = vld [vmem:[%s2645_s28 + $0x4a4] ss:$16 sps:$4 sm:$0xff]   ;;  %v2383_v17 = vld [vmem:[%s2645_s28 + $0x4a0] ss:$16 sps:$4 sm:$0xff]   ;;  %v2410_v36 = vld [vmem:[%s2645_s28 + $0x28] ss:$16 sps:$4 sm:$0xff]  }
  0x3b   : > { %1590 = vmatprep.subr.bf16.mxu1 %v2327_v38  ;;  %v2391_v19 = vld [vmem:[%s2645_s28 + $0x484] ss:$16 sps:$4 sm:$0xff]   ;;  %v2389_v21 = vld [vmem:[%s2645_s28 + $0x480] ss:$16 sps:$4 sm:$0xff]   ;;  %v2418_v38 = vld [vmem:[%s2645_s28 + $0xc] ss:$16 sps:$4 sm:$0xff]  }
  0x3c   : > { %v2397_v23 = vld [vmem:[%s2645_s28 + $0x464] ss:$16 sps:$4 sm:$0xff]   ;;  %v2395_v25 = vld [vmem:[%s2645_s28 + $0x460] ss:$16 sps:$4 sm:$0xff]  }
  0x3d   : > { %1550 = vmatpush2.bf16.msra.mxu0 %v2329_v39  ;;  %v2403_v27 = vld [vmem:[%s2645_s28 + $0x444] ss:$16 sps:$4 sm:$0xff]   ;;  %v2401_v29 = vld [vmem:[%s2645_s28 + $0x440] ss:$16 sps:$4 sm:$0xff]  }
  0x3e   : > { %1591 = vmatpush2.bf16.msra.mxu1 %v2330_v40  ;;  %1551 = vmatprep.subr.bf16.mxu0 %v2331_v41  ;;  %v2409_v31 = vld [vmem:[%s2645_s28 + $0x424] ss:$16 sps:$4 sm:$0xff]   ;;  %v2407_v34 = vld [vmem:[%s2645_s28 + $0x420] ss:$16 sps:$4 sm:$0xff]   ;;  %v2416_v40 = vld [vmem:[%s2645_s28 + $0x8] ss:$16 sps:$4 sm:$0xff]  }
  0x3f   : > { %1592 = vmatprep.subr.bf16.mxu1 %v2333_v42  ;;  %v2754_v33 = vld [vmem:[%s2640_s24 + $0x10] sm:$0xff]  ;;  %v2424_v42 = vld [vmem:[%s2645_s28 + $0x1ec] ss:$16 sps:$4 sm:$0xff]  }
  0x40   : > { %v2759_v35 = vcombine.high %v2754_v33, %v2754_v33  ;;  %v2415_v37 = vld [vmem:[%s2645_s28 + $0x404] ss:$16 sps:$4 sm:$0xff]   ;;  %v2413_v39 = vld [vmem:[%s2645_s28 + $0x400] ss:$16 sps:$4 sm:$0xff]  }
  0x41   : > { %1552 = vmatpush2.bf16.msra.mxu0 %v2335_v43  ;;  %v2421_v41 = vld [vmem:[%s2645_s28 + $0x5e4] ss:$16 sps:$4 sm:$0xff]   ;;  %v2419_v43 = vld [vmem:[%s2645_s28 + $0x5e0] ss:$16 sps:$4 sm:$0xff]  }
  0x42   : > { %1593 = vmatpush2.bf16.msra.mxu1 %v2336_v44  ;;  %1553 = vmatprep.subr.bf16.mxu0 %v2337_v45  ;;  %v2422_v44 = vld [vmem:[%s2645_s28 + $0x1e8] ss:$16 sps:$4 sm:$0xff]   ;;  %v2427_v45 = vld [vmem:[%s2645_s28 + $0x5c4] ss:$16 sps:$4 sm:$0xff]   ;;  %v2425_v47 = vld [vmem:[%s2645_s28 + $0x5c0] ss:$16 sps:$4 sm:$0xff]  }
  0x43   : > { %1594 = vmatprep.subr.bf16.mxu1 %v2339_v46  ;;  %v2430_v46 = vld [vmem:[%s2645_s28 + $0x1cc] ss:$16 sps:$4 sm:$0xff]   ;;  %v2433_v49 = vld [vmem:[%s2645_s28 + $0x5a4] ss:$16 sps:$4 sm:$0xff]  }
  0x45   : > { %1554 = vmatpush2.bf16.msra.mxu0 %v2341_v50  ;;  %v2436_v50 = vld [vmem:[%s2645_s28 + $0x1ac] ss:$16 sps:$4 sm:$0xff]  }
  0x46   : > { %1595 = vmatpush2.bf16.msra.mxu1 %v2342_v51  ;;  %1555 = vmatprep.subr.bf16.mxu0 %v2343_v53  ;;  %v2431_v51 = vld [vmem:[%s2645_s28 + $0x5a0] ss:$16 sps:$4 sm:$0xff]   ;;  %v2434_v53 = vld [vmem:[%s2645_s28 + $0x1a8] ss:$16 sps:$4 sm:$0xff]  }
  0x47   : > { %1596 = vmatprep.subr.bf16.mxu1 %v2345_v54  ;;  %v2439_v54 = vld [vmem:[%s2645_s28 + $0x584] ss:$16 sps:$4 sm:$0xff]  }
  0x49   : > { %1556 = vmatpush2.bf16.msra.mxu0 %v2347_v55  ;;  %v2442_v55 = vld [vmem:[%s2645_s28 + $0x18c] ss:$16 sps:$4 sm:$0xff]  }
  0x4a   : > { %1597 = vmatpush2.bf16.msra.mxu1 %v2348_v56  ;;  %1557 = vmatprep.subr.bf16.mxu0 %v2349_v57  ;;  %v2437_v56 = vld [vmem:[%s2645_s28 + $0x580] ss:$16 sps:$4 sm:$0xff]   ;;  %v2440_v57 = vld [vmem:[%s2645_s28 + $0x188] ss:$16 sps:$4 sm:$0xff]  }
  0x4b   : > { %1598 = vmatprep.subr.bf16.mxu1 %v2351_v58  ;;  %v2445_v58 = vld [vmem:[%s2645_s28 + $0x564] ss:$16 sps:$4 sm:$0xff]  }
  0x4d   : > { %1558 = vmatpush2.bf16.msra.mxu0 %v2353_v59  ;;  %v2448_v59 = vld [vmem:[%s2645_s28 + $0x16c] ss:$16 sps:$4 sm:$0xff]  }
  0x4e   : > { %1599 = vmatpush2.bf16.msra.mxu1 %v2354_v60  ;;  %1559 = vmatprep.subr.bf16.mxu0 %v2355_v61  ;;  %v2443_v60 = vld [vmem:[%s2645_s28 + $0x560] ss:$16 sps:$4 sm:$0xff]   ;;  %v2446_v61 = vld [vmem:[%s2645_s28 + $0x168] ss:$16 sps:$4 sm:$0xff]  }
  0x4f   : > { %1600 = vmatprep.subr.bf16.mxu1 %v2357_v62  ;;  %v2451_v62 = vld [vmem:[%s2645_s28 + $0x544] ss:$16 sps:$4 sm:$0xff]  }
  0x51   : > { %1560 = vmatpush2.bf16.msra.mxu0 %v2359_v63  ;;  %v2454_v63 = vld [vmem:[%s2645_s28 + $0x14c] ss:$16 sps:$4 sm:$0xff]  }
  0x52   : > { %1601 = vmatpush2.bf16.msra.mxu1 %v2360_v0  ;;  %1561 = vmatprep.subr.bf16.mxu0 %v2361_v1  ;;  %v2449_v0 = vld [vmem:[%s2645_s28 + $0x540] ss:$16 sps:$4 sm:$0xff]   ;;  %v2452_v1 = vld [vmem:[%s2645_s28 + $0x148] ss:$16 sps:$4 sm:$0xff]  }
  0x53   : > { %1602 = vmatprep.subr.bf16.mxu1 %v2363_v2  ;;  %v2457_v2 = vld [vmem:[%s2645_s28 + $0x524] ss:$16 sps:$4 sm:$0xff]  }
  0x55   : > { %1562 = vmatpush2.bf16.msra.mxu0 %v2365_v3  ;;  %v2460_v3 = vld [vmem:[%s2645_s28 + $0x12c] ss:$16 sps:$4 sm:$0xff]  }
  0x56   : > { %1603 = vmatpush2.bf16.msra.mxu1 %v2366_v4  ;;  %1613 = vmatprep.subr.bf16.mxu0 %v2373_v5  ;;  %v2455_v4 = vld [vmem:[%s2645_s28 + $0x520] ss:$16 sps:$4 sm:$0xff]   ;;  %v2458_v5 = vld [vmem:[%s2645_s28 + $0x128] ss:$16 sps:$4 sm:$0xff]  }
  0x57   : > { %1654 = vmatprep.subr.bf16.mxu1 %v2376_v6  ;;  %v2463_v6 = vld [vmem:[%s2645_s28 + $0x504] ss:$16 sps:$4 sm:$0xff]  }
  0x58   : > { %1564 = vmatmul.mubr.bf16.vlgmr.msra.gmra.mxu0 %v2722_v7 }
  0x59   : > { %1605 = vmatmul.mubr.bf16.vlgmr.msra.gmra.mxu1 %v2724_v8  ;;  %1614 = vmatpush1.bf16.msra.mxu0 %v2371_v9  ;;  %v2466_v9 = vld [vmem:[%s2645_s28 + $0x10c] ss:$16 sps:$4 sm:$0xff]  }
  0x5a   : > { %1655 = vmatpush1.bf16.msra.mxu1 %v2374_v10  ;;  %1615 = vmatprep.subr.bf16.mxu0 %v2379_v11  ;;  %v2461_v10 = vld [vmem:[%s2645_s28 + $0x500] ss:$16 sps:$4 sm:$0xff]   ;;  %v2464_v11 = vld [vmem:[%s2645_s28 + $0x108] ss:$16 sps:$4 sm:$0xff]  }
  0x5b   : > { %1656 = vmatprep.subr.bf16.mxu1 %v2382_v12  ;;  %1686 = vmatprep.mubr.bf16.mxu1 %v2695_v48  ;;  %v2428_v48 = vld [vmem:[%s2645_s28 + $0x1c8] ss:$16 sps:$4 sm:$0xff]   ;;  %v2471_v12 = vld [vmem:[%s2645_s28 + $0x2ec] ss:$16 sps:$4 sm:$0xff]  }
  0x5c   : > { %1645 = vmatprep.mubr.bf16.mxu0 %v2759_v35 }
  0x5d   : > { %1616 = vmatpush1.bf16.msra.mxu0 %v2377_v13  ;;  %v2474_v13 = vld [vmem:[%s2645_s28 + $0x4ec] ss:$16 sps:$4 sm:$0xff]  }
  0x5e   : > { %1657 = vmatpush1.bf16.msra.mxu1 %v2380_v14  ;;  %1617 = vmatprep.subr.bf16.mxu0 %v2385_v15  ;;  %v2803_v14 = vcombine.low %v2754_v33, %v2754_v33  ;;  %v2469_v15 = vld [vmem:[%s2645_s28 + $0x2e8] ss:$16 sps:$4 sm:$0xff]  }
  0x5f   : > { %1658 = vmatprep.subr.bf16.mxu1 %v2388_v16  ;;  %v2472_v16 = vld [vmem:[%s2645_s28 + $0x4e8] ss:$16 sps:$4 sm:$0xff]  }
  0x60   : > { %v2499_v33 = vld [vmem:[%s2645_s28 + $0x248] ss:$16 sps:$4 sm:$0xff]  }
  0x61   : > { %1618 = vmatpush1.bf16.msra.mxu0 %v2383_v17  ;;  %v2477_v17 = vld [vmem:[%s2645_s28 + $0x2cc] ss:$16 sps:$4 sm:$0xff]  }
  0x62   : > { %1659 = vmatpush1.bf16.msra.mxu1 %v2386_v18  ;;  %1619 = vmatprep.subr.bf16.mxu0 %v2391_v19  ;;  %v2480_v18 = vld [vmem:[%s2645_s28 + $0x4cc] ss:$16 sps:$4 sm:$0xff]   ;;  %v2475_v19 = vld [vmem:[%s2645_s28 + $0x2c8] ss:$16 sps:$4 sm:$0xff]  }
  0x63   : > { %1660 = vmatprep.subr.bf16.mxu1 %v2394_v20  ;;  %v2478_v20 = vld [vmem:[%s2645_s28 + $0x4c8] ss:$16 sps:$4 sm:$0xff]  }
  0x65   : > { %1620 = vmatpush1.bf16.msra.mxu0 %v2389_v21  ;;  %v2483_v21 = vld [vmem:[%s2645_s28 + $0x2ac] ss:$16 sps:$4 sm:$0xff]  }
  0x66   : > { %1661 = vmatpush1.bf16.msra.mxu1 %v2392_v22  ;;  %1621 = vmatprep.subr.bf16.mxu0 %v2397_v23  ;;  %v2486_v22 = vld [vmem:[%s2645_s28 + $0x4ac] ss:$16 sps:$4 sm:$0xff]   ;;  %v2484_v23 = vld [vmem:[%s2645_s28 + $0x4a8] ss:$16 sps:$4 sm:$0xff]  }
  0x67   : > { %1662 = vmatprep.subr.bf16.mxu1 %v2400_v24  ;;  %v2489_v24 = vld [vmem:[%s2645_s28 + $0x28c] ss:$16 sps:$4 sm:$0xff]  }
  0x69   : > { %1622 = vmatpush1.bf16.msra.mxu0 %v2395_v25  ;;  %v2492_v25 = vld [vmem:[%s2645_s28 + $0x48c] ss:$16 sps:$4 sm:$0xff]  }
  0x6a   : > { %1663 = vmatpush1.bf16.msra.mxu1 %v2398_v26  ;;  %1623 = vmatprep.subr.bf16.mxu0 %v2403_v27  ;;  %v2487_v26 = vld [vmem:[%s2645_s28 + $0x288] ss:$16 sps:$4 sm:$0xff]   ;;  %v2495_v27 = vld [vmem:[%s2645_s28 + $0x26c] ss:$16 sps:$4 sm:$0xff]  }
  0x6b   : > { %1664 = vmatprep.subr.bf16.mxu1 %v2406_v28  ;;  %v2498_v28 = vld [vmem:[%s2645_s28 + $0x46c] ss:$16 sps:$4 sm:$0xff]  }
  0x6d   : > { %1624 = vmatpush1.bf16.msra.mxu0 %v2401_v29  ;;  %v2493_v29 = vld [vmem:[%s2645_s28 + $0x268] ss:$16 sps:$4 sm:$0xff]  }
  0x6e   : > { %1665 = vmatpush1.bf16.msra.mxu1 %v2404_v30  ;;  %1625 = vmatprep.subr.bf16.mxu0 %v2409_v31  ;;  %v2496_v30 = vld [vmem:[%s2645_s28 + $0x468] ss:$16 sps:$4 sm:$0xff]   ;;  %v2501_v31 = vld [vmem:[%s2645_s28 + $0x24c] ss:$16 sps:$4 sm:$0xff]  }
  0x6f   : > { %1666 = vmatprep.subr.bf16.mxu1 %v2412_v32  ;;  %v2504_v32 = vld [vmem:[%s2645_s28 + $0x44c] ss:$16 sps:$4 sm:$0xff]  }
  0x71   : > { %1626 = vmatpush1.bf16.msra.mxu0 %v2407_v34  ;;  %v2502_v34 = vld [vmem:[%s2645_s28 + $0x448] ss:$16 sps:$4 sm:$0xff]  }
  0x72   : > { %1667 = vmatpush1.bf16.msra.mxu1 %v2410_v36  ;;  %1627 = vmatprep.subr.bf16.mxu0 %v2415_v37  ;;  %v2510_v36 = vld [vmem:[%s2645_s28 + $0x42c] ss:$16 sps:$4 sm:$0xff]   ;;  %v2505_v37 = vld [vmem:[%s2645_s28 + $0x228] ss:$16 sps:$4 sm:$0xff]  }
  0x73   : > { %1668 = vmatprep.subr.bf16.mxu1 %v2418_v38  ;;  %v2508_v38 = vld [vmem:[%s2645_s28 + $0x428] ss:$16 sps:$4 sm:$0xff]  }
  0x75   : > { %1628 = vmatpush1.bf16.msra.mxu0 %v2413_v39  ;;  %v2513_v39 = vld [vmem:[%s2645_s28 + $0x20c] ss:$16 sps:$4 sm:$0xff]  }
  0x76   : > { %1669 = vmatpush1.bf16.msra.mxu1 %v2416_v40  ;;  %1629 = vmatprep.subr.bf16.mxu0 %v2421_v41  ;;  %v2516_v40 = vld [vmem:[%s2645_s28 + $0x40c] ss:$16 sps:$4 sm:$0xff]   ;;  %v2511_v41 = vld [vmem:[%s2645_s28 + $0x208] ss:$16 sps:$4 sm:$0xff]  }
  0x77   : > { %1670 = vmatprep.subr.bf16.mxu1 %v2424_v42  ;;  %v2514_v42 = vld [vmem:[%s2645_s28 + $0x408] ss:$16 sps:$4 sm:$0xff]  }
  0x79   : > { %1630 = vmatpush2.bf16.msra.mxu0 %v2419_v43  ;;  %v2519_v43 = vld [vmem:[%s2645_s28 + $0x3ec] ss:$16 sps:$4 sm:$0xff]  }
  0x7a   : > { %1671 = vmatpush2.bf16.msra.mxu1 %v2422_v44  ;;  %1631 = vmatprep.subr.bf16.mxu0 %v2427_v45  ;;  %v2522_v44 = vld [vmem:[%s2645_s28 + $0x5ec] ss:$16 sps:$4 sm:$0xff]   ;;  %v2517_v45 = vld [vmem:[%s2645_s28 + $0x3e8] ss:$16 sps:$4 sm:$0xff]  }
  0x7b   : > { %1672 = vmatprep.subr.bf16.mxu1 %v2430_v46  ;;  %v2520_v46 = vld [vmem:[%s2645_s28 + $0x5e8] ss:$16 sps:$4 sm:$0xff]  }
  0x7d   : > { %1632 = vmatpush2.bf16.msra.mxu0 %v2425_v47  ;;  %v2525_v47 = vld [vmem:[%s2645_s28 + $0x3cc] ss:$16 sps:$4 sm:$0xff]  }
  0x7e   : > { %1673 = vmatpush2.bf16.msra.mxu1 %v2428_v48  ;;  %1633 = vmatprep.subr.bf16.mxu0 %v2433_v49  ;;  %v2528_v48 = vld [vmem:[%s2645_s28 + $0x5cc] ss:$16 sps:$4 sm:$0xff]   ;;  %v2523_v49 = vld [vmem:[%s2645_s28 + $0x3c8] ss:$16 sps:$4 sm:$0xff]  }
  0x7f   : > { %1674 = vmatprep.subr.bf16.mxu1 %v2436_v50  ;;  %v2526_v50 = vld [vmem:[%s2645_s28 + $0x5c8] ss:$16 sps:$4 sm:$0xff]  }
  0x81   : > { %1634 = vmatpush2.bf16.msra.mxu0 %v2431_v51  ;;  %v2531_v51 = vld [vmem:[%s2645_s28 + $0x3ac] ss:$16 sps:$4 sm:$0xff]  }
  0x82   : > { %1675 = vmatpush2.bf16.msra.mxu1 %v2434_v53  ;;  %1635 = vmatprep.subr.bf16.mxu0 %v2439_v54  ;;  %v2534_v53 = vld [vmem:[%s2645_s28 + $0x5ac] ss:$16 sps:$4 sm:$0xff]   ;;  %v2529_v54 = vld [vmem:[%s2645_s28 + $0x3a8] ss:$16 sps:$4 sm:$0xff]  }
  0x83   : > { %1676 = vmatprep.subr.bf16.mxu1 %v2442_v55  ;;  %v2532_v55 = vld [vmem:[%s2645_s28 + $0x5a8] ss:$16 sps:$4 sm:$0xff]  }
  0x85   : > { %1636 = vmatpush2.bf16.msra.mxu0 %v2437_v56  ;;  %v2537_v56 = vld [vmem:[%s2645_s28 + $0x38c] ss:$16 sps:$4 sm:$0xff]  }
  0x86   : > { %1677 = vmatpush2.bf16.msra.mxu1 %v2440_v57  ;;  %1637 = vmatprep.subr.bf16.mxu0 %v2445_v58  ;;  %v2540_v57 = vld [vmem:[%s2645_s28 + $0x58c] ss:$16 sps:$4 sm:$0xff]   ;;  %v2535_v58 = vld [vmem:[%s2645_s28 + $0x388] ss:$16 sps:$4 sm:$0xff]  }
  0x87   : > { %1678 = vmatprep.subr.bf16.mxu1 %v2448_v59  ;;  %v2538_v59 = vld [vmem:[%s2645_s28 + $0x588] ss:$16 sps:$4 sm:$0xff]  }
  0x89   : > { %1638 = vmatpush2.bf16.msra.mxu0 %v2443_v60  ;;  %v2543_v60 = vld [vmem:[%s2645_s28 + $0x36c] ss:$16 sps:$4 sm:$0xff]  }
  0x8a   : > { %1679 = vmatpush2.bf16.msra.mxu1 %v2446_v61  ;;  %1639 = vmatprep.subr.bf16.mxu0 %v2451_v62  ;;  %v2546_v61 = vld [vmem:[%s2645_s28 + $0x56c] ss:$16 sps:$4 sm:$0xff]   ;;  %v2541_v62 = vld [vmem:[%s2645_s28 + $0x368] ss:$16 sps:$4 sm:$0xff]  }
  0x8b   : > { %1680 = vmatprep.subr.bf16.mxu1 %v2454_v63  ;;  %v2544_v63 = vld [vmem:[%s2645_s28 + $0x568] ss:$16 sps:$4 sm:$0xff]  }
  0x8d   : > { %1640 = vmatpush2.bf16.msra.mxu0 %v2449_v0  ;;  %v2549_v0 = vld [vmem:[%s2645_s28 + $0x34c] ss:$16 sps:$4 sm:$0xff]  }
  0x8e   : > { %1681 = vmatpush2.bf16.msra.mxu1 %v2452_v1  ;;  %1641 = vmatprep.subr.bf16.mxu0 %v2457_v2  ;;  %v2552_v1 = vld [vmem:[%s2645_s28 + $0x54c] ss:$16 sps:$4 sm:$0xff]   ;;  %v2547_v2 = vld [vmem:[%s2645_s28 + $0x348] ss:$16 sps:$4 sm:$0xff]  }
  0x8f   : > { %1682 = vmatprep.subr.bf16.mxu1 %v2460_v3  ;;  %v2550_v3 = vld [vmem:[%s2645_s28 + $0x548] ss:$16 sps:$4 sm:$0xff]  }
  0x91   : > { %1642 = vmatpush2.bf16.msra.mxu0 %v2455_v4  ;;  %v2555_v4 = vld [vmem:[%s2645_s28 + $0x32c] ss:$16 sps:$4 sm:$0xff]  }
  0x92   : > { %1683 = vmatpush2.bf16.msra.mxu1 %v2458_v5  ;;  %1643 = vmatprep.subr.bf16.mxu0 %v2463_v6  ;;  %v2558_v5 = vld [vmem:[%s2645_s28 + $0x52c] ss:$16 sps:$4 sm:$0xff]   ;;  %v2553_v6 = vld [vmem:[%s2645_s28 + $0x328] ss:$16 sps:$4 sm:$0xff]  }
  0x93   : > { %1684 = vmatprep.subr.bf16.mxu1 %v2466_v9  ;;  %v2556_v9 = vld [vmem:[%s2645_s28 + $0x528] ss:$16 sps:$4 sm:$0xff]  }
  0x95   : > { %1644 = vmatpush2.bf16.msra.mxu0 %v2461_v10  ;;  %v2561_v10 = vld [vmem:[%s2645_s28 + $0x30c] ss:$16 sps:$4 sm:$0xff]  }
  0x96   : > { %1685 = vmatpush2.bf16.msra.mxu1 %v2464_v11  ;;  %1695 = vmatprep.subr.bf16.mxu0 %v2471_v12  ;;  %v2564_v11 = vld [vmem:[%s2645_s28 + $0x50c] ss:$16 sps:$4 sm:$0xff]   ;;  %v2559_v12 = vld [vmem:[%s2645_s28 + $0x308] ss:$16 sps:$4 sm:$0xff]  }
  0x97   : > { %1736 = vmatprep.subr.bf16.mxu1 %v2474_v13  ;;  %v2562_v13 = vld [vmem:[%s2645_s28 + $0x508] ss:$16 sps:$4 sm:$0xff]  }
  0x98   : > { %1646 = vmatmul.mubr.bf16.vlgmr.msra.gmra.mxu0 %v2803_v14 }
  0x99   : > { %1687 = vmatmul.mubr.bf16.vlgmr.msra.gmra.mxu1 %v2722_v7  ;;  %1696 = vmatpush1.bf16.msra.mxu0 %v2469_v15  ;;  %v2481_v7 = vld [vmem:[%s2645_s28 + $0x2a8] ss:$16 sps:$4 sm:$0xff]  }
  0x9a   : > { %1737 = vmatpush1.bf16.msra.mxu1 %v2472_v16  ;;  %1697 = vmatprep.subr.bf16.mxu0 %v2477_v17 }
  0x9b   : > { %1738 = vmatprep.subr.bf16.mxu1 %v2480_v18  ;;  %1727 = vmatprep.mubr.bf16.mxu0 %v2700_v52  ;;  %v2490_v52 = vld [vmem:[%s2645_s28 + $0x488] ss:$16 sps:$4 sm:$0xff]  }
  0x9c   : > { %1768 = vmatprep.mubr.bf16.mxu1 %v2759_v35  ;;  %v2507_v35 = vld [vmem:[%s2645_s28 + $0x22c] ss:$16 sps:$4 sm:$0xff]  }
  0x9d   : > { %1698 = vmatpush1.bf16.msra.mxu0 %v2475_v19 }
  0x9e   : > { %1739 = vmatpush1.bf16.msra.mxu1 %v2478_v20  ;;  %1699 = vmatprep.subr.bf16.mxu0 %v2483_v21 }
  0x9f   : > { %1740 = vmatprep.subr.bf16.mxu1 %v2486_v22 }
  0xa1   : > { %1700 = vmatpush1.bf16.msra.mxu0 %v2481_v7 }
  0xa2   : > { %1741 = vmatpush1.bf16.msra.mxu1 %v2484_v23  ;;  %1701 = vmatprep.subr.bf16.mxu0 %v2489_v24  ;;  %v351_v23 = vld [vmem:[#allocation2 + $0x10] sm:$0xff] }
  0xa3   : > { %1742 = vmatprep.subr.bf16.mxu1 %v2492_v25 }
  0xa5   : > { %1702 = vmatpush1.bf16.msra.mxu0 %v2487_v26 }
  0xa6   : > { %1743 = vmatpush1.bf16.msra.mxu1 %v2490_v52  ;;  %1703 = vmatprep.subr.bf16.mxu0 %v2495_v27  ;;  %v352_v27 = vld [vmem:[#allocation2] sm:$0xff] }
  0xa7   : > { %1744 = vmatprep.subr.bf16.mxu1 %v2498_v28 }
  0xa9   : > { %1704 = vmatpush1.bf16.msra.mxu0 %v2493_v29 }
  0xaa   : > { %1745 = vmatpush1.bf16.msra.mxu1 %v2496_v30  ;;  %1705 = vmatprep.subr.bf16.mxu0 %v2501_v31 }
  0xab   : > { %1746 = vmatprep.subr.bf16.mxu1 %v2504_v32 }
  0xad   : > { %1706 = vmatpush1.bf16.msra.mxu0 %v2499_v33 }
  0xae   : > { %1747 = vmatpush1.bf16.msra.mxu1 %v2502_v34  ;;  %1707 = vmatprep.subr.bf16.mxu0 %v2507_v35 }
  0xaf   : > { %1748 = vmatprep.subr.bf16.mxu1 %v2510_v36 }
  0xb1   : > { %1708 = vmatpush1.bf16.msra.mxu0 %v2505_v37 }
  0xb2   : > { %1749 = vmatpush1.bf16.msra.mxu1 %v2508_v38  ;;  %1709 = vmatprep.subr.bf16.mxu0 %v2513_v39  ;;  %v353_v38 = vld [vmem:[#allocation2 + $0x18] sm:$0xff] }
  0xb3   : > { %1750 = vmatprep.subr.bf16.mxu1 %v2516_v40 }
  0xb5   : > { %1710 = vmatpush1.bf16.msra.mxu0 %v2511_v41 }
  0xb6   : > { %1751 = vmatpush1.bf16.msra.mxu1 %v2514_v42  ;;  %1711 = vmatprep.subr.bf16.mxu0 %v2519_v43  ;;  %v354_v43 = vld [vmem:[#allocation2 + $0x8] sm:$0xff] }
  0xb7   : > { %1752 = vmatprep.subr.bf16.mxu1 %v2522_v44 }
  0xb9   : > { %1712 = vmatpush2.bf16.msra.mxu0 %v2517_v45 }
  0xba   : > { %1753 = vmatpush2.bf16.msra.mxu1 %v2520_v46  ;;  %1713 = vmatprep.subr.bf16.mxu0 %v2525_v47 }
  0xbb   : > { %1754 = vmatprep.subr.bf16.mxu1 %v2528_v48 }
  0xbd   : > { %1714 = vmatpush2.bf16.msra.mxu0 %v2523_v49 }
  0xbe   : > { %1755 = vmatpush2.bf16.msra.mxu1 %v2526_v50  ;;  %1715 = vmatprep.subr.bf16.mxu0 %v2531_v51 }
  0xbf   : > { %1756 = vmatprep.subr.bf16.mxu1 %v2534_v53 }
  0xc1   : > { %1716 = vmatpush2.bf16.msra.mxu0 %v2529_v54 }
  0xc2   : > { %1757 = vmatpush2.bf16.msra.mxu1 %v2532_v55  ;;  %1717 = vmatprep.subr.bf16.mxu0 %v2537_v56 }
  0xc3   : > { %1758 = vmatprep.subr.bf16.mxu1 %v2540_v57 }
  0xc5   : > { %1718 = vmatpush2.bf16.msra.mxu0 %v2535_v58 }
  0xc6   : > { %1759 = vmatpush2.bf16.msra.mxu1 %v2538_v59  ;;  %1719 = vmatprep.subr.bf16.mxu0 %v2543_v60 }
  0xc7   : > { %1760 = vmatprep.subr.bf16.mxu1 %v2546_v61 }
  0xc9   : > { %1720 = vmatpush2.bf16.msra.mxu0 %v2541_v62 }
  0xca   : > { %1761 = vmatpush2.bf16.msra.mxu1 %v2544_v63  ;;  %1721 = vmatprep.subr.bf16.mxu0 %v2549_v0 }
  0xcb   : > { %1762 = vmatprep.subr.bf16.mxu1 %v2552_v1 }
  0xcd   : > { %1722 = vmatpush2.bf16.msra.mxu0 %v2547_v2 }
  0xce   : > { %1763 = vmatpush2.bf16.msra.mxu1 %v2550_v3  ;;  %1723 = vmatprep.subr.bf16.mxu0 %v2555_v4 }
  0xcf   : > { %1764 = vmatprep.subr.bf16.mxu1 %v2558_v5 }
  0xd1   : > { %1724 = vmatpush2.bf16.msra.mxu0 %v2553_v6 }
  0xd2   : > { %1765 = vmatpush2.bf16.msra.mxu1 %v2556_v9  ;;  %1725 = vmatprep.subr.bf16.mxu0 %v2561_v10 }
  0xd3   : > { %1766 = vmatprep.subr.bf16.mxu1 %v2564_v11 }
  0xd5   : > { %1726 = vmatpush2.bf16.msra.mxu0 %v2559_v12 }
  0xd6   : > { %1767 = vmatpush2.bf16.msra.mxu1 %v2562_v13 }
  0xd8   : > { %1728 = vmatmul.mubr.bf16.vlgmr.msra.gmra.mxu0 %v2724_v8 }
  0xd9   : > { %1769 = vmatmul.mubr.bf16.vlgmr.msra.gmra.mxu1 %v2803_v14 }
 0x118   : > { %v1565_v15 = vpop.f32.mrf.mxu0 }
 0x119   : > { %v1606_v16 = vpop.f32.mrf.mxu1 }
 0x11a   : > { %v1567_v17 = vpop.f32.mrf.mxu0  ;;  %v1607_v7 = vadd.f32 %v1606_v16, %v1565_v15 }
 0x11b   : > { %v1608_v18 = vpop.f32.mrf.mxu1 }
 0x11c   : > { %v1569_v19 = vpop.f32.mrf.mxu0  ;;  %v1609_v26 = vadd.f32 %v1608_v18, %v1567_v17 }
 0x11d   : > { %v1610_v20 = vpop.f32.mrf.mxu1 }
 0x11e   : > { %v1570_v21 = vpop.f32.mrf.mxu0 }
 0x11f   : > { %v1611_v22 = vpop.f32.mrf.mxu1 }
 0x158   : > { %v1647_v24 = vpop.f32.mrf.mxu0 }
 0x159   : > { %v1688_v25 = vpop.f32.mrf.mxu1  ;;  %v1648_v52 = vadd.f32 %v1647_v24, %v1607_v7 }
 0x15a   : > { %v1649_v28 = vpop.f32.mrf.mxu0 }
 0x15b   : > { %v1690_v29 = vpop.f32.mrf.mxu1  ;;  %v1777_v8 = vadd.f32 %v1648_v52, %v351_v23  ;;  %v1650_v30 = vadd.f32 %v1649_v28, %v1609_v26 }
 0x15c   : > { %v1651_v14 = vpop.f32.mrf.mxu0 }
 0x15d   : > { %v1692_v31 = vpop.f32.mrf.mxu1  ;;  %1781 = vst [vmem:[#allocation2 + $0x10] sm:$0xff] %v1777_v8  ;;  %v1778_v32 = vadd.f32 %v1650_v30, %v352_v27 }
 0x15e   : > { %v1652_v33 = vpop.f32.mrf.mxu0 }
 0x15f   : > { %v1693_v34 = vpop.f32.mrf.mxu1  ;;  %1782 = vst [vmem:[#allocation2] sm:$0xff] %v1778_v32 }
 0x198   : > { %v1729_v35 = vpop.f32.mrf.mxu0 }
 0x199   : > { %v1770_v36 = vpop.f32.mrf.mxu1  ;;  %v1730_v37 = vadd.f32 %v1729_v35, %v1688_v25 }
 0x19a   : > { %v1731_v39 = vpop.f32.mrf.mxu0 }
 0x19b   : > { %v1772_v40 = vpop.f32.mrf.mxu1  ;;  %v1771_v41 = vadd.f32 %v1770_v36, %v1730_v37  ;;  %v1732_v42 = vadd.f32 %v1731_v39, %v1690_v29 }
 0x19c   : > { %v1733_v44 = vpop.f32.mrf.mxu0 }
 0x19d   : > { %v1774_v45 = vpop.f32.mrf.mxu1  ;;  %v1779_v46 = vadd.f32 %v1771_v41, %v353_v38  ;;  %v1773_v47 = vadd.f32 %v1772_v40, %v1732_v42  ;;  %1788 = sbr.rel (%p2235_p7) target bundleno = 439 (0x1b7), region = 44 }
 0x19e   : > { %v1734_v48 = vpop.f32.mrf.mxu0 }
 0x19f   : > { %v1775_v49 = vpop.f32.mrf.mxu1  ;;  %1783 = vst [vmem:[#allocation2 + $0x18] sm:$0xff] %v1779_v46  ;;  %v1780_v50 = vadd.f32 %v1773_v47, %v354_v43 }
 0x1a1   : > { %1784 = vst [vmem:[#allocation2 + $0x8] sm:$0xff] %v1780_v50 }
 0x1a2   : > { %v1795_v51 = vlaneseq  ;;  %v1793_v54 = vld [vmem:[%s2903_s2] ss:$2 sm:$0xf]  ;;  %v2236_v55 = vld [vmem:[%s2903_s2 + $0x1] ss:$2 sm:$0xf] }
 0x1a3   : > { %v1789_v60 = vld [vmem:[#allocation2 + $0x10] sm:$0xff]  ;;  %v1790_v61 = vld [vmem:[#allocation2] sm:$0xff]  ;;  %v1847_v5 = vld [vmem:[%s2904_s3 + $0x8] sm:$0xff] }
 0x1a4   : > { %v1796_v53 = vshrl.u32 %v1795_v51, 7  ;;  %v1846_v62 = vld [vmem:[%s2904_s3] sm:$0xff]  ;;  %v1850_v19 = vunpack.c.l.bf16 %v1847_v5  ;;  %v1851_v20 = vunpack.c.h.bf16 %v1847_v5 }
 0x1a5   : > { %v1848_v15 = vunpack.c.l.bf16 %v1846_v62  ;;  %v1849_v16 = vunpack.c.h.bf16 %v1846_v62 }
 0x1a6   : > { %v1797_v56 = vsub.s32 0, %v1796_v53  ;;  %v1801_v57 = vsub.s32 1, %v1796_v53  ;;  %v1805_v58 = vsub.s32 2, %v1796_v53  ;;  %v1809_v59 = vsub.s32 3, %v1796_v53  ;;  %v1791_v3 = vld [vmem:[#allocation2 + $0x18] sm:$0xff] }
 0x1a8   : > { %v1798_v63 = vrot.slane %v1793_v54, %v1797_v56  ;;  %v1802_v0 = vrot.slane %v1793_v54, %v1801_v57  ;;  %v1825_v1 = vrot.slane %v2236_v55, %v1797_v56  ;;  %v1829_v2 = vrot.slane %v2236_v55, %v1801_v57  ;;  %v1792_v4 = vld [vmem:[#allocation2 + $0x8] sm:$0xff] }
 0x1a9   : > { %v1806_v6 = vrot.slane %v1793_v54, %v1805_v58  ;;  %v1810_v9 = vrot.slane %v1793_v54, %v1809_v59  ;;  %v1833_v10 = vrot.slane %v2236_v55, %v1805_v58  ;;  %v1837_v11 = vrot.slane %v2236_v55, %v1809_v59 }
 0x1aa   : > { %v1815_v12 = vmul.f32 %v1798_v63, %v1789_v60  ;;  %v1816_v13 = vmul.f32 %v1802_v0, %v1790_v61 }
 0x1ab   : > { %v1817_v17 = vmul.f32 %v1806_v6, %v1791_v3  ;;  %v1818_v18 = vmul.f32 %v1810_v9, %v1792_v4 }
 0x1ac   : > { %v1842_v21 = vadd.f32 %v1825_v1, %v1815_v12  ;;  %v1843_v22 = vadd.f32 %v1829_v2, %v1816_v13 }
 0x1ad   : > { %v1844_v7 = vadd.f32 %v1833_v10, %v1817_v17  ;;  %v1845_v23 = vadd.f32 %v1837_v11, %v1818_v18 }
 0x1ae   : > { %v1852_v24 = vadd.f32 %v1848_v15, %v1842_v21  ;;  %v1853_v25 = vadd.f32 %v1849_v16, %v1843_v22 }
 0x1af   : > { %v1854_v26 = vadd.f32 %v1850_v19, %v1844_v7  ;;  %v1855_v52 = vadd.f32 %v1851_v20, %v1845_v23 }
 0x1b0   : > { %vm1856_vm0 = vcmp.ge.f32.partialorder %v1852_v24, 0.0  ;;  %vm1857_vm1 = vcmp.ge.f32.partialorder %v1853_v25, 0.0  ;;  %v1860_v27 = vmul.f32 0.01, %v1852_v24  ;;  %v1861_v28 = vmul.f32 0.01, %v1853_v25 }
 0x1b1   : > { %vm1858_vm2 = vcmp.ge.f32.partialorder %v1854_v26, 0.0  ;;  %vm1859_vm3 = vcmp.ge.f32.partialorder %v1855_v52, 0.0  ;;  %v1862_v29 = vmul.f32 0.01, %v1854_v26  ;;  %v1863_v8 = vmul.f32 0.01, %v1855_v52 }
 0x1b2   : > { %v1864_v30 = vsel %vm1856_vm0, %v1852_v24, %v1860_v27  ;;  %v1865_v14 = vsel %vm1857_vm1, %v1853_v25, %v1861_v28 }
 0x1b3   : > { %v2244_v31 = vpack.c.bf16 %v1865_v14, %v1864_v30  ;;  %v1866_v32 = vsel %vm1858_vm2, %v1854_v26, %v1862_v29  ;;  %v1867_v33 = vsel %vm1859_vm3, %v1855_v52, %v1863_v8 }
 0x1b4   : > { %v2245_v34 = vpack.c.bf16 %v1867_v33, %v1866_v32 }
 0x1b5   : > { %1884 = vst [vmem:[%s2905_s4] sm:$0xff] %v2244_v31 }
 0x1b6   : > { %1885 = vst [vmem:[%s2905_s4 + $0x8] sm:$0xff] %v2245_v34 }
 0x1b7 PF: > { %s14_s17 = sadd.s32 1, %s2587_s17   ;;  %s2906_s15 = smov %s2583_s16 }
 0x1b8   : > { %p11_p8 = scmp.ge.s32.totalorder %s14_s17, 8   ;;  %s2907_s16 = smov %s2909_s18 }
 0x1ba   :  { %13 = sbr.rel (!%p11_p8) target bundleno = 2 (0x2), region = 84 }

</bundles_post_ra>
